<compile_context>
chip_gen: v6e
topology: v6e:2x2x1
jax: 0.10.0
libtpu: 0.0.40
codegen_flags: <defaults>
</compile_context>

<pallas_src>
import jax
import jax.numpy as jnp
from jax import lax
from jax.experimental import pallas as pl
from jax.experimental.pallas import tpu as pltpu


def _round_up(x, m):
    return (x + m - 1) // m * m


def _pick_tq(n, cap):
    """Largest multiple-of-8 divisor of n that is <= cap (0 if none exists)."""
    best = 0
    t = 8
    top = min(cap, n)
    while t <= top:
        if n % t == 0:
            best = t
        t += 8
    return best


# ----------------------------------------------------------------------------
# Pallas kernel factory
# ----------------------------------------------------------------------------
def _make_gsa_kernel(num_heads, head_dim, C, use_sr):
    def kernel(*refs):
        if use_sr:
            (xq_ref, xs_ref, w_sr_ref, b_sr_ref, g_ref, bt_ref,
             wq_ref, bq_ref, wkv_ref, bkv_ref, wp_ref, bp_ref,
             o_ref, kv_sc, q_sc, o_sc) = refs
        else:
            (xq_ref, xs_ref,
             wq_ref, bq_ref, wkv_ref, bkv_ref, wp_ref, bp_ref,
             o_ref, kv_sc, q_sc, o_sc) = refs

        # ---- K/V build: once per batch element (query-tile axis is innermost) ----
        @pl.when(pl.program_id(1) == 0)
        def _():
            xs = xs_ref[0]                                        # (Ns, P) bf16
            if use_sr:
                # strided conv (kernel = stride = sr) expressed as a patch matmul
                xs32 = jnp.dot(xs, w_sr_ref[...],
                               preferred_element_type=jnp.float32) + b_sr_ref[...]
                # LayerNorm statistics strictly in f32
                mu = jnp.mean(xs32, axis=-1, keepdims=True)
                d = xs32 - mu
                var = jnp.mean(jnp.square(d), axis=-1, keepdims=True)
                xs32 = d * lax.rsqrt(var + 1e-5)
                xs32 = xs32 * g_ref[...] + bt_ref[...]            # LN affine (f32)
                xs = xs32.astype(jnp.bfloat16)
            # fused K & V projection: one wide (Ns, C) @ (C, 2C) bf16 MXU matmul
            kv = jnp.dot(xs, wkv_ref[...],
                         preferred_element_type=jnp.float32) + bkv_ref[...]
            kv_sc[...] = kv.astype(jnp.bfloat16)                  # K | V in one scratch

        # ---- Q projection for this query tile (scale folded into Wq/bq) ----
        q = jnp.dot(xq_ref[0], wq_ref[...],
                    preferred_element_type=jnp.float32) + bq_ref[...]
        q_sc[...] = q.astype(jnp.bfloat16)                        # (TQ, C) staged in VMEM

        # ---- per-head attention; outputs staged into o_sc (no value accumulator).
        #      Ref slices (static) below are free; no cross-iteration live values,
        #      so the static unroll stays register-friendly for large num_heads. ----
        for h in range(num_heads):
            sl = slice(h * head_dim, (h + 1) * head_dim)
            qh = q_sc[:, sl]                                      # (TQ, hd) bf16
            kh = kv_sc[:, sl]                                     # (Ns, hd) bf16
            vh = kv_sc[:, C + h * head_dim: C + (h + 1) * head_dim]
            # NT matmul: contract head dims directly, no explicit kh.T transpose
            s = lax.dot_general(qh, kh, (((1,), (1,)), ((), ())),
                                preferred_element_type=jnp.float32)   # (TQ, Ns) f32
            s = s - jnp.max(s, axis=-1, keepdims=True)
            p = jnp.exp(s)
            p = p * pl.reciprocal(jnp.sum(p, axis=-1, keepdims=True), approx=True)
            # TODO(synk): attn_drop / proj_drop omitted (identity at p=0 / eval mode)
            oh = jnp.dot(p.astype(jnp.bfloat16), vh,
                         preferred_element_type=jnp.float32)          # (TQ, hd) f32
            o_sc[:, sl] = oh.astype(jnp.bfloat16)

        # ---- single full-K output projection + bias (replaces per-head accumulation) ----
        y = jnp.dot(o_sc[...], wp_ref[...], preferred_element_type=jnp.float32)
        o_ref[0] = (y + bp_ref[...]).astype(o_ref.dtype)

    return kernel


# ----------------------------------------------------------------------------
# Wrapper
# ----------------------------------------------------------------------------
def global_subsample_attn(x, size, params, num_heads, sr_ratio, *, tq=256):
    """GSA forward.  `tq` caps the query tile: 256 is v7x-safe (64 MiB VMEM);
    on v6e/v5e (128 MiB VMEM) pass tq=384..512 to amortise per-step overhead."""
    B, N, C = x.shape
    H, W = size
    assert N == H * W and C % num_heads == 0
    head_dim = C // num_heads
    scale = head_dim ** (-0.5)
    use_sr = sr_ratio > 1

    bf16, f32 = jnp.bfloat16, jnp.float32
    wq, bq, wkv, bkv, wp, bp, w_sr, b_sr, gamma, beta = params

    # bf16 MXU operands; attention scale folded into the Q projection.
    wq_s = (wq.astype(f32) * scale).astype(bf16)
    bq_s = bq.astype(f32) * scale
    wkv_b = wkv.astype(bf16)
    wp_b = wp.astype(bf16)

    if use_sr:
        assert H % sr_ratio == 0 and W % sr_ratio == 0
        hs, ws = H // sr_ratio, W // sr_ratio
        Ns = hs * ws
        P = sr_ratio * sr_ratio * C
        # pure reshape/transpose glue: (B, H, W, C) -> (B, Ns, sr*sr*C) patches
        xs = (x.reshape(B, hs, sr_ratio, ws, sr_ratio, C)
                .transpose(0, 1, 3, 2, 4, 5)
                .reshape(B, Ns, P)).astype(bf16)
        w_sr_b = w_sr.astype(bf16)
    else:
        Ns, P = N, C
        xs = x.astype(bf16)

    # Query tile: largest multiple-of-8 divisor of N <= tq (no padded-row waste);
    # fall back to padding only when N has no such divisor.
    TQ = _pick_tq(N, tq)
    if TQ == 0:
        TQ = min(tq, _round_up(N, 8))
    Npad = _round_up(N, TQ)
    xq = x.astype(bf16)
    if Npad != N:
        xq = jnp.pad(xq, ((0, 0), (0, Npad - N), (0, 0)))
    nq = Npad // TQ

    kernel = _make_gsa_kernel(num_heads, head_dim, C, use_sr)

    tok = lambda b, qi: (b, qi, 0)
    kvm = lambda b, qi: (b, 0, 0)       # same block for all query tiles of a batch
    cst = lambda b, qi: (0, 0)
    row = lambda a: a.astype(f32).reshape(1, -1)   # biases / LN affine stay f32

    inputs = [xq, xs]
    in_specs = [pl.BlockSpec((1, TQ, C), tok),
                pl.BlockSpec((1, Ns, P), kvm)]
    if use_sr:
        inputs += [w_sr_b, row(b_sr), row(gamma), row(beta)]
        in_specs += [pl.BlockSpec((P, C), cst), pl.BlockSpec((1, C), cst),
                     pl.BlockSpec((1, C), cst), pl.BlockSpec((1, C), cst)]
    inputs += [wq_s, row(bq_s), wkv_b, row(bkv), wp_b, row(bp)]
    in_specs += [pl.BlockSpec((C, C), cst), pl.BlockSpec((1, C), cst),
                 pl.BlockSpec((C, 2 * C), cst), pl.BlockSpec((1, 2 * C), cst),
                 pl.BlockSpec((C, C), cst), pl.BlockSpec((1, C), cst)]

    # Advisory cost estimate so XLA schedules the surrounding reshape/crop sensibly.
    flops = B * (4 * Npad * C * C            # q proj + out proj
                 + 4 * Npad * Ns * C         # scores + PV (summed over heads)
                 + 4 * Ns * C * C            # fused KV projection
                 + (2 * Ns * P * C if use_sr else 0))
    transcendentals = B * num_heads * Npad * Ns
    bytes_accessed = int(sum(int(a.size) * a.dtype.itemsize for a in inputs)
                         + B * Npad * C * x.dtype.itemsize)

    out = pl.pallas_call(
        kernel,
        out_shape=jax.ShapeDtypeStruct((B, Npad, C), x.dtype),
        grid=(B, nq),
        in_specs=in_specs,
        out_specs=pl.BlockSpec((1, TQ, C), tok),
        scratch_shapes=[pltpu.VMEM((Ns, 2 * C), bf16),   # K|V cache (per batch element)
                        pltpu.VMEM((TQ, C), bf16),       # staged Q tile (Ref-sliced per head)
                        pltpu.VMEM((TQ, C), bf16)],      # per-head outputs -> one projection
        compiler_params=pltpu.CompilerParams(
            dimension_semantics=("parallel", "arbitrary"),
            vmem_limit_bytes=64 * 1024 * 1024),
        cost_estimate=pl.CostEstimate(flops=int(flops),
                                      transcendentals=int(transcendentals),
                                      bytes_accessed=bytes_accessed),
    )(*inputs)

    if Npad != N:
        out = out[:, :N, :]
    return out


# ----------------------------------------------------------------------------
# Pure-JAX f32 reference (mirrors the PyTorch forward)
# ----------------------------------------------------------------------------
def reference(x, size, params, num_heads, sr_ratio):
    B, N, C = x.shape
    H, W = size
    hd = C // num_heads
    scale = hd ** (-0.5)
    wq, bq, wkv, bkv, wp, bp, w_sr, b_sr, gamma, beta = params

    q = (x @ wq + bq).reshape(B, N, num_heads, hd).transpose(0, 2, 1, 3)

    if sr_ratio > 1:
        hs, ws = H // sr_ratio, W // sr_ratio
        patches = (x.reshape(B, hs, sr_ratio, ws, sr_ratio, C)
                     .transpose(0, 1, 3, 2, 4, 5)
                     .reshape(B, hs * ws, sr_ratio * sr_ratio * C))
        xs = patches @ w_sr + b_sr
        mu = xs.mean(-1, keepdims=True)
        var = ((xs - mu) ** 2).mean(-1, keepdims=True)
        xs = (xs - mu) / jnp.sqrt(var + 1e-5) * gamma + beta
    else:
        xs = x
    Ns = xs.shape[1]

    kv = (xs @ wkv + bkv).reshape(B, Ns, 2, num_heads, hd).transpose(2, 0, 3, 1, 4)
    k, v = kv[0], kv[1]
    attn = jax.nn.softmax((q @ jnp.swapaxes(k, -1, -2)) * scale, axis=-1)
    o = (attn @ v).transpose(0, 2, 1, 3).reshape(B, N, C)
    return o @ wp + bp


if __name__ == "__main__":
    # Small but representative: dim=32, heads=4 (head_dim=8), 16x16 spatial, sr_ratio=2.
    B, H, W, C, num_heads, sr_ratio = 2, 16, 16, 32, 4, 2
    N = H * W
    P = sr_ratio * sr_ratio * C

    key = jax.random.PRNGKey(0)
    ks = jax.random.split(key, 11)
    x = jax.random.normal(ks[0], (B, N, C), jnp.float32)

    wq = jax.random.normal(ks[1], (C, C), jnp.float32) * 0.1
    bq = jax.random.normal(ks[2], (C,), jnp.float32) * 0.02
    wkv = jax.random.normal(ks[3], (C, 2 * C), jnp.float32) * 0.1
    bkv = jax.random.normal(ks[4], (2 * C,), jnp.float32) * 0.02
    wp = jax.random.normal(ks[5], (C, C), jnp.float32) * 0.1
    bp = jax.random.normal(ks[6], (C,), jnp.float32) * 0.02
    w_sr = jax.random.normal(ks[7], (P, C), jnp.float32) * 0.1    # strided conv as matmul
    b_sr = jax.random.normal(ks[8], (C,), jnp.float32) * 0.02
    gamma = 1.0 + jax.random.normal(ks[9], (C,), jnp.float32) * 0.02
    beta = jax.random.normal(ks[10], (C,), jnp.float32) * 0.02

    params = (wq, bq, wkv, bkv, wp, bp, w_sr, b_sr, gamma, beta)

    out = global_subsample_attn(x, (H, W), params, num_heads, sr_ratio)
    out = jax.block_until_ready(out)

    ref = reference(x, (H, W), params, num_heads, sr_ratio)
    assert out.shape == (B, N, C)
    err = float(jnp.max(jnp.abs(out - ref)))
    # bf16 MXU operands + approx softmax reciprocal vs. the f32 reference
    assert jnp.allclose(out, ref, atol=2e-2, rtol=2e-2), err

    print("KERNEL_OK")
</pallas_src>

<mosaic_0001>
module attributes {stable_mosaic.version = 11 : i64} {
  func.func @kernel(%arg0: i32, %arg1: i32, %arg2: memref<1x256x32xbf16, #tpu.memory_space<vmem>>, %arg3: memref<1x64x128xbf16, #tpu.memory_space<vmem>>, %arg4: memref<128x32xbf16, #tpu.memory_space<vmem>>, %arg5: memref<1x32xf32, #tpu.memory_space<vmem>>, %arg6: memref<1x32xf32, #tpu.memory_space<vmem>>, %arg7: memref<1x32xf32, #tpu.memory_space<vmem>>, %arg8: memref<32x32xbf16, #tpu.memory_space<vmem>>, %arg9: memref<1x32xf32, #tpu.memory_space<vmem>>, %arg10: memref<32x64xbf16, #tpu.memory_space<vmem>>, %arg11: memref<1x64xf32, #tpu.memory_space<vmem>>, %arg12: memref<32x32xbf16, #tpu.memory_space<vmem>>, %arg13: memref<1x32xf32, #tpu.memory_space<vmem>>, %arg14: memref<1x256x32xf32, #tpu.memory_space<vmem>>, %arg15: memref<64x64xbf16, #tpu.memory_space<vmem>>, %arg16: memref<256x32xbf16, #tpu.memory_space<vmem>>, %arg17: memref<256x32xbf16, #tpu.memory_space<vmem>>) attributes {dimension_semantics = [#tpu.dimension_semantics<parallel>, #tpu.dimension_semantics<arbitrary>], iteration_bounds = array<i64: 2, 1>, scalar_prefetch = 0 : i64, scratch_operands = 3 : i64, tpu.core_type = #tpu.core_type<tc>, window_params = [{transform_indices = @transform_0, window_bounds = array<i64: 1, 256, 32>}, {transform_indices = @transform_1, window_bounds = array<i64: 1, 64, 128>}, {pipeline_mode = #tpu.pipeline_mode<synchronous>, transform_indices = @transform_2, window_bounds = array<i64: 128, 32>}, {pipeline_mode = #tpu.pipeline_mode<synchronous>, transform_indices = @transform_3, window_bounds = array<i64: 1, 32>}, {pipeline_mode = #tpu.pipeline_mode<synchronous>, transform_indices = @transform_4, window_bounds = array<i64: 1, 32>}, {pipeline_mode = #tpu.pipeline_mode<synchronous>, transform_indices = @transform_5, window_bounds = array<i64: 1, 32>}, {pipeline_mode = #tpu.pipeline_mode<synchronous>, transform_indices = @transform_6, window_bounds = array<i64: 32, 32>}, {pipeline_mode = #tpu.pipeline_mode<synchronous>, transform_indices = @transform_7, window_bounds = array<i64: 1, 32>}, {pipeline_mode = #tpu.pipeline_mode<synchronous>, transform_indices = @transform_8, window_bounds = array<i64: 32, 64>}, {pipeline_mode = #tpu.pipeline_mode<synchronous>, transform_indices = @transform_9, window_bounds = array<i64: 1, 64>}, {pipeline_mode = #tpu.pipeline_mode<synchronous>, transform_indices = @transform_10, window_bounds = array<i64: 32, 32>}, {pipeline_mode = #tpu.pipeline_mode<synchronous>, transform_indices = @transform_11, window_bounds = array<i64: 1, 32>}, {transform_indices = @transform_12, window_bounds = array<i64: 1, 256, 32>}]} {
    %c0_i32 = arith.constant 0 : i32
    %0 = arith.cmpi eq, %arg1, %c0_i32 : i32
    %1 = arith.extui %0 : i1 to i32
    %c0_i32_0 = arith.constant 0 : i32
    %2 = arith.cmpi ne, %1, %c0_i32_0 : i32
    scf.if %2 {
      %c0_60 = arith.constant 0 : index
      %c0_61 = arith.constant 0 : index
      %c0_62 = arith.constant 0 : index
      %93 = vector.load %arg3[%c0_60, %c0_61, %c0_62] : memref<1x64x128xbf16, #tpu.memory_space<vmem>>, vector<1x64x128xbf16>
      %94 = vector.shape_cast %93 : vector<1x64x128xbf16> to vector<64x128xbf16>
      %c0_63 = arith.constant 0 : index
      %c0_64 = arith.constant 0 : index
      %95 = vector.load %arg4[%c0_63, %c0_64] : memref<128x32xbf16, #tpu.memory_space<vmem>>, vector<128x32xbf16>
      %cst_65 = arith.constant dense<0.000000e+00> : vector<64x32xf32>
      %96 = tpu.matmul %94, %95, %cst_65 {dimension_numbers = #tpu.dot_dimension_numbers<[1], [0], [0], [1], [0, 0, 1, 1], [], []>} : vector<64x128xbf16>, vector<128x32xbf16>, vector<64x32xf32> -> vector<64x32xf32>
      %c0_66 = arith.constant 0 : index
      %c0_67 = arith.constant 0 : index
      %97 = vector.load %arg5[%c0_66, %c0_67] : memref<1x32xf32, #tpu.memory_space<vmem>>, vector<1x32xf32>
      %98 = vector.broadcast %97 : vector<1x32xf32> to vector<64x32xf32>
      %99 = arith.addf %96, %98 : vector<64x32xf32>
      %cst_68 = arith.constant dense<0.000000e+00> : vector<64xf32>
      %100 = vector.multi_reduction <add>, %99, %cst_68 [1] : vector<64x32xf32> to vector<64xf32>
      %101 = vector.shape_cast %100 : vector<64xf32> to vector<64x1xf32>
      %cst_69 = arith.constant 3.200000e+01 : f32
      %102 = vector.broadcast %cst_69 : f32 to vector<64x1xf32>
      %103 = arith.divf %101, %102 : vector<64x1xf32>
      %104 = vector.broadcast %103 : vector<64x1xf32> to vector<64x32xf32>
      %105 = arith.subf %99, %104 : vector<64x32xf32>
      %106 = arith.mulf %105, %105 : vector<64x32xf32>
      %cst_70 = arith.constant dense<0.000000e+00> : vector<64xf32>
      %107 = vector.multi_reduction <add>, %106, %cst_70 [1] : vector<64x32xf32> to vector<64xf32>
      %108 = vector.shape_cast %107 : vector<64xf32> to vector<64x1xf32>
      %cst_71 = arith.constant 3.200000e+01 : f32
      %109 = vector.broadcast %cst_71 : f32 to vector<64x1xf32>
      %110 = arith.divf %108, %109 : vector<64x1xf32>
      %cst_72 = arith.constant 9.99999974E-6 : f32
      %111 = vector.broadcast %cst_72 : f32 to vector<64x1xf32>
      %112 = arith.addf %110, %111 : vector<64x1xf32>
      %113 = math.rsqrt %112 : vector<64x1xf32>
      %114 = vector.broadcast %113 : vector<64x1xf32> to vector<64x32xf32>
      %115 = arith.mulf %105, %114 : vector<64x32xf32>
      %c0_73 = arith.constant 0 : index
      %c0_74 = arith.constant 0 : index
      %116 = vector.load %arg6[%c0_73, %c0_74] : memref<1x32xf32, #tpu.memory_space<vmem>>, vector<1x32xf32>
      %117 = vector.broadcast %116 : vector<1x32xf32> to vector<64x32xf32>
      %118 = arith.mulf %115, %117 : vector<64x32xf32>
      %c0_75 = arith.constant 0 : index
      %c0_76 = arith.constant 0 : index
      %119 = vector.load %arg7[%c0_75, %c0_76] : memref<1x32xf32, #tpu.memory_space<vmem>>, vector<1x32xf32>
      %120 = vector.broadcast %119 : vector<1x32xf32> to vector<64x32xf32>
      %121 = arith.addf %118, %120 : vector<64x32xf32>
      %122 = arith.truncf %121 : vector<64x32xf32> to vector<64x32xbf16>
      %c0_77 = arith.constant 0 : index
      %c0_78 = arith.constant 0 : index
      %123 = vector.load %arg10[%c0_77, %c0_78] : memref<32x64xbf16, #tpu.memory_space<vmem>>, vector<32x64xbf16>
      %cst_79 = arith.constant dense<0.000000e+00> : vector<64x64xf32>
      %124 = tpu.matmul %122, %123, %cst_79 {dimension_numbers = #tpu.dot_dimension_numbers<[1], [0], [0], [1], [0, 0, 1, 1], [], []>} : vector<64x32xbf16>, vector<32x64xbf16>, vector<64x64xf32> -> vector<64x64xf32>
      %c0_80 = arith.constant 0 : index
      %c0_81 = arith.constant 0 : index
      %125 = vector.load %arg11[%c0_80, %c0_81] : memref<1x64xf32, #tpu.memory_space<vmem>>, vector<1x64xf32>
      %126 = vector.broadcast %125 : vector<1x64xf32> to vector<64x64xf32>
      %127 = arith.addf %124, %126 : vector<64x64xf32>
      %128 = arith.truncf %127 : vector<64x64xf32> to vector<64x64xbf16>
      %c0_82 = arith.constant 0 : index
      %c0_83 = arith.constant 0 : index
      %129 = vector.load %arg15[%c0_82, %c0_83] : memref<64x64xbf16, #tpu.memory_space<vmem>>, vector<64x64xbf16>
      tpu.vector_store %arg15[%c0_82, %c0_83], %128 {strides = array<i32>} : memref<64x64xbf16, #tpu.memory_space<vmem>>, vector<64x64xbf16>,
    } else {
    }
    %c0 = arith.constant 0 : index
    %c0_1 = arith.constant 0 : index
    %c0_2 = arith.constant 0 : index
    %3 = vector.load %arg2[%c0, %c0_1, %c0_2] : memref<1x256x32xbf16, #tpu.memory_space<vmem>>, vector<1x256x32xbf16>
    %4 = vector.shape_cast %3 : vector<1x256x32xbf16> to vector<256x32xbf16>
    %c0_3 = arith.constant 0 : index
    %c0_4 = arith.constant 0 : index
    %5 = vector.load %arg8[%c0_3, %c0_4] : memref<32x32xbf16, #tpu.memory_space<vmem>>, vector<32x32xbf16>
    %cst = arith.constant dense<0.000000e+00> : vector<256x32xf32>
    %6 = tpu.matmul %4, %5, %cst {dimension_numbers = #tpu.dot_dimension_numbers<[1], [0], [0], [1], [0, 0, 1, 1], [], []>} : vector<256x32xbf16>, vector<32x32xbf16>, vector<256x32xf32> -> vector<256x32xf32>
    %c0_5 = arith.constant 0 : index
    %c0_6 = arith.constant 0 : index
    %7 = vector.load %arg9[%c0_5, %c0_6] : memref<1x32xf32, #tpu.memory_space<vmem>>, vector<1x32xf32>
    %8 = vector.broadcast %7 : vector<1x32xf32> to vector<256x32xf32>
    %9 = arith.addf %6, %8 : vector<256x32xf32>
    %10 = arith.truncf %9 : vector<256x32xf32> to vector<256x32xbf16>
    %c0_7 = arith.constant 0 : index
    %c0_8 = arith.constant 0 : index
    %11 = vector.load %arg16[%c0_7, %c0_8] : memref<256x32xbf16, #tpu.memory_space<vmem>>, vector<256x32xbf16>
    tpu.vector_store %arg16[%c0_7, %c0_8], %10 {strides = array<i32>} : memref<256x32xbf16, #tpu.memory_space<vmem>>, vector<256x32xbf16>,
    %c0_9 = arith.constant 0 : index
    %c0_10 = arith.constant 0 : index
    %12 = vector.load %arg16[%c0_9, %c0_10] : memref<256x32xbf16, #tpu.memory_space<vmem>>, vector<256x8xbf16>
    %c0_11 = arith.constant 0 : index
    %c0_12 = arith.constant 0 : index
    %13 = vector.load %arg15[%c0_11, %c0_12] : memref<64x64xbf16, #tpu.memory_space<vmem>>, vector<64x8xbf16>
    %c0_13 = arith.constant 0 : index
    %c32 = arith.constant 32 : index
    %14 = vector.load %arg15[%c0_13, %c32] : memref<64x64xbf16, #tpu.memory_space<vmem>>, vector<64x8xbf16>
    %cst_14 = arith.constant dense<0.000000e+00> : vector<256x64xf32>
    %15 = tpu.matmul %12, %13, %cst_14 {dimension_numbers = #tpu.dot_dimension_numbers<[1], [1], [0], [0], [0, 0, 1, 0], [], []>} : vector<256x8xbf16>, vector<64x8xbf16>, vector<256x64xf32> -> vector<256x64xf32>
    %cst_15 = arith.constant dense<0xFF800000> : vector<256xf32>
    %16 = vector.multi_reduction <maximumf>, %15, %cst_15 [1] : vector<256x64xf32> to vector<256xf32>
    %17 = vector.shape_cast %16 : vector<256xf32> to vector<256x1xf32>
    %18 = vector.broadcast %17 : vector<256x1xf32> to vector<256x64xf32>
    %19 = arith.subf %15, %18 : vector<256x64xf32>
    %20 = math.exp %19 : vector<256x64xf32>
    %cst_16 = arith.constant dense<0.000000e+00> : vector<256xf32>
    %21 = vector.multi_reduction <add>, %20, %cst_16 [1] : vector<256x64xf32> to vector<256xf32>
    %22 = vector.shape_cast %21 : vector<256xf32> to vector<256x1xf32>
    %23 = tpu.reciprocal %22 {approx = true} : vector<256x1xf32> -> vector<256x1xf32>
    %24 = vector.broadcast %23 : vector<256x1xf32> to vector<256x64xf32>
    %25 = arith.mulf %20, %24 : vector<256x64xf32>
    %26 = arith.truncf %25 : vector<256x64xf32> to vector<256x64xbf16>
    %cst_17 = arith.constant dense<0.000000e+00> : vector<256x8xf32>
    %27 = tpu.matmul %26, %14, %cst_17 {dimension_numbers = #tpu.dot_dimension_numbers<[1], [0], [0], [1], [0, 0, 1, 1], [], []>} : vector<256x64xbf16>, vector<64x8xbf16>, vector<256x8xf32> -> vector<256x8xf32>
    %28 = arith.truncf %27 : vector<256x8xf32> to vector<256x8xbf16>
    %c0_18 = arith.constant 0 : index
    %c0_19 = arith.constant 0 : index
    %29 = vector.load %arg17[%c0_18, %c0_19] : memref<256x32xbf16, #tpu.memory_space<vmem>>, vector<256x8xbf16>
    tpu.vector_store %arg17[%c0_18, %c0_19], %28 {strides = array<i32>} : memref<256x32xbf16, #tpu.memory_space<vmem>>, vector<256x8xbf16>,
    %c0_20 = arith.constant 0 : index
    %c8 = arith.constant 8 : index
    %30 = vector.load %arg16[%c0_20, %c8] : memref<256x32xbf16, #tpu.memory_space<vmem>>, vector<256x8xbf16>
    %c0_21 = arith.constant 0 : index
    %c8_22 = arith.constant 8 : index
    %31 = vector.load %arg15[%c0_21, %c8_22] : memref<64x64xbf16, #tpu.memory_space<vmem>>, vector<64x8xbf16>
    %c0_23 = arith.constant 0 : index
    %c40 = arith.constant 40 : index
    %32 = vector.load %arg15[%c0_23, %c40] : memref<64x64xbf16, #tpu.memory_space<vmem>>, vector<64x8xbf16>
    %cst_24 = arith.constant dense<0.000000e+00> : vector<256x64xf32>
    %33 = tpu.matmul %30, %31, %cst_24 {dimension_numbers = #tpu.dot_dimension_numbers<[1], [1], [0], [0], [0, 0, 1, 0], [], []>} : vector<256x8xbf16>, vector<64x8xbf16>, vector<256x64xf32> -> vector<256x64xf32>
    %cst_25 = arith.constant dense<0xFF800000> : vector<256xf32>
    %34 = vector.multi_reduction <maximumf>, %33, %cst_25 [1] : vector<256x64xf32> to vector<256xf32>
    %35 = vector.shape_cast %34 : vector<256xf32> to vector<256x1xf32>
    %36 = vector.broadcast %35 : vector<256x1xf32> to vector<256x64xf32>
    %37 = arith.subf %33, %36 : vector<256x64xf32>
    %38 = math.exp %37 : vector<256x64xf32>
    %cst_26 = arith.constant dense<0.000000e+00> : vector<256xf32>
    %39 = vector.multi_reduction <add>, %38, %cst_26 [1] : vector<256x64xf32> to vector<256xf32>
    %40 = vector.shape_cast %39 : vector<256xf32> to vector<256x1xf32>
    %41 = tpu.reciprocal %40 {approx = true} : vector<256x1xf32> -> vector<256x1xf32>
    %42 = vector.broadcast %41 : vector<256x1xf32> to vector<256x64xf32>
    %43 = arith.mulf %38, %42 : vector<256x64xf32>
    %44 = arith.truncf %43 : vector<256x64xf32> to vector<256x64xbf16>
    %cst_27 = arith.constant dense<0.000000e+00> : vector<256x8xf32>
    %45 = tpu.matmul %44, %32, %cst_27 {dimension_numbers = #tpu.dot_dimension_numbers<[1], [0], [0], [1], [0, 0, 1, 1], [], []>} : vector<256x64xbf16>, vector<64x8xbf16>, vector<256x8xf32> -> vector<256x8xf32>
    %46 = arith.truncf %45 : vector<256x8xf32> to vector<256x8xbf16>
    %c0_28 = arith.constant 0 : index
    %c8_29 = arith.constant 8 : index
    %47 = vector.load %arg17[%c0_28, %c8_29] : memref<256x32xbf16, #tpu.memory_space<vmem>>, vector<256x8xbf16>
    tpu.vector_store %arg17[%c0_28, %c8_29], %46 {strides = array<i32>} : memref<256x32xbf16, #tpu.memory_space<vmem>>, vector<256x8xbf16>,
    %c0_30 = arith.constant 0 : index
    %c16 = arith.constant 16 : index
    %48 = vector.load %arg16[%c0_30, %c16] : memref<256x32xbf16, #tpu.memory_space<vmem>>, vector<256x8xbf16>
    %c0_31 = arith.constant 0 : index
    %c16_32 = arith.constant 16 : index
    %49 = vector.load %arg15[%c0_31, %c16_32] : memref<64x64xbf16, #tpu.memory_space<vmem>>, vector<64x8xbf16>
    %c0_33 = arith.constant 0 : index
    %c48 = arith.constant 48 : index
    %50 = vector.load %arg15[%c0_33, %c48] : memref<64x64xbf16, #tpu.memory_space<vmem>>, vector<64x8xbf16>
    %cst_34 = arith.constant dense<0.000000e+00> : vector<256x64xf32>
    %51 = tpu.matmul %48, %49, %cst_34 {dimension_numbers = #tpu.dot_dimension_numbers<[1], [1], [0], [0], [0, 0, 1, 0], [], []>} : vector<256x8xbf16>, vector<64x8xbf16>, vector<256x64xf32> -> vector<256x64xf32>
    %cst_35 = arith.constant dense<0xFF800000> : vector<256xf32>
    %52 = vector.multi_reduction <maximumf>, %51, %cst_35 [1] : vector<256x64xf32> to vector<256xf32>
    %53 = vector.shape_cast %52 : vector<256xf32> to vector<256x1xf32>
    %54 = vector.broadcast %53 : vector<256x1xf32> to vector<256x64xf32>
    %55 = arith.subf %51, %54 : vector<256x64xf32>
    %56 = math.exp %55 : vector<256x64xf32>
    %cst_36 = arith.constant dense<0.000000e+00> : vector<256xf32>
    %57 = vector.multi_reduction <add>, %56, %cst_36 [1] : vector<256x64xf32> to vector<256xf32>
    %58 = vector.shape_cast %57 : vector<256xf32> to vector<256x1xf32>
    %59 = tpu.reciprocal %58 {approx = true} : vector<256x1xf32> -> vector<256x1xf32>
    %60 = vector.broadcast %59 : vector<256x1xf32> to vector<256x64xf32>
    %61 = arith.mulf %56, %60 : vector<256x64xf32>
    %62 = arith.truncf %61 : vector<256x64xf32> to vector<256x64xbf16>
    %cst_37 = arith.constant dense<0.000000e+00> : vector<256x8xf32>
    %63 = tpu.matmul %62, %50, %cst_37 {dimension_numbers = #tpu.dot_dimension_numbers<[1], [0], [0], [1], [0, 0, 1, 1], [], []>} : vector<256x64xbf16>, vector<64x8xbf16>, vector<256x8xf32> -> vector<256x8xf32>
    %64 = arith.truncf %63 : vector<256x8xf32> to vector<256x8xbf16>
    %c0_38 = arith.constant 0 : index
    %c16_39 = arith.constant 16 : index
    %65 = vector.load %arg17[%c0_38, %c16_39] : memref<256x32xbf16, #tpu.memory_space<vmem>>, vector<256x8xbf16>
    tpu.vector_store %arg17[%c0_38, %c16_39], %64 {strides = array<i32>} : memref<256x32xbf16, #tpu.memory_space<vmem>>, vector<256x8xbf16>,
    %c0_40 = arith.constant 0 : index
    %c24 = arith.constant 24 : index
    %66 = vector.load %arg16[%c0_40, %c24] : memref<256x32xbf16, #tpu.memory_space<vmem>>, vector<256x8xbf16>
    %c0_41 = arith.constant 0 : index
    %c24_42 = arith.constant 24 : index
    %67 = vector.load %arg15[%c0_41, %c24_42] : memref<64x64xbf16, #tpu.memory_space<vmem>>, vector<64x8xbf16>
    %c0_43 = arith.constant 0 : index
    %c56 = arith.constant 56 : index
    %68 = vector.load %arg15[%c0_43, %c56] : memref<64x64xbf16, #tpu.memory_space<vmem>>, vector<64x8xbf16>
    %cst_44 = arith.constant dense<0.000000e+00> : vector<256x64xf32>
    %69 = tpu.matmul %66, %67, %cst_44 {dimension_numbers = #tpu.dot_dimension_numbers<[1], [1], [0], [0], [0, 0, 1, 0], [], []>} : vector<256x8xbf16>, vector<64x8xbf16>, vector<256x64xf32> -> vector<256x64xf32>
    %cst_45 = arith.constant dense<0xFF800000> : vector<256xf32>
    %70 = vector.multi_reduction <maximumf>, %69, %cst_45 [1] : vector<256x64xf32> to vector<256xf32>
    %71 = vector.shape_cast %70 : vector<256xf32> to vector<256x1xf32>
    %72 = vector.broadcast %71 : vector<256x1xf32> to vector<256x64xf32>
    %73 = arith.subf %69, %72 : vector<256x64xf32>
    %74 = math.exp %73 : vector<256x64xf32>
    %cst_46 = arith.constant dense<0.000000e+00> : vector<256xf32>
    %75 = vector.multi_reduction <add>, %74, %cst_46 [1] : vector<256x64xf32> to vector<256xf32>
    %76 = vector.shape_cast %75 : vector<256xf32> to vector<256x1xf32>
    %77 = tpu.reciprocal %76 {approx = true} : vector<256x1xf32> -> vector<256x1xf32>
    %78 = vector.broadcast %77 : vector<256x1xf32> to vector<256x64xf32>
    %79 = arith.mulf %74, %78 : vector<256x64xf32>
    %80 = arith.truncf %79 : vector<256x64xf32> to vector<256x64xbf16>
    %cst_47 = arith.constant dense<0.000000e+00> : vector<256x8xf32>
    %81 = tpu.matmul %80, %68, %cst_47 {dimension_numbers = #tpu.dot_dimension_numbers<[1], [0], [0], [1], [0, 0, 1, 1], [], []>} : vector<256x64xbf16>, vector<64x8xbf16>, vector<256x8xf32> -> vector<256x8xf32>
    %82 = arith.truncf %81 : vector<256x8xf32> to vector<256x8xbf16>
    %c0_48 = arith.constant 0 : index
    %c24_49 = arith.constant 24 : index
    %83 = vector.load %arg17[%c0_48, %c24_49] : memref<256x32xbf16, #tpu.memory_space<vmem>>, vector<256x8xbf16>
    tpu.vector_store %arg17[%c0_48, %c24_49], %82 {strides = array<i32>} : memref<256x32xbf16, #tpu.memory_space<vmem>>, vector<256x8xbf16>,
    %c0_50 = arith.constant 0 : index
    %c0_51 = arith.constant 0 : index
    %84 = vector.load %arg17[%c0_50, %c0_51] : memref<256x32xbf16, #tpu.memory_space<vmem>>, vector<256x32xbf16>
    %c0_52 = arith.constant 0 : index
    %c0_53 = arith.constant 0 : index
    %85 = vector.load %arg12[%c0_52, %c0_53] : memref<32x32xbf16, #tpu.memory_space<vmem>>, vector<32x32xbf16>
    %cst_54 = arith.constant dense<0.000000e+00> : vector<256x32xf32>
    %86 = tpu.matmul %84, %85, %cst_54 {dimension_numbers = #tpu.dot_dimension_numbers<[1], [0], [0], [1], [0, 0, 1, 1], [], []>} : vector<256x32xbf16>, vector<32x32xbf16>, vector<256x32xf32> -> vector<256x32xf32>
    %c0_55 = arith.constant 0 : index
    %c0_56 = arith.constant 0 : index
    %87 = vector.load %arg13[%c0_55, %c0_56] : memref<1x32xf32, #tpu.memory_space<vmem>>, vector<1x32xf32>
    %88 = vector.broadcast %87 : vector<1x32xf32> to vector<256x32xf32>
    %89 = arith.addf %86, %88 : vector<256x32xf32>
    %c0_57 = arith.constant 0 : index
    %c0_58 = arith.constant 0 : index
    %c0_59 = arith.constant 0 : index
    %90 = vector.load %arg14[%c0_57, %c0_58, %c0_59] : memref<1x256x32xf32, #tpu.memory_space<vmem>>, vector<1x256x32xf32>
    %91 = vector.shape_cast %90 : vector<1x256x32xf32> to vector<256x32xf32>
    %92 = vector.shape_cast %89 : vector<256x32xf32> to vector<1x256x32xf32>
    tpu.vector_store %arg14[%c0_57, %c0_58, %c0_59], %92 {strides = array<i32>} : memref<1x256x32xf32, #tpu.memory_space<vmem>>, vector<1x256x32xf32>,
    return
  }
  func.func @transform_0(%arg0: i32, %arg1: i32) -> (i32, i32, i32) {
    %c0_i32 = arith.constant 0 : i32
    %c0_i32_0 = arith.constant 0 : i32
    return %arg0, %arg1, %c0_i32 : i32, i32, i32
  }
  func.func @transform_1(%arg0: i32, %arg1: i32) -> (i32, i32, i32) {
    %c0_i32 = arith.constant 0 : i32
    %c0_i32_0 = arith.constant 0 : i32
    %c0_i32_1 = arith.constant 0 : i32
    return %arg0, %c0_i32, %c0_i32_0 : i32, i32, i32
  }
  func.func @transform_2(%arg0: i32, %arg1: i32) -> (i32, i32) {
    %c0_i32 = arith.constant 0 : i32
    %c0_i32_0 = arith.constant 0 : i32
    %c0_i32_1 = arith.constant 0 : i32
    return %c0_i32, %c0_i32_0 : i32, i32
  }
  func.func @transform_3(%arg0: i32, %arg1: i32) -> (i32, i32) {
    %c0_i32 = arith.constant 0 : i32
    %c0_i32_0 = arith.constant 0 : i32
    %c0_i32_1 = arith.constant 0 : i32
    return %c0_i32, %c0_i32_0 : i32, i32
  }
  func.func @transform_4(%arg0: i32, %arg1: i32) -> (i32, i32) {
    %c0_i32 = arith.constant 0 : i32
    %c0_i32_0 = arith.constant 0 : i32
    %c0_i32_1 = arith.constant 0 : i32
    return %c0_i32, %c0_i32_0 : i32, i32
  }
  func.func @transform_5(%arg0: i32, %arg1: i32) -> (i32, i32) {
    %c0_i32 = arith.constant 0 : i32
    %c0_i32_0 = arith.constant 0 : i32
    %c0_i32_1 = arith.constant 0 : i32
    return %c0_i32, %c0_i32_0 : i32, i32
  }
  func.func @transform_6(%arg0: i32, %arg1: i32) -> (i32, i32) {
    %c0_i32 = arith.constant 0 : i32
    %c0_i32_0 = arith.constant 0 : i32
    %c0_i32_1 = arith.constant 0 : i32
    return %c0_i32, %c0_i32_0 : i32, i32
  }
  func.func @transform_7(%arg0: i32, %arg1: i32) -> (i32, i32) {
    %c0_i32 = arith.constant 0 : i32
    %c0_i32_0 = arith.constant 0 : i32
    %c0_i32_1 = arith.constant 0 : i32
    return %c0_i32, %c0_i32_0 : i32, i32
  }
  func.func @transform_8(%arg0: i32, %arg1: i32) -> (i32, i32) {
    %c0_i32 = arith.constant 0 : i32
    %c0_i32_0 = arith.constant 0 : i32
    %c0_i32_1 = arith.constant 0 : i32
    return %c0_i32, %c0_i32_0 : i32, i32
  }
  func.func @transform_9(%arg0: i32, %arg1: i32) -> (i32, i32) {
    %c0_i32 = arith.constant 0 : i32
    %c0_i32_0 = arith.constant 0 : i32
    %c0_i32_1 = arith.constant 0 : i32
    return %c0_i32, %c0_i32_0 : i32, i32
  }
  func.func @transform_10(%arg0: i32, %arg1: i32) -> (i32, i32) {
    %c0_i32 = arith.constant 0 : i32
    %c0_i32_0 = arith.constant 0 : i32
    %c0_i32_1 = arith.constant 0 : i32
    return %c0_i32, %c0_i32_0 : i32, i32
  }
  func.func @transform_11(%arg0: i32, %arg1: i32) -> (i32, i32) {
    %c0_i32 = arith.constant 0 : i32
    %c0_i32_0 = arith.constant 0 : i32
    %c0_i32_1 = arith.constant 0 : i32
    return %c0_i32, %c0_i32_0 : i32, i32
  }
  func.func @transform_12(%arg0: i32, %arg1: i32) -> (i32, i32, i32) {
    %c0_i32 = arith.constant 0 : i32
    %c0_i32_0 = arith.constant 0 : i32
    return %arg0, %arg1, %c0_i32 : i32, i32, i32
  }
}

</mosaic_0001>

<bundles_post_ra>
// kernel: tpu_custom_call.1
= control target key start
LH: loop header
LB: loop body
LE: loop exit
PB: predicated region body
PF: predicated region fallthrough
CT: control target
= control target key end

     0   :  { %s8780_s21 = smov 0   ;;  %s8782_s22 = smov 0   ;;  %s11528_s0 = inlined_call_operand.vmem [shape: bf16[2,256,32], index: 0, kind: input, shape index: {}]   ;;  %s11529_s1 = inlined_call_operand.vmem [shape: bf16[2,64,128], index: 1, kind: input, shape index: {}]   ;;  %s11530_s2 = inlined_call_operand.vmem [shape: bf16[128,32], index: 2, kind: input, shape index: {}]   ;;  %s11531_s3 = inlined_call_operand.vmem [shape: f32[1,32], index: 3, kind: input, shape index: {}]   ;;  %s11532_s4 = inlined_call_operand.vmem [shape: f32[1,32], index: 4, kind: input, shape index: {}]   ;;  %s11533_s5 = inlined_call_operand.vmem [shape: f32[1,32], index: 5, kind: input, shape index: {}]   ;;  %s11534_s6 = inlined_call_operand.vmem [shape: bf16[32,32], index: 6, kind: input, shape index: {}]   ;;  %s11535_s7 = inlined_call_operand.vmem [shape: f32[1,32], index: 7, kind: input, shape index: {}]   ;;  %s11536_s8 = inlined_call_operand.vmem [shape: bf16[32,64], index: 8, kind: input, shape index: {}]   ;;  %s11537_s9 = inlined_call_operand.vmem [shape: f32[1,64], index: 9, kind: input, shape index: {}]   ;;  %s11538_s10 = inlined_call_operand.vmem [shape: bf16[32,32], index: 10, kind: input, shape index: {}]   ;;  %s11539_s11 = inlined_call_operand.vmem [shape: f32[1,32], index: 11, kind: input, shape index: {}]   ;;  %s11540_s12 = inlined_call_operand.vmem [shape: f32[2,256,32], index: 12, kind: output, shape index: {}]  }
   0x1   :  { %s8784_s23 = smov 0  }
   0x2 LB: > { %s34_s24 = sadd.s32 1, %s8699_s22  ;;  %p6670_p0 = scmp.ge.s32.totalorder %s8703_s23, 1  ;;  %s8703_s23 = sphi %s8784_s23, %s22_s23   ;;  %s8699_s22 = sphi %s8782_s22, %s12066_s22   ;;  %s8695_s21 = sphi %s8780_s21, %s12065_s21  }
   0x3   : > { %p36_p1 = scmp.ge.s32.totalorder %s34_s24, 2  ;;  %p393_p2 = scmp.lt.s32.totalorder %s8703_s23, 3 }
   0x5   : > { %s12068_s24 = smov (%p36_p1, %s34_s24), 0  ;;  %p394_p3 = pnand %p6670_p0, %p393_p2 }
   0x7   : > { %397 = sbr.rel (%p394_p3) target bundleno = 2342 (0x926), region = 68 }
   0xc   : > { %v8022_v0 = vld [vmem:[%s11530_s2 + $0x38] sm:$0xff]   ;;  %p449_p4 = scmp.lt.s32.totalorder %s8695_s21, 1  ;;  %v8023_v1 = vld [vmem:[%s11530_s2 + $0x30] sm:$0xff]   ;;  %v8024_v2 = vld [vmem:[%s11530_s2 + $0x28] sm:$0xff]   ;;  %vm646_vm0 = vcmask 261120   ;;  %vm918_vm1 = vcmask 519168  }
   0xd   : > { %7532 = vmatprep.subr.bf16.mxu0 %v8022_v0  ;;  %v8025_v3 = vld [vmem:[%s11530_s2 + $0x20] sm:$0xff]   ;;  %v8026_v5 = vld [vmem:[%s11530_s2 + $0x18] sm:$0xff]   ;;  %v8027_v6 = vld [vmem:[%s11530_s2 + $0x10] sm:$0xff]   ;;  %s8705_s25 = smov 112   ;;  %vm1400_vm2 = vcmask 257024   ;;  %s8706_s26 = smov 120  }
   0xe   : > { %s12070_s21 = smov (!%p449_p4, %s8695_s21), 1  ;;  %7533 = vmatpush3.bf16.msra.mxu0 %v8022_v0  ;;  %v8028_v7 = vld [vmem:[%s11530_s2 + $0x8] sm:$0xff]   ;;  %v8029_v8 = vld [vmem:[%s11530_s2] sm:$0xff]   ;;  %s8707_s27 = smov 104   ;;  %vm1573_vm3 = vcmask 64512   ;;  %vm1795_vm4 = vcmask 523264  }
   0xf   : > { %7534 = vmatprep.subr.bf16.mxu0 %v8023_v1  ;;  %s7148_s13 = sshll.u32 %s12070_s21, 5  ;;  %s7147_s19 = sshll.u32 %s12070_s21, 7  ;;  %v6677_v12 = vld [vmem:[%s11531_s3] ss:$0 sm:$0xff]  ;;  %vm2513_vm5 = vcmask 60416   ;;  %vm3728_vm6 = vcmask 126016  }
  0x10   : > { %s462_s16 = scalar_lea.vmem %s11529_s1, %s7148_s13  ;;  %s8823_s28 = scalar_lea.vmem %s11528_s0, %s7147_s19  ;;  %vm4943_vm7 = vcmask 191616   ;;  %vm6158_vm8 = vcmask 257216  }
  0x11   : > { %v8030_v4 = vld [vmem:[%s462_s16] sm:$0xff]   ;;  %v8031_v9 = vld [vmem:[%s462_s16 + $0x8] sm:$0xff]   ;;  %v8032_v10 = vld [vmem:[%s462_s16 + $0x10] sm:$0xff]   ;;  %s8708_s29 = smov 96   ;;  %s8709_s30 = smov 80  }
  0x12   : > { %7535 = vmatpush3.bf16.msra.mxu0 %v8023_v1  ;;  %7548 = vmatprep.mubr.bf16.mxu0 %v8030_v4  ;;  %v8033_v11 = vld [vmem:[%s462_s16 + $0x18] sm:$0xff]   ;;  %s8710_s13 = smov 88   ;;  %s8711_s14 = smov 72  }
  0x13   : > { %7536 = vmatprep.subr.bf16.mxu0 %v8024_v2  ;;  %s8712_s15 = smov 8   ;;  %s8713_s17 = smov 16  }
  0x14   : > { %s8714_s20 = smov 24  }
  0x16   : > { %7537 = vmatpush3.bf16.msra.mxu0 %v8024_v2 }
  0x17   : > { %7538 = vmatprep.subr.bf16.mxu0 %v8025_v3 }
  0x1a   : > { %7539 = vmatpush3.bf16.msra.mxu0 %v8025_v3 }
  0x1b   : > { %7540 = vmatprep.subr.bf16.mxu0 %v8026_v5 }
  0x1e   : > { %7541 = vmatpush3.bf16.msra.mxu0 %v8026_v5 }
  0x1f   : > { %7542 = vmatprep.subr.bf16.mxu0 %v8027_v6 }
  0x22   : > { %7543 = vmatpush3.bf16.msra.mxu0 %v8027_v6 }
  0x23   : > { %7544 = vmatprep.subr.bf16.mxu0 %v8028_v7 }
  0x26   : > { %7545 = vmatpush3.bf16.msra.mxu0 %v8028_v7 }
  0x27   : > { %7546 = vmatprep.subr.bf16.mxu0 %v8029_v8 }
  0x2a   : > { %7547 = vmatpush3.bf16.msra.mxu0 %v8029_v8 }
  0x2d   : > { %7549 = vmatmul.mubr.bf16.vlgmr.msra.gmra.mxu0 %v8031_v9 }
  0x2e   : > { %7552 = vmatprep.mubr.bf16.mxu0 %v8032_v10 }
  0x35   : > { %7553 = vmatmul.mubr.bf16.gmra.mxu0 %v8033_v11 }
  0xed   : > { %v7550_v13 = vpop.f32.mrf.mxu0 }
  0xee   : > { %v624_v14 = vadd.f32 %v7550_v13, %v6677_v12  ;;  %v8034_v13 = vld [vmem:[%s11536_s8 + $0x8] sm:$0xff]  }
  0xef   : > { %v615_v15 = vpop.f32.mrf.mxu0  ;;  %7556 = vmatprep.subr.bf16.mxu1 %v8034_v13 }
  0xf0   : > { %v616_v16 = vadd.f32 %v6677_v12, %v615_v15  ;;  %v653_v17 = vsel %vm646_vm0, %v624_v14, 0.0  ;;  %7557 = vmatpush3.bf16.msra.mxu1 %v8034_v13  ;;  %v8894_v15 = vld [vmem:[%s11534_s6 + $0x8] sm:$0xff]  }
  0xf1   : > { %654 = vadd.xlane.f32.xlu1 %v653_v17  ;;  %v7551_v18 = vpop.f32.mrf.mxu0 }
  0xf2   : > { %v627_v19 = vadd.f32 %v7551_v18, %v6677_v12  ;;  %v647_v20 = vsel %vm646_vm0, %v616_v16, 0.0 }
  0xf3   : > { %v618_v21 = vpop.f32.mrf.mxu0  ;;  %648 = vadd.xlane.f32.xlu0 %v647_v20 }
  0xf4   : > { %v619_v22 = vadd.f32 %v6677_v12, %v618_v21  ;;  %v656_v23 = vsel %vm646_vm0, %v627_v19, 0.0 }
  0xf5   : > { %657 = vadd.xlane.f32.xlu1 %v656_v23  ;;  %v7554_v24 = vpop.f32.mrf.mxu0 }
  0xf6   : > { %v650_v25 = vsel %vm646_vm0, %v619_v22, 0.0  ;;  %v640_v27 = vadd.f32 %v7554_v24, %v6677_v12 }
  0xf7   : > { %v631_v26 = vpop.f32.mrf.mxu0  ;;  %651 = vadd.xlane.f32.xlu0 %v650_v25 }
  0xf8   : > { %v632_v28 = vadd.f32 %v6677_v12, %v631_v26  ;;  %v665_v34 = vsel %vm646_vm0, %v640_v27, 0.0 }
  0xf9   : > { %v7555_v29 = vpop.f32.mrf.mxu0 }
  0xfa   : > { %v659_v30 = vsel %vm646_vm0, %v632_v28, 0.0  ;;  %v643_v32 = vadd.f32 %v7555_v29, %v6677_v12 }
  0xfb   : > { %v634_v31 = vpop.f32.mrf.mxu0  ;;  %660 = vadd.xlane.f32.xlu0 %v659_v30 }
  0xfc   : > { %v635_v33 = vadd.f32 %v6677_v12, %v634_v31  ;;  %v668_v36 = vsel %vm646_vm0, %v643_v32, 0.0 }
  0xfe   : > { %v662_v35 = vsel %vm646_vm0, %v635_v33, 0.0 }
  0xff   : > { %663 = vadd.xlane.f32.xlu1 %v662_v35  ;;  %666 = vadd.xlane.f32.xlu0 %v665_v34 }
 0x103   : > { %669 = vadd.xlane.f32.xlu1 %v668_v36 }
 0x17a   : > { %v655_v37 = vpop.xlane.xlu1 %654 }
 0x17b   : > { %v674_v38 = vmul.f32 0.03125, %v655_v37 }
 0x17c   : > { %v649_v39 = vpop.xlane.xlu0 %648 }
 0x17d   : > { %v672_v40 = vmul.f32 0.03125, %v649_v39  ;;  %v8845_v42 = vsub.f32 %v624_v14, %v674_v38  ;;  %v8035_v14 = vld [vmem:[%s11536_s8] sm:$0xff]  }
 0x17e   : > { %v658_v41 = vpop.xlane.xlu1 %657  ;;  %7558 = vmatprep.subr.bf16.mxu1 %v8035_v14 }
 0x17f   : > { %v8847_v43 = vsub.f32 %v616_v16, %v672_v40  ;;  %v675_v44 = vmul.f32 0.03125, %v658_v41  ;;  %v690_v51 = vmul.f32 %v8845_v42, %v8845_v42  ;;  %7559 = vmatpush3.bf16.msra.mxu1 %v8035_v14 }
 0x180   : > { %v652_v45 = vpop.xlane.xlu0 %651  ;;  %7568 = vmatprep.subr.bf16.mxu1 %v8894_v15 }
 0x181   : > { %v673_v46 = vmul.f32 0.03125, %v652_v45  ;;  %v688_v47 = vmul.f32 %v8847_v43, %v8847_v43  ;;  %v8851_v48 = vsub.f32 %v627_v19, %v675_v44  ;;  %v702_v56 = vsel %vm646_vm0, %v690_v51, 0.0  ;;  %v6690_v44 = vld [vmem:[%s11532_s4] ss:$0 sm:$0xff] }
 0x182   : > { %v6691_v51 = vld [vmem:[%s11533_s5] ss:$0 sm:$0xff] }
 0x183   : > { %v8853_v49 = vsub.f32 %v619_v22, %v673_v46  ;;  %v696_v50 = vsel %vm646_vm0, %v688_v47, 0.0  ;;  %v691_v58 = vmul.f32 %v8851_v48, %v8851_v48 }
 0x184   : > { %697 = vadd.xlane.f32.xlu0 %v696_v50  ;;  %v661_v52 = vpop.xlane.xlu0 %660 }
 0x185   : > { %v676_v53 = vmul.f32 0.03125, %v661_v52  ;;  %v689_v54 = vmul.f32 %v8853_v49, %v8853_v49  ;;  %v705_v2 = vsel %vm646_vm0, %v691_v58, 0.0 }
 0x187   : > { %v8860_v55 = vsub.f32 %v632_v28, %v676_v53  ;;  %v699_v57 = vsel %vm646_vm0, %v689_v54, 0.0 }
 0x188   : > { %v664_v59 = vpop.xlane.xlu1 %663  ;;  %703 = vadd.xlane.f32.xlu0 %v702_v56  ;;  %700 = vadd.xlane.f32.xlu1 %v699_v57  ;;  %v667_v60 = vpop.xlane.xlu0 %666 }
 0x189   : > { %v677_v61 = vmul.f32 0.03125, %v664_v59  ;;  %v678_v62 = vmul.f32 0.03125, %v667_v60  ;;  %v692_v63 = vmul.f32 %v8860_v55, %v8860_v55 }
 0x18b   : > { %v8868_v0 = vsub.f32 %v635_v33, %v677_v61  ;;  %v8870_v1 = vsub.f32 %v640_v27, %v678_v62  ;;  %v708_v3 = vsel %vm646_vm0, %v692_v63, 0.0 }
 0x18c   : > { %v670_v4 = vpop.xlane.xlu1 %669  ;;  %706 = vadd.xlane.f32.xlu1 %v705_v2  ;;  %709 = vadd.xlane.f32.xlu0 %v708_v3 }
 0x18d   : > { %v679_v5 = vmul.f32 0.03125, %v670_v4  ;;  %v693_v6 = vmul.f32 %v8868_v0, %v8868_v0  ;;  %v694_v7 = vmul.f32 %v8870_v1, %v8870_v1 }
 0x18f   : > { %v8878_v8 = vsub.f32 %v643_v32, %v679_v5  ;;  %v711_v9 = vsel %vm646_vm0, %v693_v6, 0.0  ;;  %v714_v10 = vsel %vm646_vm0, %v694_v7, 0.0 }
 0x190   : > { %712 = vadd.xlane.f32.xlu1 %v711_v9  ;;  %715 = vadd.xlane.f32.xlu0 %v714_v10 }
 0x191   : > { %v695_v11 = vmul.f32 %v8878_v8, %v8878_v8 }
 0x193   : > { %v717_v12 = vsel %vm646_vm0, %v695_v11, 0.0 }
 0x194   : > { %718 = vadd.xlane.f32.xlu1 %v717_v12 }
 0x20d   : > { %v698_v16 = vpop.xlane.xlu0 %697 }
 0x20e   : > { %v720_v17 = vmul.f32 0.03125, %v698_v16  ;;  %v8038_v16 = vld [vmem:[%s8823_s28] sm:$0xff]  }
 0x210   : > { %v728_v18 = vadd.f32 1e-05, %v720_v17 }
 0x211   : > { %v701_v19 = vpop.xlane.xlu1 %700  ;;  %v704_v20 = vpop.xlane.xlu0 %703 }
 0x212   : > { %8152 = vrsqrt.f32 %v728_v18  ;;  %v721_v21 = vmul.f32 0.03125, %v701_v19  ;;  %v722_v22 = vmul.f32 0.03125, %v704_v20  ;;  %v8041_v18 = vld [vmem:[%s8823_s28 + $0x18] sm:$0xff]   ;;  %v8042_v19 = vld [vmem:[%s8823_s28 + $0x20] sm:$0xff]   ;;  %v8043_v20 = vld [vmem:[%s8823_s28 + $0x28] sm:$0xff]  }
 0x214   : > { %v729_v23 = vadd.f32 1e-05, %v721_v21  ;;  %v730_v24 = vadd.f32 1e-05, %v722_v22  ;;  %v8044_v21 = vld [vmem:[%s8823_s28 + $0x30] sm:$0xff]   ;;  %v8045_v22 = vld [vmem:[%s8823_s28 + $0x38] sm:$0xff]  }
 0x215   : > { %v707_v25 = vpop.xlane.xlu1 %706  ;;  %v710_v26 = vpop.xlane.xlu0 %709 }
 0x216   : > { %8154 = vrsqrt.f32 %v729_v23  ;;  %v723_v27 = vmul.f32 0.03125, %v707_v25  ;;  %v724_v28 = vmul.f32 0.03125, %v710_v26  ;;  %v8046_v23 = vld [vmem:[%s8823_s28 + $0x40] sm:$0xff]   ;;  %v8048_v25 = vld [vmem:[%s8823_s28 + $0x50] sm:$0xff]   ;;  %v8049_v26 = vld [vmem:[%s8823_s28 + $0x58] sm:$0xff]  }
 0x217   : > { %8156 = vrsqrt.f32 %v730_v24  ;;  %v8047_v24 = vld [vmem:[%s8823_s28 + $0x48] sm:$0xff]  }
 0x218   : > { %v731_v29 = vadd.f32 1e-05, %v723_v27  ;;  %v732_v30 = vadd.f32 1e-05, %v724_v28  ;;  %v8050_v27 = vld [vmem:[%s8823_s28 + $0x60] sm:$0xff]   ;;  %v8051_v28 = vld [vmem:[%s8823_s28 + $0x68] sm:$0xff]  }
 0x219   : > { %v713_v31 = vpop.xlane.xlu1 %712  ;;  %v716_v32 = vpop.xlane.xlu0 %715 }
 0x21a   : > { %8158 = vrsqrt.f32 %v731_v29  ;;  %v725_v33 = vmul.f32 0.03125, %v713_v31  ;;  %v726_v34 = vmul.f32 0.03125, %v716_v32  ;;  %v8052_v29 = vld [vmem:[%s8823_s28 + $0x70] sm:$0xff]   ;;  %v6692_v31 = vld [vmem:[%s11537_s9] ss:$0 sm:$0xff] }
 0x21b   : > { %8160 = vrsqrt.f32 %v732_v30  ;;  %v8053_v30 = vld [vmem:[%s8823_s28 + $0x78] sm:$0xff]  }
 0x21c   : > { %v733_v35 = vadd.f32 1e-05, %v725_v33  ;;  %v734_v36 = vadd.f32 1e-05, %v726_v34 }
 0x21d   : > { %v719_v37 = vpop.xlane.xlu1 %718 }
 0x21e   : > { %8162 = vrsqrt.f32 %v733_v35  ;;  %v727_v38 = vmul.f32 0.03125, %v719_v37 }
 0x21f   : > { %v8153_v39 = vpop.eup %8152  ;;  %8164 = vrsqrt.f32 %v734_v36 }
 0x220   : > { %v735_v40 = vadd.f32 1e-05, %v727_v38  ;;  %v744_v41 = vmul.f32 %v8153_v39, %v8847_v43 }
 0x222   : > { %8166 = vrsqrt.f32 %v735_v40  ;;  %v759_v50 = vmul.f32 %v6690_v44, %v744_v41 }
 0x223   : > { %v8155_v45 = vpop.eup %8154 }
 0x224   : > { %v8157_v46 = vpop.eup %8156  ;;  %v745_v47 = vmul.f32 %v8155_v45, %v8853_v49  ;;  %v774_v43 = vadd.f32 %v6691_v51, %v759_v50 }
 0x225   : > { %v746_v52 = vmul.f32 %v8157_v46, %v8845_v42 }
 0x226   : > { %v760_v53 = vmul.f32 %v6690_v44, %v745_v47 }
 0x227   : > { %v8159_v54 = vpop.eup %8158  ;;  %v761_v59 = vmul.f32 %v6690_v44, %v746_v52 }
 0x228   : > { %v8161_v56 = vpop.eup %8160  ;;  %v775_v57 = vadd.f32 %v6691_v51, %v760_v53  ;;  %v747_v58 = vmul.f32 %v8159_v54, %v8851_v48  ;;  %v8037_v48 = vld [vmem:[%s11534_s6] sm:$0xff]  }
 0x229   : > { %v748_v60 = vmul.f32 %v8161_v56, %v8860_v55  ;;  %v776_v2 = vadd.f32 %v6691_v51, %v761_v59 }
 0x22a   : > { %v782_v61 = vpack.c.bf16 %v775_v57, %v774_v43  ;;  %v762_v62 = vmul.f32 %v6690_v44, %v747_v58  ;;  %v8962_v43 = vld [vmem:[%s11535_s7] ss:$0 sm:$0xff] }
 0x22b   : > { %v8163_v49 = vpop.eup %8162  ;;  %v763_v4 = vmul.f32 %v6690_v44, %v748_v60 }
 0x22c   : > { %v8165_v63 = vpop.eup %8164  ;;  %7560 = vmatprep.mubr.msk.bf16.mxu1 %vm646_vm0, %v782_v61  ;;  %v777_v3 = vadd.f32 %v6691_v51, %v762_v62  ;;  %v749_v42 = vmul.f32 %v8163_v49, %v8868_v0 }
 0x22d   : > { %v750_v5 = vmul.f32 %v8165_v63, %v8870_v1  ;;  %v778_v9 = vadd.f32 %v6691_v51, %v763_v4 }
 0x22e   : > { %v783_v6 = vpack.c.bf16 %v777_v3, %v776_v2  ;;  %v764_v7 = vmul.f32 %v6690_v44, %v749_v42 }
 0x22f   : > { %v8167_v55 = vpop.eup %8166  ;;  %v765_v0 = vmul.f32 %v6690_v44, %v750_v5 }
 0x230   : > { %7561 = vmatmul.mubr.msk.bf16.vlgmr.msra.gmra.mxu1 %vm646_vm0, %v783_v6  ;;  %v779_v10 = vadd.f32 %v6691_v51, %v764_v7  ;;  %v751_v11 = vmul.f32 %v8167_v55, %v8878_v8  ;;  %v8039_v8 = vld [vmem:[%s8823_s28 + $0x8] sm:$0xff]  }
 0x231   : > { %7569 = vmatpush3.bf16.msra.mxu1 %v8894_v15  ;;  %v780_v13 = vadd.f32 %v6691_v51, %v765_v0  ;;  %v8040_v15 = vld [vmem:[%s8823_s28 + $0x10] sm:$0xff]  }
 0x232   : > { %v784_v1 = vpack.c.bf16 %v779_v10, %v778_v9  ;;  %v766_v12 = vmul.f32 %v6690_v44, %v751_v11  ;;  %7570 = vmatprep.subr.bf16.mxu1 %v8037_v48 }
 0x234   : > { %7564 = vmatprep.mubr.msk.bf16.mxu1 %vm646_vm0, %v784_v1  ;;  %v781_v14 = vadd.f32 %v6691_v51, %v766_v12 }
 0x235   : > { %7571 = vmatpush3.bf16.msra.mxu1 %v8037_v48 }
 0x236   : > { %v785_v17 = vpack.c.bf16 %v781_v14, %v780_v13 }
 0x238   : > { %7565 = vmatmul.mubr.msk.bf16.gmra.mxu1 %vm646_vm0, %v785_v17 }
 0x239   : > { %7572 = vmatprep.mubr.msk.bf16.mxu1 %vm646_vm0, %v8038_v16 }
 0x240   : > { %7573 = vmatmul.mubr.msk.bf16.vlgmr.msra.gmra.mxu1 %vm646_vm0, %v8039_v8 }
 0x241   : > { %7576 = vmatprep.mubr.msk.bf16.mxu1 %vm646_vm0, %v8040_v15 }
 0x248   : > { %7577 = vmatmul.mubr.msk.bf16.gmra.mxu1 %vm646_vm0, %v8041_v18 }
 0x249   : > { %7580 = vmatprep.mubr.msk.bf16.mxu1 %vm646_vm0, %v8042_v19 }
 0x250   : > { %7581 = vmatmul.mubr.msk.bf16.gmra.mxu1 %vm646_vm0, %v8043_v20 }
 0x251   : > { %7584 = vmatprep.mubr.msk.bf16.mxu1 %vm646_vm0, %v8044_v21 }
 0x258   : > { %7585 = vmatmul.mubr.msk.bf16.gmra.mxu1 %vm646_vm0, %v8045_v22 }
 0x259   : > { %7588 = vmatprep.mubr.msk.bf16.mxu1 %vm646_vm0, %v8046_v23 }
 0x260   : > { %7589 = vmatmul.mubr.msk.bf16.gmra.mxu1 %vm646_vm0, %v8047_v24 }
 0x261   : > { %7592 = vmatprep.mubr.msk.bf16.mxu1 %vm646_vm0, %v8048_v25 }
 0x268   : > { %7593 = vmatmul.mubr.msk.bf16.gmra.mxu1 %vm646_vm0, %v8049_v26 }
 0x269   : > { %7596 = vmatprep.mubr.msk.bf16.mxu1 %vm646_vm0, %v8050_v27 }
 0x270   : > { %7597 = vmatmul.mubr.msk.bf16.gmra.mxu1 %vm646_vm0, %v8051_v28 }
 0x271   : > { %7600 = vmatprep.mubr.msk.bf16.mxu1 %vm646_vm0, %v8052_v29 }
 0x278   : > { %7601 = vmatmul.mubr.msk.bf16.gmra.mxu1 %vm646_vm0, %v8053_v30 }
 0x2f0   : > { %v7562_v32 = vpop.f32.mrf.mxu1 }
 0x2f1   : > { %v864_v33 = vadd.f32 %v7562_v32, %v6692_v31 }
 0x2f2   : > { %v855_v34 = vpop.f32.mrf.mxu1 }
 0x2f3   : > { %v7152_v35 = vpack.c.bf16 %v864_v33, %v864_v33  ;;  %v856_v36 = vadd.f32 %v6692_v31, %v855_v34 }
 0x2f4   : > { %v7563_v37 = vpop.f32.mrf.mxu1 }
 0x2f5   : > { %921 = vst.msk [vmem:[#allocation2 + $0x8] sm:$0xf] %vm918_vm1, %v7152_v35  ;;  %v7150_v38 = vpack.c.bf16 %v856_v36, %v856_v36  ;;  %v867_v39 = vadd.f32 %v7563_v37, %v6692_v31 }
 0x2f6   : > { %v858_v40 = vpop.f32.mrf.mxu1 }
 0x2f7   : > { %919 = vst.msk [vmem:[#allocation2] sm:$0xf] %vm918_vm1, %v7150_v38  ;;  %v7153_v41 = vpack.c.bf16 %v867_v39, %v867_v39  ;;  %v859_v44 = vadd.f32 %v6692_v31, %v858_v40 }
 0x2f8   : > { %v7566_v45 = vpop.f32.mrf.mxu1 }
 0x2f9   : > { %922 = vst.msk [vmem:[#allocation2 + $0xc] sm:$0xf] %vm918_vm1, %v7153_v41  ;;  %v7151_v46 = vpack.c.bf16 %v859_v44, %v859_v44  ;;  %v880_v47 = vadd.f32 %v7566_v45, %v6692_v31 }
 0x2fa   : > { %v871_v50 = vpop.f32.mrf.mxu1 }
 0x2fb   : > { %920 = vst.msk [vmem:[#allocation2 + $0x4] sm:$0xf] %vm918_vm1, %v7151_v46  ;;  %v7156_v51 = vpack.c.bf16 %v880_v47, %v880_v47  ;;  %v872_v52 = vadd.f32 %v6692_v31, %v871_v50 }
 0x2fc   : > { %v7567_v53 = vpop.f32.mrf.mxu1 }
 0x2fd   : > { %925 = vst.msk [vmem:[#allocation2 + $0x18] sm:$0xf] %vm918_vm1, %v7156_v51  ;;  %v7154_v54 = vpack.c.bf16 %v872_v52, %v872_v52  ;;  %v883_v56 = vadd.f32 %v7567_v53, %v6692_v31 }
 0x2fe   : > { %v874_v57 = vpop.f32.mrf.mxu1 }
 0x2ff   : > { %923 = vst.msk [vmem:[#allocation2 + $0x10] sm:$0xf] %vm918_vm1, %v7154_v54  ;;  %v7157_v58 = vpack.c.bf16 %v883_v56, %v883_v56  ;;  %v875_v59 = vadd.f32 %v6692_v31, %v874_v57 }
 0x300   : > { %v8054_v60 = vld [vmem:[#allocation2 + $0x8] sm:$0xff]   ;;  %v7574_v61 = vpop.f32.mrf.mxu1 }
 0x301   : > { %926 = vst.msk [vmem:[#allocation2 + $0x1c] sm:$0xf] %vm918_vm1, %v7157_v58  ;;  %v7155_v62 = vpack.c.bf16 %v875_v59, %v875_v59  ;;  %v8055_v49 = vld [vmem:[#allocation2 + $0x8] sm:$0xff]   ;;  %v1154_v63 = vadd.f32 %v7574_v61, %v8962_v43  ;;  %3935 = vrot.lane.b32.xlu0 %v8054_v60, %s8705_s25 }
 0x302   : > { %v1145_v2 = vpop.f32.mrf.mxu1  ;;  %2720 = vrot.lane.b32.xlu1 %v8055_v49, %s8706_s26  ;;  %v8056_v4 = vld [vmem:[#allocation2 + $0x8] sm:$0xff]   ;;  %v8060_v18 = vld [vmem:[#allocation2] sm:$0xff]  }
 0x303   : > { %924 = vst.msk [vmem:[#allocation2 + $0x14] sm:$0xf] %vm918_vm1, %v7155_v62  ;;  %v7160_v3 = vpack.c.bf16 %v1154_v63, %v1154_v63  ;;  %v1146_v42 = vadd.f32 %v8962_v43, %v1145_v2  ;;  %v8972_v6 = vld [vmem:[#allocation2 + $0x8] sm:$0xff]   ;;  %v9006_v24 = vld [vmem:[#allocation2] sm:$0xff]  }
 0x304   : > { %v7575_v5 = vpop.f32.mrf.mxu1  ;;  %v8061_v26 = vld [vmem:[#allocation2] sm:$0xff]   ;;  %v1626_v50 = vsel %vm1573_vm3, %v8972_v6, 0 }
 0x305   : > { %1403 = vst.msk [vmem:[#allocation3 + $0x8] sm:$0xf] %vm1400_vm2, %v7160_v3  ;;  %v7158_v7 = vpack.c.bf16 %v1146_v42, %v1146_v42  ;;  %v1157_v48 = vadd.f32 %v7575_v5, %v8962_v43  ;;  %5150 = vrot.lane.b32.xlu0 %v8056_v4, %s8707_s27  ;;  %v8063_v35 = vld [vmem:[#allocation2] sm:$0xff]   ;;  %v1623_v42 = vsel %vm1573_vm3, %v9006_v24, 0 }
 0x306   : > { %v1148_v55 = vpop.f32.mrf.mxu1  ;;  %2166 = vrot.lane.b32.xlu1 %v8972_v6, %s8708_s29 }
 0x307   : > { %1401 = vst.msk [vmem:[#allocation3] sm:$0xf] %vm1400_vm2, %v7158_v7  ;;  %v7161_v9 = vpack.c.bf16 %v1157_v48, %v1157_v48  ;;  %v1149_v10 = vadd.f32 %v8962_v43, %v1148_v55 }
 0x308   : > { %v8980_v11 = vld [vmem:[#allocation2 + $0x18] sm:$0xff]   ;;  %v7578_v0 = vpop.f32.mrf.mxu1 }
 0x309   : > { %1404 = vst.msk [vmem:[#allocation3 + $0xc] sm:$0xf] %vm1400_vm2, %v7161_v9  ;;  %v7159_v1 = vpack.c.bf16 %v1149_v10, %v1149_v10  ;;  %v1170_v12 = vadd.f32 %v7578_v0, %v8962_v43  ;;  %4532 = vrot.lane.b32.xlu0 %v8054_v60, %s8709_s30  ;;  %7968 = vmatprep.subr.msk.bf16.mxu0 %vm1573_vm3, %v8980_v11  ;;  %v1632_v13 = vsel %vm1573_vm3, %v8980_v11, 0  ;;  %v8064_v41 = vld [vmem:[#allocation2 + $0x18] sm:$0xff]  }
 0x30a   : > { %v8989_v14 = vld [vmem:[#allocation2 + $0x10] sm:$0xff]   ;;  %v1161_v16 = vpop.f32.mrf.mxu1  ;;  %3317 = vrot.lane.b32.xlu1 %v8055_v49, %s8710_s13  ;;  %7969 = vmatprep.subr.msk.bf16.mxu1 %vm1573_vm3, %v8980_v11  ;;  %v8065_v53 = vld [vmem:[#allocation2 + $0x18] sm:$0xff]  }
 0x30b   : > { %1402 = vst.msk [vmem:[#allocation3 + $0x4] sm:$0xf] %vm1400_vm2, %v7159_v1  ;;  %v7164_v17 = vpack.c.bf16 %v1170_v12, %v1170_v12  ;;  %v1162_v8 = vadd.f32 %v8962_v43, %v1161_v16  ;;  %7605 = vmatpush3.bf16.xpose.msra.mxu0 %v1632_v13  ;;  %7964 = vmatpush3.bf16.xpose.msra.mxu1 %v1632_v13  ;;  %v1629_v31 = vsel %vm1573_vm3, %v8989_v14, 0  ;;  %v8066_v61 = vld [vmem:[#allocation2 + $0x18] sm:$0xff]   ;;  %v8067_v49 = vld [vmem:[#allocation2 + $0x10] sm:$0xff]  }
 0x30c   : > { %v7579_v15 = vpop.f32.mrf.mxu1  ;;  %7970 = vmatprep.subr.msk.bf16.mxu0 %vm1573_vm3, %v8989_v14  ;;  %7971 = vmatprep.subr.msk.bf16.mxu1 %vm1573_vm3, %v8989_v14  ;;  %v8070_v16 = vld [vmem:[#allocation2 + $0x10] sm:$0xff]  }
 0x30d   : > { %1407 = vst.msk [vmem:[#allocation3 + $0x18] sm:$0xf] %vm1400_vm2, %v7164_v17  ;;  %v7162_v19 = vpack.c.bf16 %v1162_v8, %v1162_v8  ;;  %v1173_v20 = vadd.f32 %v7579_v15, %v8962_v43  ;;  %5747 = vrot.lane.b32.xlu0 %v8056_v4, %s8711_s14 }
 0x30e   : > { %v1164_v21 = vpop.f32.mrf.mxu1  ;;  %2718 = vrot.lane.b32.xlu1 %v8060_v18, %s8706_s26 }
 0x30f   : > { %1405 = vst.msk [vmem:[#allocation3 + $0x10] sm:$0xf] %vm1400_vm2, %v7162_v19  ;;  %v7165_v22 = vpack.c.bf16 %v1173_v20, %v1173_v20  ;;  %v1165_v23 = vadd.f32 %v8962_v43, %v1164_v21 }
 0x310   : > { %v7582_v25 = vpop.f32.mrf.mxu1  ;;  %v8071_v9 = vld [vmem:[#allocation3 + $0x8] sm:$0xff]  }
 0x311   : > { %1408 = vst.msk [vmem:[#allocation3 + $0x1c] sm:$0xf] %vm1400_vm2, %v7165_v22  ;;  %v7163_v27 = vpack.c.bf16 %v1165_v23, %v1165_v23  ;;  %v1186_v28 = vadd.f32 %v7582_v25, %v8962_v43  ;;  %2164 = vrot.lane.b32.xlu0 %v9006_v24, %s8708_s29 }
 0x312   : > { %v1177_v29 = vpop.f32.mrf.mxu1  ;;  %v8069_v30 = vld [vmem:[#allocation3] sm:$0xff]   ;;  %3933 = vrot.lane.b32.xlu1 %v8061_v26, %s8705_s25 }
 0x313   : > { %1406 = vst.msk [vmem:[#allocation3 + $0x14] sm:$0xf] %vm1400_vm2, %v7163_v27  ;;  %v7168_v32 = vpack.c.bf16 %v1186_v28, %v1186_v28  ;;  %v1178_v33 = vadd.f32 %v8962_v43, %v1177_v29  ;;  %7607 = vmatpush3.bf16.xpose.msra.mxu0 %v1629_v31  ;;  %7965 = vmatpush3.bf16.xpose.msra.mxu1 %v1629_v31  ;;  %v8074_v31 = vld [vmem:[#allocation3] sm:$0xff]  }
 0x314   : > { %v7583_v34 = vpop.f32.mrf.mxu1  ;;  %7972 = vmatprep.subr.msk.bf16.mxu0 %vm1573_vm3, %v8972_v6  ;;  %7973 = vmatprep.subr.msk.bf16.mxu1 %vm1573_vm3, %v8972_v6  ;;  %v8068_v6 = vld [vmem:[#allocation2 + $0x10] sm:$0xff]  }
 0x315   : > { %1411 = vst.msk [vmem:[#allocation3 + $0x28] sm:$0xf] %vm1400_vm2, %v7168_v32  ;;  %v7166_v36 = vpack.c.bf16 %v1178_v33, %v1178_v33  ;;  %v1189_v37 = vadd.f32 %v7583_v34, %v8962_v43  ;;  %3315 = vrot.lane.b32.xlu0 %v8060_v18, %s8710_s13  ;;  %7612 = vmatprep.mubr.msk.bf16.mxu0 %vm1573_vm3, %v8069_v30 }
 0x316   : > { %v1180_v38 = vpop.f32.mrf.mxu1  ;;  %5148 = vrot.lane.b32.xlu1 %v8063_v35, %s8707_s27 }
 0x317   : > { %1409 = vst.msk [vmem:[#allocation3 + $0x20] sm:$0xf] %vm1400_vm2, %v7166_v36  ;;  %v7169_v39 = vpack.c.bf16 %v1189_v37, %v1189_v37  ;;  %v1181_v40 = vadd.f32 %v8962_v43, %v1180_v38  ;;  %v8077_v38 = vld [vmem:[#allocation3] sm:$0xff]  }
 0x318   : > { %v7586_v44 = vpop.f32.mrf.mxu1  ;;  %v8073_v22 = vld [vmem:[#allocation3 + $0x18] sm:$0xff]  }
 0x319   : > { %1412 = vst.msk [vmem:[#allocation3 + $0x2c] sm:$0xf] %vm1400_vm2, %v7169_v39  ;;  %v7167_v45 = vpack.c.bf16 %v1181_v40, %v1181_v40  ;;  %v1202_v46 = vadd.f32 %v7586_v44, %v8962_v43  ;;  %2724 = vrot.lane.b32.xlu0 %v8064_v41, %s8706_s26 }
 0x31a   : > { %v1193_v47 = vpop.f32.mrf.mxu1  ;;  %4530 = vrot.lane.b32.xlu1 %v8061_v26, %s8709_s30  ;;  %v8072_v13 = vld [vmem:[#allocation3 + $0x10] sm:$0xff]  }
 0x31b   : > { %1410 = vst.msk [vmem:[#allocation3 + $0x24] sm:$0xf] %vm1400_vm2, %v7167_v45  ;;  %v7172_v51 = vpack.c.bf16 %v1202_v46, %v1202_v46  ;;  %v1194_v52 = vadd.f32 %v8962_v43, %v1193_v47  ;;  %7609 = vmatpush3.bf16.xpose.msra.mxu0 %v1626_v50  ;;  %7966 = vmatpush3.bf16.xpose.msra.mxu1 %v1626_v50  ;;  %v8076_v45 = vld [vmem:[#allocation3 + $0x8] sm:$0xff]  }
 0x31c   : > { %v7587_v54 = vpop.f32.mrf.mxu1  ;;  %7974 = vmatprep.subr.msk.bf16.mxu0 %vm1573_vm3, %v9006_v24  ;;  %7975 = vmatprep.subr.msk.bf16.mxu1 %vm1573_vm3, %v9006_v24 }
 0x31d   : > { %1415 = vst.msk [vmem:[#allocation3 + $0x38] sm:$0xf] %vm1400_vm2, %v7172_v51  ;;  %v7170_v56 = vpack.c.bf16 %v1194_v52, %v1194_v52  ;;  %v1205_v57 = vadd.f32 %v7587_v54, %v8962_v43  ;;  %3939 = vrot.lane.b32.xlu0 %v8065_v53, %s8705_s25  ;;  %v8079_v51 = vld [vmem:[#allocation3 + $0x8] sm:$0xff]   ;;  %v8080_v52 = vld [vmem:[#allocation3] sm:$0xff]  }
 0x31e   : > { %v1196_v58 = vpop.f32.mrf.mxu1  ;;  %4536 = vrot.lane.b32.xlu1 %v8065_v53, %s8709_s30 }
 0x31f   : > { %1413 = vst.msk [vmem:[#allocation3 + $0x30] sm:$0xf] %vm1400_vm2, %v7170_v56  ;;  %v7173_v59 = vpack.c.bf16 %v1205_v57, %v1205_v57  ;;  %v1197_v60 = vadd.f32 %v8962_v43, %v1196_v58  ;;  %v8083_v56 = vld [vmem:[#allocation3 + $0x10] sm:$0xff]  }
 0x320   : > { %v7590_v62 = vpop.f32.mrf.mxu1  ;;  %v8078_v36 = vld [vmem:[#allocation3 + $0x28] sm:$0xff]  }
 0x321   : > { %1416 = vst.msk [vmem:[#allocation3 + $0x3c] sm:$0xf] %vm1400_vm2, %v7173_v59  ;;  %v7171_v63 = vpack.c.bf16 %v1197_v60, %v1197_v60  ;;  %v1218_v2 = vadd.f32 %v7590_v62, %v8962_v43  ;;  %5154 = vrot.lane.b32.xlu0 %v8066_v61, %s8707_s27 }
 0x322   : > { %v1209_v3 = vpop.f32.mrf.mxu1  ;;  %2722 = vrot.lane.b32.xlu1 %v8067_v49, %s8706_s26  ;;  %v8075_v27 = vld [vmem:[#allocation3 + $0x20] sm:$0xff]  }
 0x323   : > { %1414 = vst.msk [vmem:[#allocation3 + $0x34] sm:$0xf] %vm1400_vm2, %v7171_v63  ;;  %v7176_v4 = vpack.c.bf16 %v1218_v2, %v1218_v2  ;;  %v1210_v5 = vadd.f32 %v8962_v43, %v1209_v3  ;;  %7611 = vmatpush3.bf16.xpose.msra.mxu0 %v1623_v42  ;;  %7967 = vmatpush3.bf16.xpose.msra.mxu1 %v1623_v42  ;;  %v8082_v2 = vld [vmem:[#allocation3 + $0x8] sm:$0xff]  }
 0x324   : > { %v7591_v7 = vpop.f32.mrf.mxu1 }
 0x325   : > { %1419 = vst.msk [vmem:[#allocation3 + $0x48] sm:$0xf] %vm1400_vm2, %v7176_v4  ;;  %v7174_v48 = vpack.c.bf16 %v1210_v5, %v1210_v5  ;;  %v1221_v55 = vadd.f32 %v7591_v7, %v8962_v43  ;;  %2170 = vrot.lane.b32.xlu0 %v8980_v11, %s8708_s29  ;;  %v8085_v5 = vld [vmem:[#allocation3 + $0x18] sm:$0xff]   ;;  %v8090_v7 = vld [vmem:[#allocation3 + $0x10] sm:$0xff]  }
 0x326   : > { %v1212_v10 = vpop.f32.mrf.mxu1  ;;  %3937 = vrot.lane.b32.xlu1 %v8068_v6, %s8705_s25 }
 0x327   : > { %1417 = vst.msk [vmem:[#allocation3 + $0x40] sm:$0xf] %vm1400_vm2, %v7174_v48  ;;  %v7177_v0 = vpack.c.bf16 %v1221_v55, %v1221_v55  ;;  %v1213_v1 = vadd.f32 %v8962_v43, %v1212_v10  ;;  %v8088_v48 = vld [vmem:[#allocation3 + $0x18] sm:$0xff]  }
 0x328   : > { %v7594_v12 = vpop.f32.mrf.mxu1  ;;  %v8084_v58 = vld [vmem:[#allocation3 + $0x38] sm:$0xff]  }
 0x329   : > { %1420 = vst.msk [vmem:[#allocation3 + $0x4c] sm:$0xf] %vm1400_vm2, %v7177_v0  ;;  %v7175_v17 = vpack.c.bf16 %v1213_v1, %v1213_v1  ;;  %v1234_v8 = vadd.f32 %v7594_v12, %v8962_v43  ;;  %3321 = vrot.lane.b32.xlu0 %v8064_v41, %s8710_s13  ;;  %v8091_v1 = vld [vmem:[#allocation3 + $0x18] sm:$0xff]  }
 0x32a   : > { %v1225_v15 = vpop.f32.mrf.mxu1  ;;  %5152 = vrot.lane.b32.xlu1 %v8070_v16, %s8707_s27  ;;  %7613 = vmatmul.mubr.msk.bf16.vlgmr.msra.gmra.mxu0 %vm1573_vm3, %v8071_v9  ;;  %v8081_v41 = vld [vmem:[#allocation3 + $0x30] sm:$0xff]   ;;  %v8092_v9 = vld [vmem:[#allocation3 + $0x20] sm:$0xff]  }
 0x32b   : > { %1418 = vst.msk [vmem:[#allocation3 + $0x44] sm:$0xf] %vm1400_vm2, %v7175_v17  ;;  %v7180_v11 = vpack.c.bf16 %v1234_v8, %v1234_v8  ;;  %v1226_v18 = vadd.f32 %v8962_v43, %v1225_v15  ;;  %7616 = vmatprep.mubr.msk.bf16.mxu0 %vm1573_vm3, %v8072_v13  ;;  %v8095_v13 = vld [vmem:[#allocation3 + $0x20] sm:$0xff]   ;;  %v8097_v8 = vld [vmem:[#allocation3 + $0x28] sm:$0xff]   ;;  %v8102_v15 = vld [vmem:[#allocation3 + $0x30] sm:$0xff]  }
 0x32c   : > { %v7595_v19 = vpop.f32.mrf.mxu1  ;;  %v8098_v17 = vld [vmem:[#allocation3 + $0x20] sm:$0xff]  }
 0x32d   : > { %1423 = vst.msk [vmem:[#allocation3 + $0x58] sm:$0xf] %vm1400_vm2, %v7180_v11  ;;  %v7178_v20 = vpack.c.bf16 %v1226_v18, %v1226_v18  ;;  %v1237_v21 = vadd.f32 %v7595_v19, %v8962_v43  ;;  %5751 = vrot.lane.b32.xlu0 %v8066_v61, %s8711_s14  ;;  %v8100_v11 = vld [vmem:[#allocation3 + $0x28] sm:$0xff]   ;;  %v8104_v18 = vld [vmem:[#allocation3 + $0x30] sm:$0xff]   ;;  %v8103_v19 = vld [vmem:[#allocation3 + $0x38] sm:$0xff]  }
 0x32e   : > { %v1228_v23 = vpop.f32.mrf.mxu1  ;;  %2168 = vrot.lane.b32.xlu1 %v8989_v14, %s8708_s29 }
 0x32f   : > { %1421 = vst.msk [vmem:[#allocation3 + $0x50] sm:$0xf] %vm1400_vm2, %v7178_v20  ;;  %v7181_v24 = vpack.c.bf16 %v1237_v21, %v1237_v21  ;;  %v1229_v25 = vadd.f32 %v8962_v43, %v1228_v23  ;;  %v8107_v20 = vld [vmem:[#allocation3 + $0x30] sm:$0xff]   ;;  %v8106_v21 = vld [vmem:[#allocation3 + $0x38] sm:$0xff]  }
 0x330   : > { %v7598_v26 = vpop.f32.mrf.mxu1  ;;  %v8109_v23 = vld [vmem:[#allocation3 + $0x38] sm:$0xff]  }
 0x331   : > { %1424 = vst.msk [vmem:[#allocation3 + $0x5c] sm:$0xf] %vm1400_vm2, %v7181_v24  ;;  %v7179_v28 = vpack.c.bf16 %v1229_v25, %v1229_v25  ;;  %v1250_v29 = vadd.f32 %v7598_v26, %v8962_v43  ;;  %4534 = vrot.lane.b32.xlu0 %v8068_v6, %s8709_s30  ;;  %v8086_v6 = vld [vmem:[#allocation3 + $0x10] sm:$0xff]   ;;  %v8111_v25 = vld [vmem:[#allocation3 + $0x48] sm:$0xff]  }
 0x332   : > { %v1241_v30 = vpop.f32.mrf.mxu1  ;;  %3319 = vrot.lane.b32.xlu1 %v8067_v49, %s8710_s13  ;;  %7617 = vmatmul.mubr.msk.bf16.gmra.mxu0 %vm1573_vm3, %v8073_v22  ;;  %v8093_v63 = vld [vmem:[#allocation3 + $0x40] sm:$0xff]  }
 0x333   : > { %1422 = vst.msk [vmem:[#allocation3 + $0x54] sm:$0xf] %vm1400_vm2, %v7179_v28  ;;  %v7184_v14 = vpack.c.bf16 %v1250_v29, %v1250_v29  ;;  %v1242_v32 = vadd.f32 %v8962_v43, %v1241_v30  ;;  %7620 = vmatprep.mubr.msk.bf16.mxu0 %vm1573_vm3, %v8075_v27  ;;  %v8110_v22 = vld [vmem:[#allocation3 + $0x40] sm:$0xff]   ;;  %v8113_v27 = vld [vmem:[#allocation3 + $0x48] sm:$0xff]  }
 0x334   : > { %v7599_v33 = vpop.f32.mrf.mxu1  ;;  %v8112_v24 = vld [vmem:[#allocation3 + $0x40] sm:$0xff]   ;;  %v8115_v29 = vld [vmem:[#allocation3 + $0x48] sm:$0xff]  }
 0x335   : > { %1427 = vst.msk [vmem:[#allocation3 + $0x68] sm:$0xf] %vm1400_vm2, %v7184_v14  ;;  %v7182_v34 = vpack.c.bf16 %v1242_v32, %v1242_v32  ;;  %v1253_v35 = vadd.f32 %v7599_v33, %v8962_v43  ;;  %2666 = vrot.lane.b32.xlu0 %v8074_v31, %s8706_s26  ;;  %v8114_v26 = vld [vmem:[#allocation3 + $0x40] sm:$0xff]  }
 0x336   : > { %v1244_v37 = vpop.f32.mrf.mxu1  ;;  %5749 = vrot.lane.b32.xlu1 %v8070_v16, %s8711_s14  ;;  %v8094_v16 = vld [vmem:[#allocation3 + $0x28] sm:$0xff]  }
 0x337   : > { %1425 = vst.msk [vmem:[#allocation3 + $0x60] sm:$0xf] %vm1400_vm2, %v7182_v34  ;;  %v7185_v39 = vpack.c.bf16 %v1253_v35, %v1253_v35  ;;  %v1245_v40 = vadd.f32 %v8962_v43, %v1244_v37 }
 0x338   : > { %v7602_v44 = vpop.f32.mrf.mxu1  ;;  %v8108_v12 = vld [vmem:[#allocation3 + $0x58] sm:$0xff]  }
 0x339   : > { %1428 = vst.msk [vmem:[#allocation3 + $0x6c] sm:$0xf] %vm1400_vm2, %v7185_v39  ;;  %v7183_v46 = vpack.c.bf16 %v1245_v40, %v1245_v40  ;;  %v1266_v47 = vadd.f32 %v7602_v44, %v8962_v43  ;;  %3881 = vrot.lane.b32.xlu0 %v8077_v38, %s8705_s25  ;;  %v8116_v28 = vld [vmem:[#allocation3 + $0x58] sm:$0xff]  }
 0x33a   : > { %v1257_v50 = vpop.f32.mrf.mxu1  ;;  %2668 = vrot.lane.b32.xlu1 %v8076_v45, %s8706_s26  ;;  %7621 = vmatmul.mubr.msk.bf16.gmra.mxu0 %vm1573_vm3, %v8078_v36  ;;  %v8105_v55 = vld [vmem:[#allocation3 + $0x50] sm:$0xff]   ;;  %v8118_v31 = vld [vmem:[#allocation3 + $0x58] sm:$0xff]  }
 0x33b   : > { %1426 = vst.msk [vmem:[#allocation3 + $0x64] sm:$0xf] %vm1400_vm2, %v7183_v46  ;;  %v7188_v53 = vpack.c.bf16 %v1266_v47, %v1266_v47  ;;  %v1258_v54 = vadd.f32 %v8962_v43, %v1257_v50  ;;  %7624 = vmatprep.mubr.msk.bf16.mxu0 %vm1573_vm3, %v8081_v41  ;;  %v8117_v32 = vld [vmem:[#allocation3 + $0x58] sm:$0xff]   ;;  %v8120_v34 = vld [vmem:[#allocation3 + $0x50] sm:$0xff]  }
 0x33c   : > { %v7603_v57 = vpop.f32.mrf.mxu1  ;;  %v8119_v36 = vld [vmem:[#allocation3 + $0x50] sm:$0xff]  }
 0x33d   : > { %1431 = vst.msk [vmem:[#allocation3 + $0x78] sm:$0xf] %vm1400_vm2, %v7188_v53  ;;  %v7186_v59 = vpack.c.bf16 %v1258_v54, %v1258_v54  ;;  %v1269_v60 = vadd.f32 %v7603_v57, %v8962_v43  ;;  %5096 = vrot.lane.b32.xlu0 %v8080_v52, %s8707_s27  ;;  %v8121_v40 = vld [vmem:[#allocation3 + $0x50] sm:$0xff]  }
 0x33e   : > { %v1260_v61 = vpop.f32.mrf.mxu1  ;;  %3883 = vrot.lane.b32.xlu1 %v8079_v51, %s8705_s25 }
 0x33f   : > { %1429 = vst.msk [vmem:[#allocation3 + $0x70] sm:$0xf] %vm1400_vm2, %v7186_v59  ;;  %v7189_v62 = vpack.c.bf16 %v1269_v60, %v1269_v60  ;;  %v1261_v49 = vadd.f32 %v8962_v43, %v1260_v61  ;;  %v8096_v43 = vld [vmem:[#allocation3 + $0x48] sm:$0xff]  }
 0x340   : > { %v8089_v42 = vld [vmem:[#allocation3 + $0x68] sm:$0xff]  }
 0x341   : > { %1432 = vst.msk [vmem:[#allocation3 + $0x7c] sm:$0xf] %vm1400_vm2, %v7189_v62  ;;  %v7187_v3 = vpack.c.bf16 %v1261_v49, %v1261_v49  ;;  %2670 = vrot.lane.b32.xlu0 %v8083_v56, %s8706_s26  ;;  %v8122_v44 = vld [vmem:[#allocation3 + $0x68] sm:$0xff]  }
 0x342   : > { %v8087_v4 = vld [vmem:[#allocation3 + $0x60] sm:$0xff]   ;;  %5098 = vrot.lane.b32.xlu1 %v8082_v2, %s8707_s27  ;;  %7625 = vmatmul.mubr.msk.bf16.gmra.mxu0 %vm1573_vm3, %v8084_v58  ;;  %v8124_v50 = vld [vmem:[#allocation3 + $0x68] sm:$0xff]  }
 0x343   : > { %1430 = vst.msk [vmem:[#allocation3 + $0x74] sm:$0xf] %vm1400_vm2, %v7187_v3  ;;  %7636 = vmatprep.mubr.msk.bf16.mxu1 %vm1573_vm3, %v8087_v4  ;;  %7628 = vmatprep.mubr.msk.bf16.mxu0 %vm1573_vm3, %v8093_v63  ;;  %v8123_v37 = vld [vmem:[#allocation3 + $0x60] sm:$0xff]   ;;  %v8126_v54 = vld [vmem:[#allocation3 + $0x68] sm:$0xff]  }
 0x344   : > { %7637 = vmatmul.mubr.msk.bf16.vlgmr.msra.gmra.mxu1 %vm1573_vm3, %v8089_v42  ;;  %v8125_v41 = vld [vmem:[#allocation3 + $0x60] sm:$0xff]  }
 0x345   : > { %3885 = vrot.lane.b32.xlu0 %v8086_v6, %s8705_s25  ;;  %v8127_v47 = vld [vmem:[#allocation3 + $0x60] sm:$0xff]  }
 0x346   : > { %2672 = vrot.lane.b32.xlu1 %v8085_v5, %s8706_s26 }
 0x348   : > { %v8101_v10 = vld [vmem:[#allocation3 + $0x78] sm:$0xff]  }
 0x349   : > { %5100 = vrot.lane.b32.xlu0 %v8090_v7, %s8707_s27  ;;  %v8129_v53 = vld [vmem:[#allocation3 + $0x78] sm:$0xff]  }
 0x34a   : > { %v8099_v0 = vld [vmem:[#allocation3 + $0x70] sm:$0xff]   ;;  %3887 = vrot.lane.b32.xlu1 %v8088_v48, %s8705_s25  ;;  %7629 = vmatmul.mubr.msk.bf16.gmra.mxu0 %vm1573_vm3, %v8096_v43  ;;  %v8131_v58 = vld [vmem:[#allocation3 + $0x78] sm:$0xff]  }
 0x34b   : > { %7640 = vmatprep.mubr.msk.bf16.mxu1 %vm1573_vm3, %v8099_v0  ;;  %7632 = vmatprep.mubr.msk.bf16.mxu0 %vm1573_vm3, %v8105_v55  ;;  %v8128_v59 = vld [vmem:[#allocation3 + $0x78] sm:$0xff]   ;;  %v8133_v49 = vld [vmem:[#allocation3 + $0x70] sm:$0xff]  }
 0x34c   : > { %7641 = vmatmul.mubr.msk.bf16.gmra.mxu1 %vm1573_vm3, %v8101_v10  ;;  %v8130_v63 = vld [vmem:[#allocation3 + $0x70] sm:$0xff]  }
 0x34d   : > { %2674 = vrot.lane.b32.xlu0 %v8092_v9, %s8706_s26  ;;  %v8132_v42 = vld [vmem:[#allocation3 + $0x70] sm:$0xff]  }
 0x34e   : > { %5102 = vrot.lane.b32.xlu1 %v8091_v1, %s8707_s27 }
 0x351   : > { %3889 = vrot.lane.b32.xlu0 %v8095_v13, %s8705_s25 }
 0x352   : > { %2676 = vrot.lane.b32.xlu1 %v8094_v16, %s8706_s26  ;;  %7633 = vmatmul.mubr.msk.bf16.gmra.mxu0 %vm1573_vm3, %v8108_v12 }
 0x355   : > { %5104 = vrot.lane.b32.xlu0 %v8098_v17, %s8707_s27 }
 0x356   : > { %3891 = vrot.lane.b32.xlu1 %v8097_v8, %s8705_s25 }
 0x359   : > { %2678 = vrot.lane.b32.xlu0 %v8102_v15, %s8706_s26 }
 0x35a   : > { %5106 = vrot.lane.b32.xlu1 %v8100_v11, %s8707_s27 }
 0x35d   : > { %3893 = vrot.lane.b32.xlu0 %v8104_v18, %s8705_s25 }
 0x35e   : > { %2680 = vrot.lane.b32.xlu1 %v8103_v19, %s8706_s26 }
 0x361   : > { %5108 = vrot.lane.b32.xlu0 %v8107_v20, %s8707_s27 }
 0x362   : > { %3895 = vrot.lane.b32.xlu1 %v8106_v21, %s8705_s25 }
 0x365   : > { %2682 = vrot.lane.b32.xlu0 %v8110_v22, %s8706_s26 }
 0x366   : > { %5110 = vrot.lane.b32.xlu1 %v8109_v23, %s8707_s27 }
 0x369   : > { %3897 = vrot.lane.b32.xlu0 %v8112_v24, %s8705_s25 }
 0x36a   : > { %2684 = vrot.lane.b32.xlu1 %v8111_v25, %s8706_s26 }
 0x36d   : > { %5112 = vrot.lane.b32.xlu0 %v8114_v26, %s8707_s27 }
 0x36e   : > { %3899 = vrot.lane.b32.xlu1 %v8113_v27, %s8705_s25 }
 0x371   : > { %2688 = vrot.lane.b32.xlu0 %v8116_v28, %s8706_s26 }
 0x372   : > { %5114 = vrot.lane.b32.xlu1 %v8115_v29, %s8707_s27 }
 0x373   : > { %v9141_v30 = vpop.permute.xlu0 %3935 }
 0x374   : > { %v9143_v14 = vpop.permute.xlu1 %2720  ;;  %v3993_v27 = vsel %vm1573_vm3, %v9141_v30, 0 }
 0x375   : > { %3903 = vrot.lane.b32.xlu0 %v8118_v31, %s8705_s25  ;;  %v2778_v9 = vsel %vm1573_vm3, %v9143_v14, 0 }
 0x376   : > { %5118 = vrot.lane.b32.xlu1 %v8117_v32, %s8707_s27 }
 0x377   : > { %v9147_v33 = vpop.permute.xlu0 %5150 }
 0x378   : > { %v9149_v35 = vpop.permute.xlu1 %2166 }
 0x379   : > { %5116 = vrot.lane.b32.xlu0 %v8120_v34, %s8707_s27 }
 0x37a   : > { %2686 = vrot.lane.b32.xlu1 %v8119_v36, %s8706_s26 }
 0x37b   : > { %v9153_v38 = vpop.permute.xlu0 %4532 }
 0x37c   : > { %11709 = vst [vmem:[#allocation5_spill] sm:$0xff] %v9153_v38  ;;  %v9155_v39 = vpop.permute.xlu1 %3317 }
 0x37d   : > { %2690 = vrot.lane.b32.xlu0 %v8123_v37, %s8706_s26 }
 0x37e   : > { %3901 = vrot.lane.b32.xlu1 %v8121_v40, %s8705_s25 }
 0x37f   : > { %v9159_v45 = vpop.permute.xlu0 %5747 }
 0x380   : > { %11710 = vst [vmem:[#allocation6_spill] sm:$0xff] %v9159_v45  ;;  %v2719_v46 = vpop.permute.xlu1 %2718 }
 0x381   : > { %3905 = vrot.lane.b32.xlu0 %v8125_v41, %s8705_s25  ;;  %v2775_v13 = vsel %vm1573_vm3, %v2719_v46, 0 }
 0x382   : > { %2692 = vrot.lane.b32.xlu1 %v8122_v44, %s8706_s26 }
 0x383   : > { %v2165_v51 = vpop.permute.xlu0 %2164 }
 0x384   : > { %v9163_v52 = vpop.permute.xlu1 %3933 }
 0x385   : > { %5120 = vrot.lane.b32.xlu0 %v8127_v47, %s8707_s27  ;;  %v3990_v32 = vsel %vm1573_vm3, %v9163_v52, 0 }
 0x386   : > { %3907 = vrot.lane.b32.xlu1 %v8124_v50, %s8705_s25 }
 0x387   : > { %v9167_v56 = vpop.permute.xlu0 %3315 }
 0x388   : > { %v9169_v57 = vpop.permute.xlu1 %5148 }
 0x389   : > { %2696 = vrot.lane.b32.xlu0 %v8129_v53, %s8706_s26 }
 0x38a   : > { %5122 = vrot.lane.b32.xlu1 %v8126_v54, %s8707_s27 }
 0x38b   : > { %v2725_v60 = vpop.permute.xlu0 %2724 }
 0x38c   : > { %v9173_v61 = vpop.permute.xlu1 %4530  ;;  %7976 = vmatprep.subr.msk.bf16.mxu0 %vm1573_vm3, %v2725_v60  ;;  %v2784_v62 = vsel %vm1573_vm3, %v2725_v60, 0 }
 0x38d   : > { %11711 = vst [vmem:[#allocation7_spill] sm:$0xff] %v9173_v61  ;;  %7685 = vmatpush3.bf16.xpose.msra.mxu0 %v2784_v62  ;;  %3911 = vrot.lane.b32.xlu0 %v8131_v58, %s8705_s25 }
 0x38e   : > { %5126 = vrot.lane.b32.xlu1 %v8128_v59, %s8707_s27 }
 0x38f   : > { %v3940_v2 = vpop.permute.xlu0 %3939 }
 0x390   : > { %v9179_v3 = vpop.permute.xlu1 %4536  ;;  %v3999_v11 = vsel %vm1573_vm3, %v3940_v2, 0 }
 0x391   : > { %11712 = vst [vmem:[#allocation8_spill] sm:$0xff] %v9179_v3  ;;  %5124 = vrot.lane.b32.xlu0 %v8133_v49, %s8707_s27 }
 0x392   : > { %2694 = vrot.lane.b32.xlu1 %v8130_v63, %s8706_s26 }
 0x393   : > { %v9183_v4 = vpop.permute.xlu0 %5154 }
 0x394   : > { %v2723_v5 = vpop.permute.xlu1 %2722 }
 0x395   : > { %7977 = vmatprep.subr.msk.bf16.mxu0 %vm1573_vm3, %v2723_v5  ;;  %v2781_v6 = vsel %vm1573_vm3, %v2723_v5, 0 }
 0x396   : > { %3909 = vrot.lane.b32.xlu1 %v8132_v42, %s8705_s25  ;;  %7687 = vmatpush3.bf16.xpose.msra.mxu0 %v2781_v6  ;;  %s7149_s25 = sshll.u32 %s12070_s21, 8 }
 0x397   : > { %7978 = vmatprep.subr.msk.bf16.mxu0 %vm1573_vm3, %v9143_v14  ;;  %v2171_v43 = vpop.permute.xlu0 %2170  ;;  %s11421_s13 = scalar_lea.vmem %s11540_s12, %s7149_s25 }
 0x398   : > { %v3938_v7 = vpop.permute.xlu1 %3937  ;;  %7644 = vmatprep.subr.bf16.mxu1 %v2171_v43 }
 0x399   : > { %7645 = vmatpush3.bf16.msra.mxu1 %v2171_v43  ;;  %v3996_v22 = vsel %vm1573_vm3, %v3938_v7, 0 }
 0x39b   : > { %v9190_v48 = vpop.permute.xlu0 %3321 }
 0x39c   : > { %v9192_v55 = vpop.permute.xlu1 %5152 }
 0x39e   : > { %7689 = vmatpush3.bf16.xpose.msra.mxu0 %v2778_v9 }
 0x39f   : > { %7979 = vmatprep.subr.msk.bf16.mxu0 %vm1573_vm3, %v2719_v46  ;;  %v9197_v10 = vpop.permute.xlu0 %5751 }
 0x3a0   : > { %11713 = vst [vmem:[#allocation9_spill] sm:$0xff] %v9197_v10  ;;  %v2169_v0 = vpop.permute.xlu1 %2168 }
 0x3a1   : > { %7646 = vmatprep.subr.bf16.mxu1 %v2169_v0 }
 0x3a2   : > { %7647 = vmatpush3.bf16.msra.mxu1 %v2169_v0 }
 0x3a3   : > { %7648 = vmatprep.subr.bf16.mxu1 %v9149_v35  ;;  %v9200_v1 = vpop.permute.xlu0 %4534 }
 0x3a4   : > { %11714 = vst [vmem:[#allocation10_spill] sm:$0xff] %v9200_v1  ;;  %v9202_v12 = vpop.permute.xlu1 %3319 }
 0x3a6   : > { %7649 = vmatpush3.bf16.msra.mxu1 %v9149_v35  ;;  %7691 = vmatpush3.bf16.xpose.msra.mxu0 %v2775_v13 }
 0x3a7   : > { %7650 = vmatprep.subr.bf16.mxu1 %v2165_v51  ;;  %7980 = vmatprep.subr.msk.bf16.mxu0 %vm1573_vm3, %v3940_v2  ;;  %v2667_v16 = vpop.permute.xlu0 %2666 }
 0x3a8   : > { %v9207_v17 = vpop.permute.xlu1 %5749  ;;  %7692 = vmatprep.mubr.msk.bf16.mxu0 %vm1573_vm3, %v2667_v16 }
 0x3a9   : > { %11715 = vst [vmem:[#allocation11_spill] sm:$0xff] %v9207_v17 }
 0x3aa   : > { %7651 = vmatpush3.bf16.msra.mxu1 %v2165_v51 }
 0x3ab   : > { %7724 = vmatprep.subr.bf16.mxu1 %v9190_v48  ;;  %v9211_v8 = vpop.permute.xlu0 %3881 }
 0x3ac   : > { %v2669_v15 = vpop.permute.xlu1 %2668 }
 0x3ad   : > { %7693 = vmatmul.mubr.msk.bf16.vlgmr.msra.gmra.mxu0 %vm1573_vm3, %v2669_v15 }
 0x3ae   : > { %7765 = vmatpush3.bf16.xpose.msra.mxu0 %v3999_v11 }
 0x3af   : > { %7981 = vmatprep.subr.msk.bf16.mxu0 %vm1573_vm3, %v3938_v7  ;;  %v9216_v18 = vpop.permute.xlu0 %5096 }
 0x3b0   : > { %v9218_v19 = vpop.permute.xlu1 %3883 }
 0x3b3   : > { %v2671_v20 = vpop.permute.xlu0 %2670 }
 0x3b4   : > { %v9220_v21 = vpop.permute.xlu1 %5098  ;;  %7696 = vmatprep.mubr.msk.bf16.mxu0 %vm1573_vm3, %v2671_v20 }
 0x3b6   : > { %7767 = vmatpush3.bf16.xpose.msra.mxu0 %v3996_v22 }
 0x3b7   : > { %7982 = vmatprep.subr.msk.bf16.mxu0 %vm1573_vm3, %v9141_v30  ;;  %v9226_v23 = vpop.permute.xlu0 %3885 }
 0x3b8   : > { %v2673_v24 = vpop.permute.xlu1 %2672 }
 0x3b9   : > { %7697 = vmatmul.mubr.msk.bf16.gmra.mxu0 %vm1573_vm3, %v2673_v24 }
 0x3bb   : > { %v9229_v25 = vpop.permute.xlu0 %5100 }
 0x3bc   : > { %v9231_v26 = vpop.permute.xlu1 %3887 }
 0x3be   : > { %7769 = vmatpush3.bf16.xpose.msra.mxu0 %v3993_v27 }
 0x3bf   : > { %7983 = vmatprep.subr.msk.bf16.mxu0 %vm1573_vm3, %v9163_v52  ;;  %v2675_v28 = vpop.permute.xlu0 %2674 }
 0x3c0   : > { %v9237_v29 = vpop.permute.xlu1 %5102  ;;  %7700 = vmatprep.mubr.msk.bf16.mxu0 %vm1573_vm3, %v2675_v28 }
 0x3c3   : > { %v9240_v31 = vpop.permute.xlu0 %3889 }
 0x3c4   : > { %v2677_v14 = vpop.permute.xlu1 %2676 }
 0x3c5   : > { %7701 = vmatmul.mubr.msk.bf16.gmra.mxu0 %vm1573_vm3, %v2677_v14 }
 0x3c6   : > { %7771 = vmatpush3.bf16.xpose.msra.mxu0 %v3990_v32 }
 0x3c7   : > { %7984 = vmatprep.subr.msk.bf16.mxu0 %vm1573_vm3, %v9183_v4  ;;  %v9247_v30 = vpop.permute.xlu0 %5104 }
 0x3c8   : > { %v9249_v34 = vpop.permute.xlu1 %3891 }
 0x3cb   : > { %v2679_v35 = vpop.permute.xlu0 %2678 }
 0x3cc   : > { %v9251_v36 = vpop.permute.xlu1 %5106  ;;  %7704 = vmatprep.mubr.msk.bf16.mxu0 %vm1573_vm3, %v2679_v35 }
 0x3cf   : > { %v9254_v37 = vpop.permute.xlu0 %3893 }
 0x3d0   : > { %v2681_v40 = vpop.permute.xlu1 %2680 }
 0x3d1   : > { %7705 = vmatmul.mubr.msk.bf16.gmra.mxu0 %vm1573_vm3, %v2681_v40 }
 0x3d3   : > { %v9257_v41 = vpop.permute.xlu0 %5108 }
 0x3d4   : > { %v9259_v44 = vpop.permute.xlu1 %3895 }
 0x3d7   : > { %v2683_v46 = vpop.permute.xlu0 %2682 }
 0x3d8   : > { %v9261_v47 = vpop.permute.xlu1 %5110  ;;  %7708 = vmatprep.mubr.msk.bf16.mxu0 %vm1573_vm3, %v2683_v46 }
 0x3db   : > { %v9264_v50 = vpop.permute.xlu0 %3897 }
 0x3dc   : > { %v2685_v51 = vpop.permute.xlu1 %2684 }
 0x3dd   : > { %7709 = vmatmul.mubr.msk.bf16.gmra.mxu0 %vm1573_vm3, %v2685_v51 }
 0x3df   : > { %v9267_v52 = vpop.permute.xlu0 %5112 }
 0x3e0   : > { %v9269_v53 = vpop.permute.xlu1 %3899 }
 0x3e3   : > { %v2689_v54 = vpop.permute.xlu0 %2688 }
 0x3e4   : > { %v9271_v58 = vpop.permute.xlu1 %5114 }
 0x3e7   : > { %v9273_v59 = vpop.permute.xlu0 %3903 }
 0x3e8   : > { %v9275_v60 = vpop.permute.xlu1 %5118 }
 0x3ea   : > { %v9277_v62 = vpop.f32.mrf.mxu0 }
 0x3eb   : > { %v9279_v49 = vpop.permute.xlu0 %5116  ;;  %v1802_v63 = vsel %vm1795_vm4, %v9277_v62, -inf }
 0x3ec   : > { %v2687_v2 = vpop.permute.xlu1 %2686  ;;  %1803 = vmax.xlane.f32.xlu0 %v1802_v63  ;;  %v9283_v42 = vpop.f32.mrf.mxu0 }
 0x3ed   : > { %7712 = vmatprep.mubr.msk.bf16.mxu0 %vm1573_vm3, %v2687_v2  ;;  %v1796_v5 = vsel %vm1795_vm4, %v9283_v42, -inf }
 0x3ee   : > { %v9288_v6 = vpop.f32.mrf.mxu0  ;;  %7713 = vmatmul.mubr.msk.bf16.gmra.mxu0 %vm1573_vm3, %v2689_v54 }
 0x3ef   : > { %v2691_v43 = vpop.permute.xlu0 %2690  ;;  %v1805_v13 = vsel %vm1795_vm4, %v9288_v6, -inf }
 0x3f0   : > { %v9291_v7 = vpop.permute.xlu1 %3901  ;;  %1797 = vmax.xlane.f32.xlu0 %v1796_v5  ;;  %v9293_v9 = vpop.f32.mrf.mxu0  ;;  %7716 = vmatprep.mubr.msk.bf16.mxu0 %vm1573_vm3, %v2691_v43 }
 0x3f1   : > { %v1799_v0 = vsel %vm1795_vm4, %v9293_v9, -inf }
 0x3f2   : > { %1800 = vmax.xlane.f32.xlu1 %v1799_v0  ;;  %v9300_v16 = vpop.f32.mrf.mxu0 }
 0x3f3   : > { %v1814_v20 = vsel %vm1795_vm4, %v9300_v16, -inf  ;;  %v9315_v14 = vpop.permute.xlu0 %3905 }
 0x3f4   : > { %v2693_v15 = vpop.permute.xlu1 %2692  ;;  %1806 = vmax.xlane.f32.xlu0 %v1805_v13  ;;  %v9302_v11 = vpop.f32.mrf.mxu0 }
 0x3f5   : > { %v1808_v32 = vsel %vm1795_vm4, %v9302_v11, -inf }
 0x3f6   : > { %v9306_v22 = vpop.f32.mrf.mxu0  ;;  %7717 = vmatmul.mubr.msk.bf16.gmra.mxu0 %vm1573_vm3, %v2693_v15 }
 0x3f7   : > { %v1817_v24 = vsel %vm1795_vm4, %v9306_v22, -inf  ;;  %v9331_v2 = vpop.permute.xlu0 %5120 }
 0x3f8   : > { %v9311_v27 = vpop.permute.xlu1 %3907  ;;  %1815 = vmax.xlane.f32.xlu0 %v1814_v20  ;;  %1818 = vmax.xlane.f32.xlu1 %v1817_v24  ;;  %v9313_v28 = vpop.f32.mrf.mxu0 }
 0x3f9   : > { %v1811_v35 = vsel %vm1795_vm4, %v9313_v28, -inf }
 0x3fa   : > { %v9321_v40 = vpop.f32.mrf.mxu0 }
 0x3fb   : > { %v1826_v54 = vsel %vm1795_vm4, %v9321_v40, -inf }
 0x3fc   : > { %v9323_v46 = vpop.permute.xlu1 %5122  ;;  %1809 = vmax.xlane.f32.xlu0 %v1808_v32  ;;  %1812 = vmax.xlane.f32.xlu1 %v1811_v35  ;;  %v9325_v51 = vpop.f32.mrf.mxu0 }
 0x3fd   : > { %v1820_v13 = vsel %vm1795_vm4, %v9325_v51, -inf  ;;  %v2697_v35 = vpop.permute.xlu0 %2696 }
 0x3fe   : > { %v9329_v63 = vpop.f32.mrf.mxu0 }
 0x3ff   : > { %v1829_v5 = vsel %vm1795_vm4, %v9329_v63, -inf }
 0x400   : > { %v9335_v43 = vpop.permute.xlu1 %5126  ;;  %1827 = vmax.xlane.f32.xlu0 %v1826_v54  ;;  %1830 = vmax.xlane.f32.xlu1 %v1829_v5  ;;  %v9337_v0 = vpop.f32.mrf.mxu0 }
 0x401   : > { %v1823_v15 = vsel %vm1795_vm4, %v9337_v0, -inf }
 0x402   : > { %v9343_v20 = vpop.f32.mrf.mxu0 }
 0x403   : > { %v1838_v54 = vsel %vm1795_vm4, %v9343_v20, -inf }
 0x404   : > { %v2695_v24 = vpop.permute.xlu1 %2694  ;;  %1821 = vmax.xlane.f32.xlu0 %v1820_v13  ;;  %1824 = vmax.xlane.f32.xlu1 %v1823_v15  ;;  %v9345_v32 = vpop.f32.mrf.mxu0 }
 0x405   : > { %7720 = vmatprep.mubr.msk.bf16.mxu0 %vm1573_vm3, %v2695_v24  ;;  %v9350_v5 = vpop.f32.mrf.mxu1  ;;  %v1832_v17 = vsel %vm1795_vm4, %v9345_v32, -inf }
 0x406   : > { %v9352_v45 = vpop.f32.mrf.mxu0  ;;  %7721 = vmatmul.mubr.msk.bf16.gmra.mxu0 %vm1573_vm3, %v2697_v35 }
 0x407   : > { %7772 = vmatprep.mubr.msk.bf16.mxu0 %vm1573_vm3, %v9211_v8  ;;  %v1841_v13 = vsel %vm1795_vm4, %v9352_v45, -inf  ;;  %v9359_v15 = vpop.f32.mrf.mxu1  ;;  %v1874_v8 = vsel %vm1795_vm4, %v9350_v5, -inf }
 0x408   : > { %1839 = vmax.xlane.f32.xlu0 %v1838_v54  ;;  %1842 = vmax.xlane.f32.xlu1 %v1841_v13  ;;  %v9361_v24 = vpop.f32.mrf.mxu0  ;;  %v5214_v54 = vsel %vm1573_vm3, %v9183_v4, 0 }
 0x409   : > { %v1835_v10 = vsel %vm1795_vm4, %v9361_v24, -inf  ;;  %v9367_v61 = vpop.f32.mrf.mxu1 }
 0x40a   : > { %v9369_v35 = vpop.f32.mrf.mxu0  ;;  %v1877_v13 = vsel %vm1795_vm4, %v9367_v61, -inf }
 0x40b   : > { %v9381_v38 = vpop.f32.mrf.mxu1 }
 0x40c   : > { %1833 = vmax.xlane.f32.xlu0 %v1832_v17  ;;  %1836 = vmax.xlane.f32.xlu1 %v1835_v10  ;;  %v9383_v17 = vpop.f32.mrf.mxu0  ;;  %v1868_v10 = vsel %vm1795_vm4, %v9359_v15, -inf  ;;  %v1871_v4 = vsel %vm1795_vm4, %v9381_v38, -inf }
 0x40e   : > { %7773 = vmatmul.mubr.msk.bf16.vlgmr.msra.gmra.mxu0 %vm1573_vm3, %v9218_v19  ;;  %v9391_v19 = vpop.f32.mrf.mxu0 }
 0x40f   : > { %7845 = vmatpush3.bf16.xpose.msra.mxu0 %v5214_v54  ;;  %7776 = vmatprep.mubr.msk.bf16.mxu0 %vm1573_vm3, %v9226_v23  ;;  %v9393_v54 = vpop.f32.mrf.mxu1  ;;  %v1850_v23 = vsel %vm1795_vm4, %v9369_v35, -inf }
 0x410   : > { %7985 = vmatprep.subr.msk.bf16.mxu0 %vm1573_vm3, %v9192_v55  ;;  %1875 = vmax.xlane.f32.xlu0 %v1874_v8  ;;  %v5211_v8 = vsel %vm1573_vm3, %v9192_v55, 0  ;;  %v9405_v1 = vpop.f32.mrf.mxu0 }
 0x411   : > { %1878 = vmax.xlane.f32.xlu1 %v1877_v13  ;;  %v1853_v13 = vsel %vm1795_vm4, %v9391_v19, -inf  ;;  %v1847_v55 = vsel %vm1795_vm4, %v9405_v1, -inf }
 0x414   : > { %1869 = vmax.xlane.f32.xlu0 %v1868_v10  ;;  %v9407_v10 = vpop.f32.mrf.mxu1 }
 0x415   : > { %1872 = vmax.xlane.f32.xlu1 %v1871_v4 }
 0x416   : > { %7777 = vmatmul.mubr.msk.bf16.gmra.mxu0 %vm1573_vm3, %v9231_v26  ;;  %v1844_v26 = vsel %vm1795_vm4, %v9383_v17, -inf  ;;  %v9415_v4 = vpop.f32.mrf.mxu1 }
 0x417   : > { %7847 = vmatpush3.bf16.xpose.msra.mxu0 %v5211_v8  ;;  %7780 = vmatprep.mubr.msk.bf16.mxu0 %vm1573_vm3, %v9240_v31  ;;  %v9417_v8 = vpop.f32.mrf.mxu0  ;;  %v1886_v31 = vsel %vm1795_vm4, %v9393_v54, -inf }
 0x418   : > { %7986 = vmatprep.subr.msk.bf16.mxu0 %vm1573_vm3, %v9147_v33  ;;  %1851 = vmax.xlane.f32.xlu0 %v1850_v23  ;;  %v5208_v23 = vsel %vm1573_vm3, %v9147_v33, 0  ;;  %v9429_v3 = vpop.f32.mrf.mxu1 }
 0x419   : > { %1854 = vmax.xlane.f32.xlu1 %v1853_v13  ;;  %v1889_v13 = vsel %vm1795_vm4, %v9415_v4, -inf  ;;  %v1883_v33 = vsel %vm1795_vm4, %v9429_v3, -inf }
 0x41c   : > { %1845 = vmax.xlane.f32.xlu0 %v1844_v26  ;;  %v9431_v26 = vpop.f32.mrf.mxu0 }
 0x41d   : > { %1848 = vmax.xlane.f32.xlu1 %v1847_v55 }
 0x41e   : > { %7781 = vmatmul.mubr.msk.bf16.gmra.mxu0 %vm1573_vm3, %v9249_v34  ;;  %v1880_v34 = vsel %vm1795_vm4, %v9407_v10, -inf  ;;  %v9439_v55 = vpop.f32.mrf.mxu0 }
 0x41f   : > { %7849 = vmatpush3.bf16.xpose.msra.mxu0 %v5208_v23  ;;  %7784 = vmatprep.mubr.msk.bf16.mxu0 %vm1573_vm3, %v9254_v37  ;;  %v1862_v37 = vsel %vm1795_vm4, %v9417_v8, -inf  ;;  %v1865_v23 = vsel %vm1795_vm4, %v9439_v55, -inf }
 0x420   : > { %7987 = vmatprep.subr.msk.bf16.mxu0 %vm1573_vm3, %v9169_v57  ;;  %1887 = vmax.xlane.f32.xlu0 %v1886_v31  ;;  %v5205_v31 = vsel %vm1573_vm3, %v9169_v57, 0  ;;  %v3910_v57 = vpop.permute.xlu1 %3909 }
 0x421   : > { %1890 = vmax.xlane.f32.xlu1 %v1889_v13  ;;  %v9451_v13 = vpop.f32.mrf.mxu0 }
 0x424   : > { %1881 = vmax.xlane.f32.xlu0 %v1880_v34  ;;  %v1856_v34 = vsel %vm1795_vm4, %v9431_v26, -inf }
 0x425   : > { %1884 = vmax.xlane.f32.xlu1 %v1883_v33 }
 0x426   : > { %7785 = vmatmul.mubr.msk.bf16.gmra.mxu0 %vm1573_vm3, %v9259_v44  ;;  %v1859_v44 = vsel %vm1795_vm4, %v9451_v13, -inf }
 0x427   : > { %7851 = vmatpush3.bf16.xpose.msra.mxu0 %v5205_v31  ;;  %7788 = vmatprep.mubr.msk.bf16.mxu0 %vm1573_vm3, %v9264_v50  ;;  %v3912_v50 = vpop.permute.xlu0 %3911 }
 0x428   : > { %1863 = vmax.xlane.f32.xlu0 %v1862_v37 }
 0x429   : > { %1866 = vmax.xlane.f32.xlu1 %v1865_v23 }
 0x42c   : > { %1857 = vmax.xlane.f32.xlu0 %v1856_v34 }
 0x42d   : > { %1860 = vmax.xlane.f32.xlu1 %v1859_v44 }
 0x42e   : > { %7789 = vmatmul.mubr.msk.bf16.gmra.mxu0 %vm1573_vm3, %v9269_v53 }
 0x42f   : > { %7792 = vmatprep.mubr.msk.bf16.mxu0 %vm1573_vm3, %v9291_v7 }
 0x436   : > { %7793 = vmatmul.mubr.msk.bf16.gmra.mxu0 %vm1573_vm3, %v9273_v59 }
 0x437   : > { %7796 = vmatprep.mubr.msk.bf16.mxu0 %vm1573_vm3, %v9315_v14 }
 0x43e   : > { %7797 = vmatmul.mubr.msk.bf16.gmra.mxu0 %vm1573_vm3, %v9311_v27 }
 0x43f   : > { %7800 = vmatprep.mubr.msk.bf16.mxu0 %vm1573_vm3, %v3910_v57 }
 0x446   : > { %7801 = vmatmul.mubr.msk.bf16.gmra.mxu0 %vm1573_vm3, %v3912_v50 }
 0x447   : > { %7852 = vmatprep.mubr.msk.bf16.mxu0 %vm1573_vm3, %v9216_v18 }
 0x44e   : > { %7853 = vmatmul.mubr.msk.bf16.vlgmr.msra.gmra.mxu0 %vm1573_vm3, %v9220_v21 }
 0x44f   : > { %7856 = vmatprep.mubr.msk.bf16.mxu0 %vm1573_vm3, %v9229_v25 }
 0x456   : > { %7857 = vmatmul.mubr.msk.bf16.gmra.mxu0 %vm1573_vm3, %v9237_v29 }
 0x457   : > { %7860 = vmatprep.mubr.msk.bf16.mxu0 %vm1573_vm3, %v9247_v30 }
 0x45e   : > { %7861 = vmatmul.mubr.msk.bf16.gmra.mxu0 %vm1573_vm3, %v9251_v36 }
 0x45f   : > { %7864 = vmatprep.mubr.msk.bf16.mxu0 %vm1573_vm3, %v9257_v41 }
 0x466   : > { %7865 = vmatmul.mubr.msk.bf16.gmra.mxu0 %vm1573_vm3, %v9261_v47 }
 0x467   : > { %7868 = vmatprep.mubr.msk.bf16.mxu0 %vm1573_vm3, %v9267_v52 }
 0x46d   : > { %v9487_v18 = vpop.f32.mrf.mxu0 }
 0x46e   : > { %7869 = vmatmul.mubr.msk.bf16.gmra.mxu0 %vm1573_vm3, %v9271_v58  ;;  %v2953_v21 = vsel %vm1795_vm4, %v9487_v18, -inf }
 0x46f   : > { %7872 = vmatprep.mubr.msk.bf16.mxu0 %vm1573_vm3, %v9279_v49  ;;  %2954 = vmax.xlane.f32.xlu0 %v2953_v21  ;;  %v9495_v25 = vpop.f32.mrf.mxu0  ;;  %v5125_v49 = vpop.permute.xlu0 %5124 }
 0x470   : > { %v2947_v30 = vsel %vm1795_vm4, %v9495_v25, -inf }
 0x471   : > { %v9497_v29 = vpop.f32.mrf.mxu0 }
 0x472   : > { %v2956_v36 = vsel %vm1795_vm4, %v9497_v29, -inf }
 0x473   : > { %2948 = vmax.xlane.f32.xlu0 %v2947_v30  ;;  %v9503_v41 = vpop.f32.mrf.mxu0  ;;  %2957 = vmax.xlane.f32.xlu1 %v2956_v36 }
 0x474   : > { %11716 = vst [vmem:[#allocation12_spill] sm:$0xff] %v9503_v41  ;;  %v2950_v47 = vsel %vm1795_vm4, %v9503_v41, -inf }
 0x475   : > { %v1804_v33 = vpop.xlane.xlu0 %1803 }
 0x476   : > { %7873 = vmatmul.mubr.msk.bf16.gmra.mxu0 %vm1573_vm3, %v9275_v60 }
 0x477   : > { %7876 = vmatprep.mubr.msk.bf16.mxu0 %vm1573_vm3, %v9331_v2  ;;  %2951 = vmax.xlane.f32.xlu1 %v2950_v47 }
 0x479   : > { %v9511_v52 = vpop.f32.mrf.mxu0  ;;  %v1798_v57 = vpop.xlane.xlu0 %1797 }
 0x47a   : > { %v2965_v53 = vsel %vm1795_vm4, %v9511_v52, -inf  ;;  %v1892_v30 = vsub.f32 %v9283_v42, %v1798_v57 }
 0x47b   : > { %2966 = vmax.xlane.f32.xlu0 %v2965_v53  ;;  %v9515_v58 = vpop.f32.mrf.mxu0 }
 0x47c   : > { %v2959_v60 = vsel %vm1795_vm4, %v9515_v58, -inf }
 0x47d   : > { %v9517_v59 = vpop.f32.mrf.mxu0  ;;  %v1807_v53 = vpop.xlane.xlu0 %1806 }
 0x47e   : > { %11717 = vst [vmem:[#allocation13_spill] sm:$0xff] %v9517_v59  ;;  %7877 = vmatmul.mubr.msk.bf16.gmra.mxu0 %vm1573_vm3, %v9323_v46  ;;  %v2968_v7 = vsel %vm1795_vm4, %v9517_v59, -inf }
 0x47f   : > { %7880 = vmatprep.mubr.msk.bf16.mxu0 %vm1573_vm3, %v5125_v49  ;;  %2960 = vmax.xlane.f32.xlu0 %v2959_v60  ;;  %v9526_v27 = vpop.f32.mrf.mxu0  ;;  %v1924_v60 = vmul.f32 1.442695, %v1892_v30 }
 0x480   : > { %11718 = vst [vmem:[#allocation14_spill] sm:$0xff] %v9526_v27  ;;  %2969 = vmax.xlane.f32.xlu1 %v2968_v7  ;;  %v2962_v14 = vsel %vm1795_vm4, %v9526_v27, -inf }
 0x484   : > { %2963 = vmax.xlane.f32.xlu1 %v2962_v14 }
 0x485   : > { %v9530_v2 = vpop.f32.mrf.mxu0 }
 0x486   : > { %11719 = vst [vmem:[#allocation15_spill] sm:$0xff] %v9530_v2  ;;  %7881 = vmatmul.mubr.msk.bf16.gmra.mxu0 %vm1573_vm3, %v9335_v43  ;;  %v2977_v46 = vsel %vm1795_vm4, %v9530_v2, -inf  ;;  %v1894_v43 = vsub.f32 %v9277_v62, %v1804_v33 }
 0x487   : > { %2978 = vmax.xlane.f32.xlu0 %v2977_v46  ;;  %v9536_v37 = vpop.f32.mrf.mxu0  ;;  %v1816_v46 = vpop.xlane.xlu0 %1815 }
 0x488   : > { %11720 = vst [vmem:[#allocation16_spill] sm:$0xff] %v9536_v37  ;;  %v2971_v23 = vsel %vm1795_vm4, %v9536_v37, -inf  ;;  %v1928_v21 = vmul.f32 1.442695, %v1894_v43 }
 0x489   : > { %v9538_v31 = vpop.f32.mrf.mxu0 }
 0x48a   : > { %11721 = vst [vmem:[#allocation17_spill] sm:$0xff] %v9538_v31  ;;  %v2980_v34 = vsel %vm1795_vm4, %v9538_v31, -inf  ;;  %8168 = vpow2.f32 %v1928_v21  ;;  %v1895_v21 = vsub.f32 %v9288_v6, %v1807_v53 }
 0x48b   : > { %2972 = vmax.xlane.f32.xlu0 %v2971_v23  ;;  %v9544_v44 = vpop.f32.mrf.mxu0  ;;  %2981 = vmax.xlane.f32.xlu1 %v2980_v34  ;;  %8170 = vpow2.f32 %v1924_v60  ;;  %v1810_v57 = vpop.xlane.xlu0 %1809 }
 0x48c   : > { %11722 = vst [vmem:[#allocation18_spill] sm:$0xff] %v9544_v44  ;;  %v2974_v50 = vsel %vm1795_vm4, %v9544_v44, -inf  ;;  %v1896_v44 = vsub.f32 %v9302_v11, %v1810_v57 }
 0x48f   : > { %2975 = vmax.xlane.f32.xlu1 %v2974_v50 }
 0x491   : > { %v9550_v36 = vpop.f32.mrf.mxu0 }
 0x492   : > { %v2989_v47 = vsel %vm1795_vm4, %v9550_v36, -inf }
 0x493   : > { %2990 = vmax.xlane.f32.xlu0 %v2989_v47  ;;  %v9554_v49 = vpop.f32.mrf.mxu0 }
 0x494   : > { %v2983_v7 = vsel %vm1795_vm4, %v9554_v49, -inf }
 0x495   : > { %v9556_v62 = vpop.f32.mrf.mxu0 }
 0x496   : > { %v2992_v14 = vsel %vm1795_vm4, %v9556_v62, -inf }
 0x497   : > { %2984 = vmax.xlane.f32.xlu0 %v2983_v7  ;;  %v9562_v42 = vpop.f32.mrf.mxu0  ;;  %2993 = vmax.xlane.f32.xlu1 %v2992_v14  ;;  %v9579_v60 = vpop.eup %8168  ;;  %v1898_v7 = vsub.f32 %v9300_v16, %v1816_v46 }
 0x498   : > { %v2986_v33 = vsel %vm1795_vm4, %v9562_v42, -inf  ;;  %v9588_v53 = vpop.eup %8170 }
 0x499   : > { %v1988_v46 = vsel %vm1795_vm4, %v9588_v53, 0.0 }
 0x49b   : > { %2987 = vmax.xlane.f32.xlu1 %v2986_v33  ;;  %v1930_v33 = vmul.f32 1.442695, %v1895_v21 }
 0x49d   : > { %v9566_v23 = vpop.f32.mrf.mxu0  ;;  %8172 = vpow2.f32 %v1930_v33 }
 0x49e   : > { %11723 = vst [vmem:[#allocation19_spill] sm:$0xff] %v9566_v23  ;;  %v3001_v34 = vsel %vm1795_vm4, %v9566_v23, -inf  ;;  %v1994_v23 = vsel %vm1795_vm4, %v9579_v60, 0.0 }
 0x49f   : > { %3002 = vmax.xlane.f32.xlu0 %v3001_v34  ;;  %v9570_v43 = vpop.f32.mrf.mxu0  ;;  %v1828_v34 = vpop.xlane.xlu0 %1827 }
 0x4a0   : > { %11724 = vst [vmem:[#allocation20_spill] sm:$0xff] %v9570_v43  ;;  %v2995_v30 = vsel %vm1795_vm4, %v9570_v43, -inf  ;;  %v1801_v43 = vpop.xlane.xlu1 %1800 }
 0x4a1   : > { %v9572_v50 = vpop.f32.mrf.mxu0  ;;  %v1893_v16 = vsub.f32 %v9293_v9, %v1801_v43 }
 0x4a2   : > { %11725 = vst [vmem:[#allocation21_spill] sm:$0xff] %v9572_v50  ;;  %v3004_v47 = vsel %vm1795_vm4, %v9572_v50, -inf  ;;  %v1936_v50 = vmul.f32 1.442695, %v1898_v7 }
 0x4a3   : > { %2996 = vmax.xlane.f32.xlu0 %v2995_v30  ;;  %v9582_v14 = vpop.f32.mrf.mxu0  ;;  %3005 = vmax.xlane.f32.xlu1 %v3004_v47  ;;  %v1932_v30 = vmul.f32 1.442695, %v1896_v44  ;;  %v1822_v47 = vpop.xlane.xlu0 %1821  ;;  %v1902_v44 = vsub.f32 %v9321_v40, %v1828_v34 }
 0x4a4   : > { %11726 = vst [vmem:[#allocation22_spill] sm:$0xff] %v9582_v14  ;;  %v2998_v6 = vsel %vm1795_vm4, %v9582_v14, -inf  ;;  %8174 = vpow2.f32 %v1936_v50  ;;  %v1819_v21 = vpop.xlane.xlu1 %1818  ;;  %v1926_v14 = vmul.f32 1.442695, %v1893_v16 }
 0x4a5   : > { %8176 = vpow2.f32 %v1932_v30  ;;  %v1899_v43 = vsub.f32 %v9306_v22, %v1819_v21 }
 0x4a6   : > { %8178 = vpow2.f32 %v1926_v14  ;;  %v1944_v14 = vmul.f32 1.442695, %v1902_v44 }
 0x4a7   : > { %1995 = vadd.xlane.f32.xlu0 %v1994_v23  ;;  %2999 = vmax.xlane.f32.xlu1 %v2998_v6  ;;  %v1840_v57 = vpop.xlane.xlu0 %1839  ;;  %v1938_v6 = vmul.f32 1.442695, %v1899_v43 }
 0x4a8   : > { %v1813_v9 = vpop.xlane.xlu1 %1812 }
 0x4a9   : > { %v1897_v16 = vsub.f32 %v9313_v28, %v1813_v9  ;;  %8180 = vpow2.f32 %v1938_v6  ;;  %v1906_v28 = vsub.f32 %v9343_v20, %v1840_v57 }
 0x4aa   : > { %v9611_v30 = vpop.eup %8172  ;;  %8182 = vpow2.f32 %v1944_v14 }
 0x4ab   : > { %1989 = vadd.xlane.f32.xlu0 %v1988_v46  ;;  %v1934_v43 = vmul.f32 1.442695, %v1897_v16  ;;  %v1997_v44 = vsel %vm1795_vm4, %v9611_v30, 0.0  ;;  %v1952_v16 = vmul.f32 1.442695, %v1906_v28 }
 0x4ac   : > { %v1831_v22 = vpop.xlane.xlu1 %1830 }
 0x4ad   : > { %8184 = vpow2.f32 %v1934_v43 }
 0x4ae   : > { %v9594_v31 = vpop.f32.mrf.mxu0  ;;  %8186 = vpow2.f32 %v1952_v16 }
 0x4af   : > { %11727 = vst [vmem:[#allocation23_spill] sm:$0xff] %v9594_v31  ;;  %v3013_v11 = vsel %vm1795_vm4, %v9594_v31, -inf }
 0x4b0   : > { %v9598_v23 = vpop.f32.mrf.mxu0  ;;  %3014 = vmax.xlane.f32.xlu1 %v3013_v11  ;;  %v1834_v11 = vpop.xlane.xlu0 %1833 }
 0x4b1   : > { %11728 = vst [vmem:[#allocation24_spill] sm:$0xff] %v9598_v23  ;;  %v3007_v7 = vsel %vm1795_vm4, %v9598_v23, -inf  ;;  %v9617_v34 = vpop.eup %8174  ;;  %v1825_v23 = vpop.xlane.xlu1 %1824  ;;  %v1904_v20 = vsub.f32 %v9345_v32, %v1834_v11 }
 0x4b2   : > { %v9601_v50 = vpop.f32.mrf.mxu0  ;;  %v2006_v9 = vsel %vm1795_vm4, %v9617_v34, 0.0 }
 0x4b3   : > { %v3016_v40 = vsel %vm1795_vm4, %v9601_v50, -inf  ;;  %v1948_v28 = vmul.f32 1.442695, %v1904_v20 }
 0x4b4   : > { %v9606_v33 = vpop.f32.mrf.mxu0  ;;  %3008 = vmax.xlane.f32.xlu1 %v3007_v7  ;;  %v9624_v7 = vpop.eup %8176 }
 0x4b5   : > { %11729 = vst [vmem:[#allocation25_spill] sm:$0xff] %v9606_v33  ;;  %v9628_v6 = vpop.eup %8178  ;;  %v2000_v57 = vsel %vm1795_vm4, %v9624_v7, 0.0  ;;  %v3010_v14 = vsel %vm1795_vm4, %v9606_v33, -inf  ;;  %8188 = vpow2.f32 %v1948_v28 }
 0x4b6   : > { %v9609_v46 = vpop.f32.mrf.mxu0  ;;  %v1991_v43 = vsel %vm1795_vm4, %v9628_v6, 0.0  ;;  %v9649_v16 = vpop.eup %8180 }
 0x4b7   : > { %11730 = vst [vmem:[#allocation26_spill] sm:$0xff] %v9609_v46  ;;  %v3025_v21 = vsel %vm1795_vm4, %v9609_v46, -inf  ;;  %v9655_v33 = vpop.eup %8182 }
 0x4b8   : > { %3026 = vmax.xlane.f32.xlu0 %v3025_v21  ;;  %3017 = vmax.xlane.f32.xlu1 %v3016_v40  ;;  %v9626_v46 = vpop.f32.mrf.mxu0  ;;  %v1876_v21 = vpop.xlane.xlu0 %1875  ;;  %11735 = vst [vmem:[#allocation31_spill] sm:$0xff] %v9655_v33 }
 0x4b9   : > { %11731 = vst [vmem:[#allocation27_spill] sm:$0xff] %v9626_v46  ;;  %v1918_v32 = vsub.f32 %v9350_v5, %v1876_v21  ;;  %v3019_v21 = vsel %vm1795_vm4, %v9626_v46, -inf }
 0x4ba   : > { %v9635_v40 = vpop.f32.mrf.mxu0 }
 0x4bb   : > { %11732 = vst [vmem:[#allocation28_spill] sm:$0xff] %v9635_v40  ;;  %v3028_v11 = vsel %vm1795_vm4, %v9635_v40, -inf  ;;  %v1976_v20 = vmul.f32 1.442695, %v1918_v32 }
 0x4bc   : > { %2007 = vadd.xlane.f32.xlu0 %v2006_v9  ;;  %1998 = vadd.xlane.f32.xlu1 %v1997_v44  ;;  %v1900_v9 = vsub.f32 %v9325_v51, %v1822_v47  ;;  %v1843_v44 = vpop.xlane.xlu1 %1842  ;;  %v1870_v31 = vpop.xlane.xlu0 %1869 }
 0x4bd   : > { %v9643_v37 = vpop.f32.mrf.mxu0  ;;  %v1907_v51 = vsub.f32 %v9352_v45, %v1843_v44  ;;  %v9663_v44 = vpop.eup %8184  ;;  %v1916_v32 = vsub.f32 %v9359_v15, %v1870_v31 }
 0x4be   : > { %11733 = vst [vmem:[#allocation29_spill] sm:$0xff] %v9643_v37  ;;  %v3022_v5 = vsel %vm1795_vm4, %v9643_v37, -inf  ;;  %v2003_v31 = vsel %vm1795_vm4, %v9663_v44, 0.0  ;;  %v9680_v46 = vpop.eup %8186 }
 0x4bf   : > { %v1954_v45 = vmul.f32 1.442695, %v1907_v51  ;;  %11740 = vst [vmem:[#allocation36_spill] sm:$0xff] %v9680_v46 }
 0x4c0   : > { %2001 = vadd.xlane.f32.xlu0 %v2000_v57  ;;  %3011 = vmax.xlane.f32.xlu1 %v3010_v14  ;;  %v1903_v57 = vsub.f32 %v9329_v63, %v1831_v22  ;;  %v1940_v14 = vmul.f32 1.442695, %v1900_v9  ;;  %v9659_v22 = vpop.xlane.xlu0 %1851  ;;  %v1837_v28 = vpop.xlane.xlu1 %1836 }
 0x4c1   : > { %v1905_v51 = vsub.f32 %v9361_v24, %v1837_v28 }
 0x4c2   : > { %v1946_v63 = vmul.f32 1.442695, %v1903_v57  ;;  %8190 = vpow2.f32 %v1940_v14  ;;  %v1901_v14 = vsub.f32 %v9337_v0, %v1825_v23 }
 0x4c3   : > { %8192 = vpow2.f32 %v1976_v20  ;;  %v1972_v20 = vmul.f32 1.442695, %v1916_v32  ;;  %v1950_v23 = vmul.f32 1.442695, %v1905_v51  ;;  %v9692_v32 = vpop.eup %8188 }
 0x4c4   : > { %3029 = vmax.xlane.f32.xlu0 %v3028_v11  ;;  %1992 = vadd.xlane.f32.xlu1 %v1991_v43  ;;  %v2018_v11 = vsel %vm1795_vm4, %v9655_v33, 0.0  ;;  %8194 = vpow2.f32 %v1946_v63  ;;  %v1942_v0 = vmul.f32 1.442695, %v1901_v14  ;;  %11743 = vst [vmem:[#allocation39_spill] sm:$0xff] %v9692_v32  ;;  %v2024_v51 = vsel %vm1795_vm4, %v9692_v32, 0.0 }
 0x4c5   : > { %8196 = vpow2.f32 %v1954_v45  ;;  %v2030_v45 = vsel %vm1795_vm4, %v9680_v46, 0.0 }
 0x4c6   : > { %v9647_v47 = vpop.f32.mrf.mxu0  ;;  %8198 = vpow2.f32 %v1972_v20 }
 0x4c7   : > { %11734 = vst [vmem:[#allocation30_spill] sm:$0xff] %v9647_v47  ;;  %v3037_v28 = vsel %vm1795_vm4, %v9647_v47, -inf  ;;  %8200 = vpow2.f32 %v1942_v0 }
 0x4c8   : > { %3023 = vmax.xlane.f32.xlu0 %v3022_v5  ;;  %v9657_v43 = vpop.f32.mrf.mxu0  ;;  %3020 = vmax.xlane.f32.xlu1 %v3019_v21  ;;  %v2009_v5 = vsel %vm1795_vm4, %v9649_v16, 0.0  ;;  %8202 = vpow2.f32 %v1950_v23 }
 0x4c9   : > { %11736 = vst [vmem:[#allocation32_spill] sm:$0xff] %v9657_v43  ;;  %v3031_v20 = vsel %vm1795_vm4, %v9657_v43, -inf }
 0x4ca   : > { %v9661_v9 = vpop.f32.mrf.mxu0 }
 0x4cb   : > { %11737 = vst [vmem:[#allocation33_spill] sm:$0xff] %v9661_v9  ;;  %v3040_v15 = vsel %vm1795_vm4, %v9661_v9, -inf }
 0x4cc   : > { %2019 = vadd.xlane.f32.xlu0 %v2018_v11  ;;  %v9670_v57 = vpop.f32.mrf.mxu0  ;;  %2010 = vadd.xlane.f32.xlu1 %v2009_v5  ;;  %v9682_v11 = vpop.xlane.xlu0 %1845 }
 0x4cd   : > { %11738 = vst [vmem:[#allocation34_spill] sm:$0xff] %v9670_v57 }
 0x4ce   : > { %v9674_v21 = vpop.f32.mrf.mxu0 }
 0x4cf   : > { %11739 = vst [vmem:[#allocation35_spill] sm:$0xff] %v9674_v21  ;;  %v9698_v14 = vpop.eup %8190 }
 0x4d0   : > { %3041 = vmax.xlane.f32.xlu0 %v3040_v15  ;;  %v9684_v63 = vpop.f32.mrf.mxu0  ;;  %2004 = vadd.xlane.f32.xlu1 %v2003_v31  ;;  %v1888_v15 = vpop.xlane.xlu0 %1887  ;;  %11746 = vst [vmem:[#allocation42_spill] sm:$0xff] %v9698_v14  ;;  %v2012_v27 = vsel %vm1795_vm4, %v9698_v14, 0.0 }
 0x4d1   : > { %11741 = vst [vmem:[#allocation37_spill] sm:$0xff] %v9684_v63  ;;  %v9704_v47 = vpop.eup %8192  ;;  %v1922_v46 = vsub.f32 %v9393_v54, %v1888_v15 }
 0x4d2   : > { %v9686_v24 = vpop.f32.mrf.mxu0  ;;  %11747 = vst [vmem:[#allocation43_spill] sm:$0xff] %v9704_v47  ;;  %v9710_v2 = vpop.eup %8194  ;;  %v2066_v23 = vsel %vm1795_vm4, %v9704_v47, 0.0 }
 0x4d3   : > { %11742 = vst [vmem:[#allocation38_spill] sm:$0xff] %v9686_v24  ;;  %11750 = vst [vmem:[#allocation46_spill] sm:$0xff] %v9710_v2  ;;  %v9717_v43 = vpop.eup %8196  ;;  %v1984_v33 = vmul.f32 1.442695, %v1922_v46  ;;  %v2021_v15 = vsel %vm1795_vm4, %v9710_v2, 0.0 }
 0x4d4   : > { %2031 = vadd.xlane.f32.xlu0 %v2030_v45  ;;  %v9694_v5 = vpop.f32.mrf.mxu0  ;;  %3038 = vmax.xlane.f32.xlu1 %v3037_v28  ;;  %v1879_v28 = vpop.xlane.xlu1 %1878  ;;  %11751 = vst [vmem:[#allocation47_spill] sm:$0xff] %v9717_v43  ;;  %v2033_v54 = vsel %vm1795_vm4, %v9717_v43, 0.0 }
 0x4d5   : > { %11744 = vst [vmem:[#allocation40_spill] sm:$0xff] %v9694_v5  ;;  %v1882_v32 = vpop.xlane.xlu0 %1881  ;;  %v9728_v47 = vpop.eup %8198  ;;  %8204 = vpow2.f32 %v1984_v33 }
 0x4d6   : > { %v9696_v31 = vpop.f32.mrf.mxu0  ;;  %v1920_v9 = vsub.f32 %v9407_v10, %v1882_v32  ;;  %11754 = vst [vmem:[#allocation50_spill] sm:$0xff] %v9728_v47  ;;  %v9735_v37 = vpop.eup %8200  ;;  %v2060_v46 = vsel %vm1795_vm4, %v9728_v47, 0.0  ;;  %v3034_v32 = vsel %vm1795_vm4, %v9670_v57, -inf }
 0x4d7   : > { %11745 = vst [vmem:[#allocation41_spill] sm:$0xff] %v9696_v31  ;;  %11757 = vst [vmem:[#allocation53_spill] sm:$0xff] %v9735_v37  ;;  %v9741_v43 = vpop.eup %8202  ;;  %v2015_v57 = vsel %vm1795_vm4, %v9735_v37, 0.0 }
 0x4d8   : > { %2025 = vadd.xlane.f32.xlu0 %v2024_v51  ;;  %v9706_v45 = vpop.f32.mrf.mxu0  ;;  %3032 = vmax.xlane.f32.xlu1 %v3031_v20  ;;  %v1873_v59 = vpop.xlane.xlu1 %1872  ;;  %v1980_v10 = vmul.f32 1.442695, %v1920_v9  ;;  %11758 = vst [vmem:[#allocation54_spill] sm:$0xff] %v9741_v43  ;;  %v2027_v47 = vsel %vm1795_vm4, %v9741_v43, 0.0 }
 0x4d9   : > { %11748 = vst [vmem:[#allocation44_spill] sm:$0xff] %v9706_v45 }
 0x4da   : > { %v9708_v0 = vpop.f32.mrf.mxu0  ;;  %8206 = vpow2.f32 %v1980_v10  ;;  %v4168_v10 = vsel %vm1795_vm4, %v9674_v21, -inf }
 0x4db   : > { %11749 = vst [vmem:[#allocation45_spill] sm:$0xff] %v9708_v0 }
 0x4dc   : > { %2067 = vadd.xlane.f32.xlu0 %v2066_v23  ;;  %v9719_v51 = vpop.f32.mrf.mxu0  ;;  %2013 = vadd.xlane.f32.xlu1 %v2012_v27  ;;  %v1919_v27 = vsub.f32 %v9367_v61, %v1879_v28  ;;  %v1855_v61 = vpop.xlane.xlu1 %1854 }
 0x4dd   : > { %11752 = vst [vmem:[#allocation48_spill] sm:$0xff] %v9719_v51 }
 0x4de   : > { %v9721_v20 = vpop.f32.mrf.mxu0  ;;  %v1978_v28 = vmul.f32 1.442695, %v1919_v27  ;;  %v1917_v27 = vsub.f32 %v9381_v38, %v1873_v59  ;;  %v1908_v38 = vsub.f32 %v9383_v17, %v9682_v11  ;;  %v4174_v59 = vsel %vm1795_vm4, %v9706_v45, -inf }
 0x4df   : > { %11753 = vst [vmem:[#allocation49_spill] sm:$0xff] %v9721_v20  ;;  %v4171_v11 = vsel %vm1795_vm4, %v9686_v24, -inf }
 0x4e0   : > { %2034 = vadd.xlane.f32.xlu0 %v2033_v54  ;;  %v9730_v14 = vpop.f32.mrf.mxu0  ;;  %2022 = vadd.xlane.f32.xlu1 %v2021_v15  ;;  %v1864_v54 = vpop.xlane.xlu0 %1863  ;;  %v1910_v15 = vsub.f32 %v9369_v35, %v9659_v22  ;;  %8208 = vpow2.f32 %v1978_v28  ;;  %v4162_v28 = vsel %vm1795_vm4, %v9684_v63, -inf }
 0x4e1   : > { %11755 = vst [vmem:[#allocation51_spill] sm:$0xff] %v9730_v14  ;;  %v1914_v9 = vsub.f32 %v9417_v8, %v1864_v54  ;;  %v1849_v35 = vpop.xlane.xlu1 %1848  ;;  %v4180_v8 = vsel %vm1795_vm4, %v9696_v31, -inf }
 0x4e2   : > { %v9733_v23 = vpop.f32.mrf.mxu0  ;;  %v1909_v21 = vsub.f32 %v9405_v1, %v1849_v35  ;;  %v4186_v35 = vsel %vm1795_vm4, %v9730_v14, -inf }
 0x4e3   : > { %11756 = vst [vmem:[#allocation52_spill] sm:$0xff] %v9733_v23  ;;  %v1968_v22 = vmul.f32 1.442695, %v1914_v9 }
 0x4e4   : > { %2061 = vadd.xlane.f32.xlu0 %v2060_v46  ;;  %v9743_v2 = vpop.f32.mrf.mxu0  ;;  %3035 = vmax.xlane.f32.xlu1 %v3034_v32  ;;  %v1960_v32 = vmul.f32 1.442695, %v1910_v15  ;;  %v9773_v15 = vpop.eup %8204 }
 0x4e5   : > { %11764 = vst [vmem:[#allocation60_spill] sm:$0xff] %v9773_v15  ;;  %v2078_v17 = vsel %vm1795_vm4, %v9773_v15, 0.0 }
 0x4e6   : > { %v9747_v33 = vpop.f32.mrf.mxu0  ;;  %8210 = vpow2.f32 %v1960_v32 }
 0x4e7   : > { %11759 = vst [vmem:[#allocation55_spill] sm:$0xff] %v9747_v33  ;;  %8212 = vpow2.f32 %v1968_v22  ;;  %v9783_v22 = vpop.eup %8206  ;;  %v4204_v14 = vsel %vm1795_vm4, %v9747_v33, -inf }
 0x4e8   : > { %2028 = vadd.xlane.f32.xlu0 %v2027_v47  ;;  %v9754_v46 = vpop.f32.mrf.mxu0  ;;  %2016 = vadd.xlane.f32.xlu1 %v2015_v57  ;;  %v1974_v47 = vmul.f32 1.442695, %v1917_v27  ;;  %v1891_v27 = vpop.xlane.xlu1 %1890  ;;  %11767 = vst [vmem:[#allocation63_spill] sm:$0xff] %v9783_v22 }
 0x4e9   : > { %11760 = vst [vmem:[#allocation56_spill] sm:$0xff] %v9754_v46 }
 0x4ea   : > { %v9757_v40 = vpop.f32.mrf.mxu0  ;;  %8214 = vpow2.f32 %v1974_v47  ;;  %v2072_v47 = vsel %vm1795_vm4, %v9783_v22, 0.0 }
 0x4eb   : > { %11761 = vst [vmem:[#allocation57_spill] sm:$0xff] %v9757_v40 }
 0x4ec   : > { %4181 = vmax.xlane.f32.xlu0 %v4180_v8  ;;  %v9763_v54 = vpop.f32.mrf.mxu0  ;;  %4169 = vmax.xlane.f32.xlu1 %v4168_v10  ;;  %v1956_v8 = vmul.f32 1.442695, %v1908_v38  ;;  %v1885_v45 = vpop.xlane.xlu1 %1884  ;;  %v4165_v38 = vsel %vm1795_vm4, %v9694_v5, -inf }
 0x4ed   : > { %11762 = vst [vmem:[#allocation58_spill] sm:$0xff] %v9763_v54  ;;  %v9794_v15 = vpop.eup %8208 }
 0x4ee   : > { %v9765_v57 = vpop.f32.mrf.mxu0  ;;  %8216 = vpow2.f32 %v1956_v8  ;;  %11770 = vst [vmem:[#allocation66_spill] sm:$0xff] %v9794_v15 }
 0x4ef   : > { %11763 = vst [vmem:[#allocation59_spill] sm:$0xff] %v9765_v57 }
 0x4f0   : > { %4175 = vmax.xlane.f32.xlu0 %v4174_v59  ;;  %v9775_v9 = vpop.f32.mrf.mxu0  ;;  %4163 = vmax.xlane.f32.xlu1 %v4162_v28  ;;  %v1911_v28 = vsub.f32 %v9391_v19, %v1855_v61  ;;  %v4192_v19 = vsel %vm1795_vm4, %v9721_v20, -inf  ;;  %v2069_v61 = vsel %vm1795_vm4, %v9794_v15, 0.0 }
 0x4f1   : > { %11765 = vst [vmem:[#allocation61_spill] sm:$0xff] %v9775_v9 }
 0x4f2   : > { %v9777_v32 = vpop.f32.mrf.mxu0  ;;  %v1962_v63 = vmul.f32 1.442695, %v1911_v28  ;;  %v1858_v28 = vpop.xlane.xlu0 %1857 }
 0x4f3   : > { %11766 = vst [vmem:[#allocation62_spill] sm:$0xff] %v9777_v32 }
 0x4f4   : > { %2079 = vadd.xlane.f32.xlu0 %v2078_v17  ;;  %v9785_v10 = vpop.f32.mrf.mxu0  ;;  %4172 = vmax.xlane.f32.xlu1 %v4171_v11  ;;  %v9800_v11 = vpop.eup %8210  ;;  %8218 = vpow2.f32 %v1962_v63  ;;  %v1958_v63 = vmul.f32 1.442695, %v1909_v21  ;;  %v1921_v21 = vsub.f32 %v9429_v3, %v1885_v45  ;;  %v1912_v3 = vsub.f32 %v9431_v26, %v1858_v28 }
 0x4f5   : > { %11768 = vst [vmem:[#allocation64_spill] sm:$0xff] %v9785_v10  ;;  %11773 = vst [vmem:[#allocation69_spill] sm:$0xff] %v9800_v11  ;;  %v9806_v8 = vpop.eup %8212  ;;  %v2042_v15 = vsel %vm1795_vm4, %v9800_v11, 0.0  ;;  %v4198_v45 = vsel %vm1795_vm4, %v9754_v46, -inf  ;;  %v4216_v28 = vsel %vm1795_vm4, %v9765_v57, -inf  ;;  %v4177_v57 = vsel %vm1795_vm4, %v9719_v51, -inf }
 0x4f6   : > { %v9787_v59 = vpop.f32.mrf.mxu0  ;;  %11774 = vst [vmem:[#allocation70_spill] sm:$0xff] %v9806_v8  ;;  %v2054_v20 = vsel %vm1795_vm4, %v9806_v8, 0.0  ;;  %8220 = vpow2.f32 %v1958_v63  ;;  %v4183_v63 = vsel %vm1795_vm4, %v9708_v0, -inf  ;;  %v1964_v26 = vmul.f32 1.442695, %v1912_v3 }
 0x4f7   : > { %11769 = vst [vmem:[#allocation65_spill] sm:$0xff] %v9787_v59  ;;  %v9819_v5 = vpop.eup %8214  ;;  %v4210_v3 = vsel %vm1795_vm4, %v9775_v9, -inf }
 0x4f8   : > { %2073 = vadd.xlane.f32.xlu0 %v2072_v47  ;;  %v9796_v31 = vpop.f32.mrf.mxu0  ;;  %4166 = vmax.xlane.f32.xlu1 %v4165_v38  ;;  %v9810_v47 = vpop.xlane.xlu1 %1866  ;;  %11777 = vst [vmem:[#allocation73_spill] sm:$0xff] %v9819_v5  ;;  %v2063_v8 = vsel %vm1795_vm4, %v9819_v5, 0.0 }
 0x4f9   : > { %11771 = vst [vmem:[#allocation67_spill] sm:$0xff] %v9796_v31  ;;  %v9828_v1 = vpop.xlane.xlu0 %2954  ;;  %v1915_v0 = vsub.f32 %v9439_v55, %v9810_v47 }
 0x4fa   : > { %v9798_v17 = vpop.f32.mrf.mxu0 }
 0x4fb   : > { %11772 = vst [vmem:[#allocation68_spill] sm:$0xff] %v9798_v17  ;;  %v9834_v11 = vpop.eup %8216  ;;  %v1970_v55 = vmul.f32 1.442695, %v1915_v0  ;;  %v4231_v9 = vsel %vm1795_vm4, %v9798_v17, -inf }
 0x4fc   : > { %4193 = vmax.xlane.f32.xlu0 %v4192_v19  ;;  %v9808_v22 = vpop.f32.mrf.mxu0  ;;  %2070 = vadd.xlane.f32.xlu1 %v2069_v61  ;;  %v1923_v61 = vsub.f32 %v9415_v4, %v1891_v27  ;;  %v9826_v43 = vpop.xlane.xlu1 %1860  ;;  %11780 = vst [vmem:[#allocation76_spill] sm:$0xff] %v9834_v11  ;;  %v2036_v5 = vsel %vm1795_vm4, %v9834_v11, 0.0 }
 0x4fd   : > { %11775 = vst [vmem:[#allocation71_spill] sm:$0xff] %v9808_v22  ;;  %v1913_v0 = vsub.f32 %v9451_v13, %v9826_v43 }
 0x4fe   : > { %v9812_v38 = vpop.f32.mrf.mxu0  ;;  %v1986_v4 = vmul.f32 1.442695, %v1923_v61  ;;  %v1982_v61 = vmul.f32 1.442695, %v1921_v21 }
 0x4ff   : > { %11776 = vst [vmem:[#allocation72_spill] sm:$0xff] %v9812_v38 }
 0x500   : > { %2055 = vadd.xlane.f32.xlu0 %v2054_v20  ;;  %v9821_v19 = vpop.f32.mrf.mxu0  ;;  %2043 = vadd.xlane.f32.xlu1 %v2042_v15  ;;  %v9841_v27 = vpop.xlane.xlu1 %2957  ;;  %8222 = vpow2.f32 %v1986_v4 }
 0x501   : > { %11778 = vst [vmem:[#allocation74_spill] sm:$0xff] %v9821_v19  ;;  %v9858_v33 = vpop.eup %8218  ;;  %8224 = vpow2.f32 %v1982_v61 }
 0x502   : > { %v9824_v24 = vpop.f32.mrf.mxu0  ;;  %11785 = vst [vmem:[#allocation81_spill] sm:$0xff] %v9858_v33  ;;  %v2045_v21 = vsel %vm1795_vm4, %v9858_v33, 0.0  ;;  %8226 = vpow2.f32 %v1964_v26 }
 0x503   : > { %11779 = vst [vmem:[#allocation75_spill] sm:$0xff] %v9824_v24  ;;  %8228 = vpow2.f32 %v1970_v55  ;;  %v1966_v55 = vmul.f32 1.442695, %v1913_v0  ;;  %v4243_v13 = vsel %vm1795_vm4, %v9824_v24, -inf }
 0x504   : > { %4187 = vmax.xlane.f32.xlu0 %v4186_v35  ;;  %v9836_v20 = vpop.f32.mrf.mxu0  ;;  %2064 = vadd.xlane.f32.xlu1 %v2063_v8  ;;  %v9849_v35 = vpop.xlane.xlu0 %2948 }
 0x505   : > { %11781 = vst [vmem:[#allocation77_spill] sm:$0xff] %v9836_v20  ;;  %8230 = vpow2.f32 %v1966_v55  ;;  %v4195_v55 = vsel %vm1795_vm4, %v9733_v23, -inf }
 0x506   : > { %v9838_v15 = vpop.f32.mrf.mxu0 }
 0x507   : > { %11782 = vst [vmem:[#allocation78_spill] sm:$0xff] %v9838_v15 }
 0x508   : > { %4205 = vmax.xlane.f32.xlu0 %v4204_v14  ;;  %v9847_v37 = vpop.f32.mrf.mxu0  ;;  %2037 = vadd.xlane.f32.xlu1 %v2036_v5  ;;  %v9862_v5 = vpop.xlane.xlu1 %2951 }
 0x509   : > { %11783 = vst [vmem:[#allocation79_spill] sm:$0xff] %v9847_v37  ;;  %v9864_v4 = vpop.xlane.xlu0 %2966 }
 0x50a   : > { %v9851_v8 = vpop.f32.mrf.mxu0 }
 0x50b   : > { %11784 = vst [vmem:[#allocation80_spill] sm:$0xff] %v9851_v8 }
 0x50c   : > { %4199 = vmax.xlane.f32.xlu0 %v4198_v45  ;;  %v9860_v14 = vpop.f32.mrf.mxu0  ;;  %4184 = vmax.xlane.f32.xlu1 %v4183_v63  ;;  %v9874_v45 = vpop.xlane.xlu1 %2969 }
 0x50d   : > { %11786 = vst [vmem:[#allocation82_spill] sm:$0xff] %v9874_v45  ;;  %v9880_v61 = vpop.xlane.xlu0 %2960 }
 0x50e   : > { %v9866_v11 = vpop.f32.mrf.mxu0 }
 0x510   : > { %4217 = vmax.xlane.f32.xlu0 %v4216_v28  ;;  %v9872_v46 = vpop.f32.mrf.mxu0  ;;  %2046 = vadd.xlane.f32.xlu1 %v2045_v21  ;;  %v9886_v28 = vpop.eup %8220 }
 0x511   : > { %11788 = vst [vmem:[#allocation84_spill] sm:$0xff] %v9886_v28  ;;  %v9892_v45 = vpop.eup %8222  ;;  %v9894_v47 = vpop.xlane.xlu1 %2963  ;;  %v2039_v51 = vsel %vm1795_vm4, %v9886_v28, 0.0 }
 0x512   : > { %v9876_v63 = vpop.f32.mrf.mxu0  ;;  %11789 = vst [vmem:[#allocation85_spill] sm:$0xff] %v9892_v45  ;;  %11790 = vst [vmem:[#allocation86_spill] sm:$0xff] %v9894_v47  ;;  %v9896_v26 = vpop.xlane.xlu0 %2978  ;;  %v2081_v17 = vsel %vm1795_vm4, %v9892_v45, 0.0 }
 0x513   : > { %11787 = vst [vmem:[#allocation83_spill] sm:$0xff] %v9876_v63  ;;  %11791 = vst [vmem:[#allocation87_spill] sm:$0xff] %v9896_v26  ;;  %v4240_v26 = vsel %vm1795_vm4, %v9812_v38, -inf  ;;  %v9914_v47 = vpop.eup %8224 }
 0x514   : > { %4211 = vmax.xlane.f32.xlu0 %v4210_v3  ;;  %v9888_v21 = vpop.f32.mrf.mxu0  ;;  %4178 = vmax.xlane.f32.xlu1 %v4177_v57  ;;  %11794 = vst [vmem:[#allocation90_spill] sm:$0xff] %v9914_v47  ;;  %v2075_v43 = vsel %vm1795_vm4, %v9914_v47, 0.0  ;;  %v9924_v28 = vpop.eup %8226 }
 0x515   : > { %v9908_v41 = vpop.xlane.xlu1 %2981  ;;  %11797 = vst [vmem:[#allocation93_spill] sm:$0xff] %v9924_v28  ;;  %v2048_v0 = vsel %vm1795_vm4, %v9924_v28, 0.0 }
 0x516   : > { %v9890_v33 = vpop.f32.mrf.mxu0  ;;  %11793 = vst [vmem:[#allocation89_spill] sm:$0xff] %v9908_v41 }
 0x518   : > { %4232 = vmax.xlane.f32.xlu0 %v4231_v9  ;;  %v9902_v3 = vpop.f32.mrf.mxu0  ;;  %2040 = vadd.xlane.f32.xlu1 %v2039_v51  ;;  %v9918_v51 = vpop.xlane.xlu0 %2972 }
 0x519   : > { %11796 = vst [vmem:[#allocation92_spill] sm:$0xff] %v9918_v51  ;;  %v9928_v45 = vpop.xlane.xlu1 %2975 }
 0x51a   : > { %v9904_v57 = vpop.f32.mrf.mxu0  ;;  %11799 = vst [vmem:[#allocation95_spill] sm:$0xff] %v9928_v45  ;;  %v5386_v45 = vsel %vm1795_vm4, %v9876_v63, -inf }
 0x51b   : > { %11792 = vst [vmem:[#allocation88_spill] sm:$0xff] %v9904_v57 }
 0x51c   : > { %4241 = vmax.xlane.f32.xlu0 %v4240_v26  ;;  %v9916_v9 = vpop.f32.mrf.mxu0  ;;  %2082 = vadd.xlane.f32.xlu1 %v2081_v17  ;;  %v9930_v26 = vpop.xlane.xlu0 %2990  ;;  %v4237_v17 = vsel %vm1795_vm4, %v9836_v20, -inf }
 0x51d   : > { %11795 = vst [vmem:[#allocation91_spill] sm:$0xff] %v9916_v9 }
 0x51e   : > { %v9926_v38 = vpop.f32.mrf.mxu0 }
 0x51f   : > { %11798 = vst [vmem:[#allocation94_spill] sm:$0xff] %v9926_v38 }
 0x520   : > { %4244 = vmax.xlane.f32.xlu0 %v4243_v13  ;;  %2076 = vadd.xlane.f32.xlu1 %v2075_v43  ;;  %v9936_v24 = vpop.f32.mrf.mxu0  ;;  %v9938_v47 = vpop.xlane.xlu1 %2993  ;;  %v4252_v13 = vsel %vm1795_vm4, %v9838_v15, -inf }
 0x521   : > { %11800 = vst [vmem:[#allocation96_spill] sm:$0xff] %v9936_v24  ;;  %v9940_v41 = vpop.xlane.xlu0 %2984  ;;  %v9946_v43 = vpop.eup %8228 }
 0x522   : > { %11801 = vst [vmem:[#allocation97_spill] sm:$0xff] %v9946_v43  ;;  %v9948_v20 = vpop.f32.mrf.mxu0  ;;  %v2057_v15 = vsel %vm1795_vm4, %v9946_v43, 0.0 }
 0x523   : > { %11802 = vst [vmem:[#allocation98_spill] sm:$0xff] %v9948_v20 }
 0x524   : > { %4238 = vmax.xlane.f32.xlu0 %v4237_v17  ;;  %2049 = vadd.xlane.f32.xlu1 %v2048_v0  ;;  %v3045_v17 = vsub.f32 %v9487_v18, %v9828_v1  ;;  %v9952_v0 = vpop.xlane.xlu1 %2987  ;;  %v9960_v23 = vpop.f32.mrf.mxu0  ;;  %v5398_v18 = vsel %vm1795_vm4, %v9904_v57, -inf  ;;  %v4189_v1 = vsel %vm1795_vm4, %v9743_v2, -inf }
 0x525   : > { %11804 = vst [vmem:[#allocation100_spill] sm:$0xff] %v9960_v23 }
 0x526   : > { %v3079_v51 = vmul.f32 1.442695, %v3045_v17 }
 0x528   : > { %4253 = vmax.xlane.f32.xlu0 %v4252_v13  ;;  %4196 = vmax.xlane.f32.xlu1 %v4195_v55  ;;  %v9954_v28 = vpop.xlane.xlu0 %3002  ;;  %v9968_v55 = vpop.eup %8230  ;;  %8232 = vpow2.f32 %v3079_v51  ;;  %v5410_v51 = vsel %vm1795_vm4, %v9948_v20, -inf }
 0x529   : > { %11803 = vst [vmem:[#allocation99_spill] sm:$0xff] %v9954_v28  ;;  %11805 = vst [vmem:[#allocation101_spill] sm:$0xff] %v9968_v55  ;;  %v9970_v28 = vpop.f32.mrf.mxu0  ;;  %v2051_v17 = vsel %vm1795_vm4, %v9968_v55, 0.0 }
 0x52b   : > { %v9980_v57 = vpop.f32.mrf.mxu0 }
 0x52c   : > { %5387 = vmax.xlane.f32.xlu0 %v5386_v45  ;;  %2058 = vadd.xlane.f32.xlu1 %v2057_v15  ;;  %v9962_v13 = vpop.xlane.xlu1 %3005  ;;  %v9972_v63 = vpop.xlane.xlu0 %2996  ;;  %v3043_v15 = vsub.f32 %v9495_v25, %v9849_v35  ;;  %v5392_v45 = vsel %vm1795_vm4, %v9916_v9, -inf  ;;  %v4207_v25 = vsel %vm1795_vm4, %v9757_v40, -inf }
 0x52d   : > { %v9988_v35 = vpop.f32.mrf.mxu0 }
 0x52e   : > { %11806 = vst [vmem:[#allocation102_spill] sm:$0xff] %v9988_v35 }
 0x52f   : > { %v9998_v20 = vpop.f32.mrf.mxu0 }
 0x530   : > { %5399 = vmax.xlane.f32.xlu0 %v5398_v18  ;;  %4190 = vmax.xlane.f32.xlu1 %v4189_v1  ;;  %v9982_v43 = vpop.xlane.xlu1 %2999  ;;  %v3075_v18 = vmul.f32 1.442695, %v3043_v15  ;;  %v1996_v1 = vpop.xlane.xlu0 %1995  ;;  %v5404_v15 = vsel %vm1795_vm4, %v9960_v23, -inf  ;;  %11807 = vst [vmem:[#allocation103_spill] sm:$0xff] %v9998_v20 }
 0x532   : > { %8234 = vpow2.f32 %v3075_v18  ;;  %v5422_v18 = vsel %vm1795_vm4, %v9988_v35, -inf  ;;  %v4213_v35 = vsel %vm1795_vm4, %v9785_v10, -inf }
 0x534   : > { %5393 = vmax.xlane.f32.xlu0 %v5392_v45  ;;  %2052 = vadd.xlane.f32.xlu1 %v2051_v17  ;;  %v3049_v45 = vsub.f32 %v9511_v52, %v9864_v4  ;;  %v4201_v17 = vsel %vm1795_vm4, %v9763_v54, -inf  ;;  %v1990_v40 = vpop.xlane.xlu0 %1989  ;;  %v4219_v52 = vsel %vm1795_vm4, %v9777_v32, -inf }
 0x535   : > { %v10006_v4 = vpop.eup %8232 }
 0x536   : > { %11808 = vst [vmem:[#allocation104_spill] sm:$0xff] %v10006_v4 }
 0x538   : > { %5411 = vmax.xlane.f32.xlu0 %v5410_v51  ;;  %4208 = vmax.xlane.f32.xlu1 %v4207_v25  ;;  %v3087_v51 = vmul.f32 1.442695, %v3049_v45  ;;  %v10008_v25 = vpop.f32.mrf.mxu0  ;;  %v3047_v45 = vsub.f32 %v9515_v58, %v9880_v61 }
 0x539   : > { %v9990_v9 = vpop.xlane.xlu1 %3014  ;;  %11809 = vst [vmem:[#allocation105_spill] sm:$0xff] %v10008_v25 }
 0x53a   : > { %8236 = vpow2.f32 %v3087_v51  ;;  %v10020_v54 = vpop.f32.mrf.mxu0  ;;  %v3083_v32 = vmul.f32 1.442695, %v3047_v45  ;;  %v4228_v51 = vsel %vm1795_vm4, %v9787_v59, -inf  ;;  %v4222_v45 = vsel %vm1795_vm4, %v9796_v31, -inf }
 0x53b   : > { %11811 = vst [vmem:[#allocation107_spill] sm:$0xff] %v10020_v54 }
 0x53c   : > { %5405 = vmax.xlane.f32.xlu0 %v5404_v15  ;;  %4202 = vmax.xlane.f32.xlu1 %v4201_v17  ;;  %v3145_v17 = vsel %vm1795_vm4, %v10006_v4, 0.0  ;;  %v10028_v61 = vpop.f32.mrf.mxu0  ;;  %8238 = vpow2.f32 %v3083_v32 }
 0x53d   : > { %v10000_v55 = vpop.xlane.xlu1 %3008  ;;  %11813 = vst [vmem:[#allocation109_spill] sm:$0xff] %v10028_v61  ;;  %v5434_v32 = vsel %vm1795_vm4, %v10028_v61, -inf }
 0x53f   : > { %v10026_v58 = vpop.eup %8234 }
 0x540   : > { %5423 = vmax.xlane.f32.xlu0 %v5422_v18  ;;  %4220 = vmax.xlane.f32.xlu1 %v4219_v52  ;;  %11812 = vst [vmem:[#allocation108_spill] sm:$0xff] %v10026_v58 }
 0x541   : > { %v10010_v23 = vpop.xlane.xlu0 %3026  ;;  %v10012_v15 = vpop.xlane.xlu1 %3017 }
 0x542   : > { %11810 = vst [vmem:[#allocation106_spill] sm:$0xff] %v10010_v23  ;;  %v5416_v23 = vsel %vm1795_vm4, %v9998_v20, -inf }
 0x544   : > { %3146 = vadd.xlane.f32.xlu0 %v3145_v17  ;;  %4214 = vmax.xlane.f32.xlu1 %v4213_v35  ;;  %v3139_v35 = vsel %vm1795_vm4, %v10026_v58, 0.0  ;;  %v10036_v17 = vpop.f32.mrf.mxu0 }
 0x545   : > { %v2008_v18 = vpop.xlane.xlu0 %2007  ;;  %v1999_v52 = vpop.xlane.xlu1 %1998  ;;  %11814 = vst [vmem:[#allocation110_spill] sm:$0xff] %v10036_v17 }
 0x546   : > { %8240 = vrcp.f32 %v1999_v52  ;;  %v10046_v31 = vpop.f32.mrf.mxu0 }
 0x547   : > { %8242 = vrcp.f32 %v1990_v40  ;;  %v10044_v58 = vpop.eup %8236  ;;  %11816 = vst [vmem:[#allocation112_spill] sm:$0xff] %v10046_v31 }
 0x548   : > { %5417 = vmax.xlane.f32.xlu0 %v5416_v23  ;;  %4229 = vmax.xlane.f32.xlu1 %v4228_v51  ;;  %8244 = vrcp.f32 %v1996_v1  ;;  %v4225_v51 = vsel %vm1795_vm4, %v9808_v22, -inf  ;;  %11815 = vst [vmem:[#allocation111_spill] sm:$0xff] %v10044_v58  ;;  %v3057_v1 = vsub.f32 %v9550_v36, %v9930_v26  ;;  %v5428_v22 = vsel %vm1795_vm4, %v10036_v17, -inf }
 0x549   : > { %v2002_v4 = vpop.xlane.xlu0 %2001  ;;  %v10030_v10 = vpop.xlane.xlu1 %3011  ;;  %v4246_v36 = vsel %vm1795_vm4, %v9847_v37, -inf  ;;  %v3055_v17 = vsub.f32 %v9554_v49, %v9940_v41 }
 0x54a   : > { %v10066_v26 = vpop.eup %8238 }
 0x54b   : > { %11819 = vst [vmem:[#allocation115_spill] sm:$0xff] %v10066_v26  ;;  %v3151_v37 = vsel %vm1795_vm4, %v10066_v26, 0.0  ;;  %v3099_v26 = vmul.f32 1.442695, %v3055_v17 }
 0x54c   : > { %3140 = vadd.xlane.f32.xlu0 %v3139_v35  ;;  %4223 = vmax.xlane.f32.xlu1 %v4222_v45  ;;  %v3157_v35 = vsel %vm1795_vm4, %v10044_v58, 0.0  ;;  %v4234_v45 = vsel %vm1795_vm4, %v9821_v19, -inf }
 0x54d   : > { %v10038_v20 = vpop.xlane.xlu0 %3029  ;;  %v1993_v23 = vpop.xlane.xlu1 %1992 }
 0x54e   : > { %8246 = vrcp.f32 %v1993_v23  ;;  %v10058_v23 = vpop.f32.mrf.mxu0 }
 0x54f   : > { %11818 = vst [vmem:[#allocation114_spill] sm:$0xff] %v10058_v23  ;;  %8248 = vrcp.f32 %v2008_v18 }
 0x550   : > { %5435 = vmax.xlane.f32.xlu0 %v5434_v32  ;;  %4226 = vmax.xlane.f32.xlu1 %v4225_v51  ;;  %v3103_v51 = vmul.f32 1.442695, %v3057_v1  ;;  %v10068_v58 = vpop.f32.mrf.mxu0  ;;  %8250 = vrcp.f32 %v2002_v4  ;;  %v4255_v4 = vsel %vm1795_vm4, %v9851_v8, -inf  ;;  %v5437_v8 = vsel %vm1795_vm4, %v10058_v23, -inf  ;;  %v11841_v23 = vld [vmem:[#allocation82_spill] sm:$0xff] }
 0x551   : > { %v10048_v52 = vpop.xlane.xlu0 %3023  ;;  %v10050_v40 = vpop.xlane.xlu1 %3020  ;;  %11820 = vst [vmem:[#allocation116_spill] sm:$0xff] %v10068_v58 }
 0x552   : > { %11817 = vst [vmem:[#allocation113_spill] sm:$0xff] %v10050_v40  ;;  %v4249_v40 = vsel %vm1795_vm4, %v9860_v14, -inf }
 0x554   : > { %3158 = vadd.xlane.f32.xlu0 %v3157_v35  ;;  %4235 = vmax.xlane.f32.xlu1 %v4234_v45  ;;  %v8241_v35 = vpop.eup %8240 }
 0x555   : > { %v10060_v61 = vpop.xlane.xlu0 %2019  ;;  %v2011_v32 = vpop.xlane.xlu1 %2010 }
 0x556   : > { %8252 = vrcp.f32 %v2011_v32  ;;  %v8243_v1 = vpop.eup %8242  ;;  %v2119_v32 = vmul.f32 %v8241_v35, %v9611_v30 }
 0x557   : > { %v8245_v18 = vpop.eup %8244 }
 0x558   : > { %5429 = vmax.xlane.f32.xlu0 %v5428_v22  ;;  %4247 = vmax.xlane.f32.xlu1 %v4246_v36  ;;  %v10078_v36 = vpop.f32.mrf.mxu0  ;;  %v2118_v49 = vmul.f32 %v8245_v18, %v9579_v60  ;;  %v3058_v60 = vsub.f32 %v9556_v62, %v9938_v47 }
 0x559   : > { %v10070_v45 = vpop.xlane.xlu0 %3041  ;;  %v2005_v19 = vpop.xlane.xlu1 %2004  ;;  %11821 = vst [vmem:[#allocation117_spill] sm:$0xff] %v10078_v36 }
 0x55a   : > { %8254 = vrcp.f32 %v2005_v19  ;;  %v2149_v35 = vpack.c.bf16 %v2119_v32, %v2118_v49  ;;  %v5440_v32 = vsel %vm1795_vm4, %v10078_v36, -inf  ;;  %v5377_v49 = vsel %vm1795_vm4, %v9872_v46, -inf }
 0x55b   : > { %8256 = vpow2.f32 %v3103_v51  ;;  %v8247_v22 = vpop.eup %8246  ;;  %v2116_v51 = vmul.f32 %v8243_v1, %v9588_v53 }
 0x55c   : > { %3152 = vadd.xlane.f32.xlu0 %v3151_v37  ;;  %4256 = vmax.xlane.f32.xlu1 %v4255_v4  ;;  %v2117_v41 = vmul.f32 %v8247_v22, %v9628_v6  ;;  %v10092_v37 = vpop.f32.mrf.mxu0  ;;  %8258 = vpow2.f32 %v3099_v26  ;;  %v5446_v6 = vsel %vm1795_vm4, %v10068_v58, -inf  ;;  %v8249_v17 = vpop.eup %8248  ;;  %v3105_v22 = vmul.f32 1.442695, %v3058_v60 }
 0x55d   : > { %v10081_v59 = vpop.xlane.xlu0 %2031  ;;  %v10083_v19 = vpop.xlane.xlu1 %3038  ;;  %11822 = vst [vmem:[#allocation118_spill] sm:$0xff] %v10092_v37 }
 0x55e   : > { %v2148_v30 = vpack.c.bf16 %v2117_v41, %v2116_v51  ;;  %v8251_v18 = vpop.eup %8250  ;;  %8260 = vpow2.f32 %v3105_v22 }
 0x560   : > { %5438 = vmax.xlane.f32.xlu0 %v5437_v8  ;;  %4250 = vmax.xlane.f32.xlu1 %v4249_v40  ;;  %v10103_v8 = vpop.f32.mrf.mxu0  ;;  %v5383_v40 = vsel %vm1795_vm4, %v9866_v11, -inf }
 0x561   : > { %7652 = vmatprep.mubr.msk.bf16.mxu1 %vm1795_vm4, %v2148_v30  ;;  %v2026_v53 = vpop.xlane.xlu0 %2025  ;;  %v10095_v1 = vpop.xlane.xlu1 %3032  ;;  %v2120_v30 = vmul.f32 %v8251_v18, %v9624_v7  ;;  %v5380_v7 = vsel %vm1795_vm4, %v9888_v21, -inf  ;;  %v11826_v18 = vld [vmem:[#allocation8_spill] sm:$0xff] }
 0x562   : > { %7653 = vmatmul.mubr.msk.bf16.vlgmr.msra.gmra.mxu1 %vm1795_vm4, %v2149_v35  ;;  %v10117_v41 = vpop.f32.mrf.mxu0 }
 0x563   : > { %7725 = vmatpush3.bf16.msra.mxu1 %v9190_v48  ;;  %v8253_v62 = vpop.eup %8252  ;;  %v3056_v48 = vsub.f32 %v9562_v42, %v9952_v0 }
 0x564   : > { %7726 = vmatprep.subr.bf16.mxu1 %v9202_v12  ;;  %5447 = vmax.xlane.f32.xlu0 %v5446_v6  ;;  %v2123_v0 = vmul.f32 %v8253_v62, %v9649_v16  ;;  %v10129_v36 = vpop.f32.mrf.mxu0  ;;  %v5395_v62 = vsel %vm1795_vm4, %v9890_v33, -inf }
 0x565   : > { %5384 = vmax.xlane.f32.xlu1 %v5383_v40  ;;  %v10108_v26 = vpop.xlane.xlu0 %2067  ;;  %v2014_v4 = vpop.xlane.xlu1 %2013  ;;  %v3101_v60 = vmul.f32 1.442695, %v3056_v48  ;;  %v2122_v40 = vmul.f32 %v8249_v17, %v9617_v34  ;;  %11824 = vst [vmem:[#allocation120_spill] sm:$0xff] %v10129_v36 }
 0x566   : > { %v10153_v22 = vpop.f32.mrf.mxu0 }
 0x567   : > { %v8255_v47 = vpop.eup %8254  ;;  %7727 = vmatpush3.bf16.msra.mxu1 %v9202_v12  ;;  %v2151_v16 = vpack.c.bf16 %v2123_v0, %v2122_v40  ;;  %8262 = vpow2.f32 %v3101_v60  ;;  %11827 = vst [vmem:[#allocation122_spill] sm:$0xff] %v10153_v22 }
 0x568   : > { %v10115_v51 = vpop.eup %8256  ;;  %7728 = vmatprep.subr.bf16.mxu1 %v9155_v39  ;;  %5441 = vmax.xlane.f32.xlu0 %v5440_v32  ;;  %v2121_v42 = vmul.f32 %v8255_v47, %v9663_v44  ;;  %8264 = vrcp.f32 %v10060_v61  ;;  %v3046_v61 = vsub.f32 %v9497_v29, %v9841_v27  ;;  %v5407_v27 = vsel %vm1795_vm4, %v9926_v38, -inf }
 0x569   : > { %11823 = vst [vmem:[#allocation119_spill] sm:$0xff] %v10115_v51  ;;  %5378 = vmax.xlane.f32.xlu1 %v5377_v49  ;;  %v2035_v12 = vpop.xlane.xlu0 %2034  ;;  %v2023_v35 = vpop.xlane.xlu1 %2022  ;;  %v3181_v32 = vsel %vm1795_vm4, %v10115_v51, 0.0  ;;  %8266 = vrcp.f32 %v2026_v53  ;;  %v5389_v53 = vsel %vm1795_vm4, %v9902_v3, -inf  ;;  %v11837_v51 = vld [vmem:[#allocation54_spill] sm:$0xff] }
 0x56a   : > { %v2150_v6 = vpack.c.bf16 %v2121_v42, %v2120_v30  ;;  %v10144_v17 = vpop.eup %8258  ;;  %8268 = vrcp.f32 %v2023_v35  ;;  %v5467_v42 = vsel %vm1795_vm4, %v10153_v22, -inf  ;;  %v3081_v29 = vmul.f32 1.442695, %v3046_v61  ;;  %v11829_v35 = vld [vmem:[#allocation12_spill] sm:$0xff] }
 0x56b   : > { %7729 = vmatpush3.bf16.msra.mxu1 %v9155_v39  ;;  %v5452_v39 = vsel %vm1795_vm4, %v10129_v36, -inf  ;;  %11825 = vst [vmem:[#allocation121_spill] sm:$0xff] %v10144_v17  ;;  %8270 = vrcp.f32 %v2014_v4  ;;  %v3066_v4 = vsub.f32 %v9601_v50, %v10012_v15  ;;  %v10165_v0 = vpop.eup %8260  ;;  %v3044_v60 = vsub.f32 %v11829_v35, %v9862_v5  ;;  %v10182_v5 = vpop.f32.mrf.mxu0 }
 0x56c   : > { %7730 = vmatprep.subr.bf16.mxu1 %v9167_v56  ;;  %3182 = vadd.xlane.f32.xlu0 %v3181_v32  ;;  %11828 = vst [vmem:[#allocation123_spill] sm:$0xff] %v10165_v0  ;;  %v11831_v32 = vld [vmem:[#allocation28_spill] sm:$0xff] }
 0x56d   : > { %5381 = vmax.xlane.f32.xlu1 %v5380_v7  ;;  %7656 = vmatprep.mubr.msk.bf16.mxu1 %vm1795_vm4, %v2150_v6  ;;  %v10135_v44 = vpop.xlane.xlu0 %2061  ;;  %v10137_v34 = vpop.xlane.xlu1 %3035  ;;  %v3121_v15 = vmul.f32 1.442695, %v3066_v4  ;;  %v3070_v7 = vsub.f32 %v11831_v32, %v10038_v20  ;;  %11832 = vst [vmem:[#allocation28_spill] sm:$0xff] %v10182_v5 }
 0x56e   : > { %7657 = vmatmul.mubr.msk.bf16.gmra.mxu1 %vm1795_vm4, %v2151_v16  ;;  %v3184_v16 = vsel %vm1795_vm4, %v10165_v0, 0.0 }
 0x56f   : > { %7731 = vmatpush3.bf16.msra.mxu1 %v9167_v56  ;;  %v3175_v56 = vsel %vm1795_vm4, %v10144_v17, 0.0  ;;  %v3129_v4 = vmul.f32 1.442695, %v3070_v7  ;;  %v11840_v17 = vld [vmem:[#allocation31_spill] sm:$0xff] }
 0x570   : > { %7804 = vmatprep.subr.bf16.mxu1 %v11826_v18  ;;  %5453 = vmax.xlane.f32.xlu0 %v5452_v39 }
 0x571   : > { %5396 = vmax.xlane.f32.xlu1 %v5395_v62  ;;  %v2029_v48 = vpop.xlane.xlu0 %2028  ;;  %v2017_v47 = vpop.xlane.xlu1 %2016 }
 0x572   : > { %8272 = vrcp.f32 %v2029_v48  ;;  %v3077_v48 = vmul.f32 1.442695, %v3044_v60 }
 0x573   : > { %8274 = vrcp.f32 %v2017_v47 }
 0x574   : > { %3176 = vadd.xlane.f32.xlu0 %v3175_v56  ;;  %8276 = vrcp.f32 %v2035_v12  ;;  %v10175_v50 = vpop.eup %8262  ;;  %v5401_v12 = vsel %vm1795_vm4, %v9936_v24, -inf }
 0x575   : > { %5390 = vmax.xlane.f32.xlu1 %v5389_v53  ;;  %v10157_v49 = vpop.xlane.xlu0 %4181  ;;  %v10159_v30 = vpop.xlane.xlu1 %4169  ;;  %11830 = vst [vmem:[#allocation12_spill] sm:$0xff] %v10175_v50  ;;  %8278 = vrcp.f32 %v10081_v59  ;;  %v11833_v59 = vld [vmem:[#allocation29_spill] sm:$0xff] }
 0x576   : > { %v8265_v39 = vpop.eup %8264  ;;  %8280 = vpow2.f32 %v3081_v29  ;;  %v3068_v61 = vsub.f32 %v11833_v59, %v10048_v52  ;;  %v11836_v59 = vld [vmem:[#allocation53_spill] sm:$0xff] }
 0x577   : > { %v8267_v62 = vpop.eup %8266  ;;  %8282 = vpow2.f32 %v3121_v15  ;;  %v11835_v15 = vld [vmem:[#allocation42_spill] sm:$0xff]  ;;  %v2126_v36 = vmul.f32 %v8265_v39, %v11840_v17 }
 0x578   : > { %5468 = vmax.xlane.f32.xlu0 %v5467_v42  ;;  %v8269_v20 = vpop.eup %8268  ;;  %v5461_v42 = vsel %vm1795_vm4, %v10182_v5, -inf  ;;  %8284 = vpow2.f32 %v3077_v48  ;;  %v11839_v5 = vld [vmem:[#allocation33_spill] sm:$0xff] }
 0x579   : > { %5408 = vmax.xlane.f32.xlu1 %v5407_v27  ;;  %v10171_v6 = vpop.xlane.xlu0 %4175  ;;  %v10173_v40 = vpop.xlane.xlu1 %4163  ;;  %v5419_v27 = vsel %vm1795_vm4, %v9970_v28, -inf  ;;  %8286 = vpow2.f32 %v3129_v4  ;;  %v3074_v48 = vsub.f32 %v11839_v5, %v10070_v45 }
 0x57a   : > { %v8271_v53 = vpop.eup %8270  ;;  %8288 = vrcp.f32 %v10108_v26 }
 0x57b   : > { %v2124_v7 = vmul.f32 %v8271_v53, %v11835_v15  ;;  %v5413_v53 = vsel %vm1795_vm4, %v9980_v57, -inf  ;;  %v3137_v39 = vmul.f32 1.442695, %v3074_v48  ;;  %v11845_v15 = vld [vmem:[#allocation34_spill] sm:$0xff] }
 0x57c   : > { %3185 = vadd.xlane.f32.xlu0 %v3184_v16  ;;  %v11834_v16 = vld [vmem:[#allocation46_spill] sm:$0xff] }
 0x57d   : > { %5402 = vmax.xlane.f32.xlu1 %v5401_v12  ;;  %v10186_v47 = vpop.xlane.xlu0 %2079  ;;  %v10188_v56 = vpop.xlane.xlu1 %4172  ;;  %v2127_v52 = vmul.f32 %v8269_v20, %v11834_v16  ;;  %v3125_v12 = vmul.f32 1.442695, %v3068_v61  ;;  %v11842_v20 = vld [vmem:[#allocation13_spill] sm:$0xff] }
 0x57e   : > { %v3050_v61 = vsub.f32 %v11842_v20, %v11841_v23 }
 0x57f   : > { %v8273_v29 = vpop.eup %8272  ;;  %v2153_v45 = vpack.c.bf16 %v2127_v52, %v2126_v36  ;;  %8290 = vpow2.f32 %v3125_v12  ;;  %v11846_v52 = vld [vmem:[#allocation86_spill] sm:$0xff] }
 0x580   : > { %5462 = vmax.xlane.f32.xlu0 %v5461_v42  ;;  %v8275_v35 = vpop.eup %8274  ;;  %v2129_v0 = vmul.f32 %v8273_v29, %v11837_v51  ;;  %v10204_v42 = vpop.f32.mrf.mxu0  ;;  %v11843_v51 = vld [vmem:[#allocation39_spill] sm:$0xff]  ;;  %v3089_v36 = vmul.f32 1.442695, %v3050_v61 }
 0x581   : > { %5420 = vmax.xlane.f32.xlu1 %v5419_v27  ;;  %v10196_v60 = vpop.xlane.xlu0 %2073  ;;  %v10198_v32 = vpop.xlane.xlu1 %4166  ;;  %v2125_v22 = vmul.f32 %v8275_v35, %v11836_v59  ;;  %11838 = vst [vmem:[#allocation29_spill] sm:$0xff] %v10204_v42  ;;  %v3178_v27 = vsel %vm1795_vm4, %v10175_v50, 0.0  ;;  %v2128_v29 = vmul.f32 %v8267_v62, %v11843_v51  ;;  %v5470_v26 = vsel %vm1795_vm4, %v10204_v42, -inf  ;;  %v11865_v50 = vld [vmem:[#allocation17_spill] sm:$0xff]  ;;  %v11874_v42 = vld [vmem:[#allocation18_spill] sm:$0xff] }
 0x582   : > { %v8277_v16 = vpop.eup %8276  ;;  %v10220_v23 = vpop.f32.mrf.mxu0 }
 0x583   : > { %v2152_v35 = vpack.c.bf16 %v2125_v22, %v2124_v7  ;;  %v2154_v17 = vpack.c.bf16 %v2129_v0, %v2128_v29  ;;  %11844 = vst [vmem:[#allocation46_spill] sm:$0xff] %v10220_v23  ;;  %v3072_v22 = vsub.f32 %v11845_v15, %v10137_v34  ;;  %v8279_v62 = vpop.eup %8278  ;;  %v11847_v7 = vld [vmem:[#allocation14_spill] sm:$0xff]  ;;  %v5431_v0 = vsel %vm1795_vm4, %v10008_v25, -inf  ;;  %v11851_v29 = vld [vmem:[#allocation36_spill] sm:$0xff]  ;;  %v11853_v15 = vld [vmem:[#allocation87_spill] sm:$0xff] }
 0x584   : > { %3179 = vadd.xlane.f32.xlu0 %v3178_v27  ;;  %v3048_v12 = vsub.f32 %v11847_v7, %v11846_v52  ;;  %v10232_v59 = vpop.eup %8280  ;;  %v11849_v27 = vld [vmem:[#allocation47_spill] sm:$0xff]  ;;  %v5464_v61 = vsel %vm1795_vm4, %v10220_v23, -inf }
 0x585   : > { %5414 = vmax.xlane.f32.xlu1 %v5413_v53  ;;  %v10217_v4 = vpop.xlane.xlu0 %4193  ;;  %v2071_v5 = vpop.xlane.xlu1 %2070  ;;  %7660 = vmatprep.mubr.msk.bf16.mxu1 %vm1795_vm4, %v2152_v35  ;;  %11848 = vst [vmem:[#allocation42_spill] sm:$0xff] %v10232_v59  ;;  %v2131_v20 = vmul.f32 %v8277_v16, %v11849_v27  ;;  %v3133_v53 = vmul.f32 1.442695, %v3072_v22  ;;  %v11850_v35 = vld [vmem:[#allocation38_spill] sm:$0xff]  ;;  %v3148_v16 = vsel %vm1795_vm4, %v10232_v59, 0.0  ;;  %v11892_v59 = vld [vmem:[#allocation84_spill] sm:$0xff] }
 0x586   : > { %7661 = vmatmul.mubr.msk.bf16.gmra.mxu1 %vm1795_vm4, %v2153_v45  ;;  %8292 = vrcp.f32 %v2071_v5  ;;  %v4261_v51 = vsub.f32 %v11850_v35, %v10188_v56  ;;  %v2130_v45 = vmul.f32 %v8279_v62, %v11851_v29  ;;  %v10244_v5 = vpop.eup %8282  ;;  %v11858_v35 = vld [vmem:[#allocation92_spill] sm:$0xff] }
 0x587   : > { %7664 = vmatprep.mubr.msk.bf16.mxu1 %vm1795_vm4, %v2154_v17  ;;  %8294 = vpow2.f32 %v3137_v39  ;;  %11852 = vst [vmem:[#allocation53_spill] sm:$0xff] %v10244_v5  ;;  %v3085_v17 = vmul.f32 1.442695, %v3048_v12  ;;  %v10254_v56 = vpop.eup %8284 }
 0x588   : > { %5471 = vmax.xlane.f32.xlu0 %v5470_v26  ;;  %8296 = vpow2.f32 %v3089_v36  ;;  %v11854_v26 = vld [vmem:[#allocation15_spill] sm:$0xff]  ;;  %v2155_v39 = vpack.c.bf16 %v2131_v20, %v2130_v45  ;;  %11855 = vst [vmem:[#allocation54_spill] sm:$0xff] %v10254_v56  ;;  %v4296_v62 = vmul.f32 1.442695, %v4261_v51  ;;  %v11856_v36 = vld [vmem:[#allocation40_spill] sm:$0xff]  ;;  %v10261_v27 = vpop.eup %8286 }
 0x589   : > { %5432 = vmax.xlane.f32.xlu1 %v5431_v0  ;;  %v10234_v34 = vpop.xlane.xlu0 %2055  ;;  %v10236_v48 = vpop.xlane.xlu1 %2043  ;;  %v3053_v52 = vsub.f32 %v11854_v26, %v11853_v15  ;;  %8298 = vpow2.f32 %v3133_v53  ;;  %v4259_v12 = vsub.f32 %v11856_v36, %v10198_v32  ;;  %v3208_v0 = vsel %vm1795_vm4, %v10244_v5, 0.0  ;;  %11857 = vst [vmem:[#allocation33_spill] sm:$0xff] %v10261_v27  ;;  %v11859_v20 = vld [vmem:[#allocation16_spill] sm:$0xff] }
 0x58a   : > { %8300 = vpow2.f32 %v3085_v17  ;;  %v3051_v29 = vsub.f32 %v11859_v20, %v11858_v35  ;;  %v5425_v53 = vsel %vm1795_vm4, %v10020_v54, -inf  ;;  %v8289_v45 = vpop.eup %8288  ;;  %v3220_v17 = vsel %vm1795_vm4, %v10261_v27, 0.0  ;;  %v11861_v35 = vld [vmem:[#allocation43_spill] sm:$0xff]  ;;  %v11864_v27 = vld [vmem:[#allocation89_spill] sm:$0xff] }
 0x58b   : > { %8302 = vpow2.f32 %v4296_v62  ;;  %v4292_v26 = vmul.f32 1.442695, %v4259_v12  ;;  %v10278_v20 = vmul.f32 %v8289_v45, %v11861_v35  ;;  %v11863_v12 = vld [vmem:[#allocation45_spill] sm:$0xff] }
 0x58c   : > { %5465 = vmax.xlane.f32.xlu0 %v5464_v61  ;;  %v3095_v61 = vmul.f32 1.442695, %v3053_v52  ;;  %v10269_v15 = vpop.eup %8290 }
 0x58d   : > { %3149 = vadd.xlane.f32.xlu1 %v3148_v16  ;;  %v10250_v7 = vpop.xlane.xlu0 %4187  ;;  %v10252_v22 = vpop.xlane.xlu1 %2064  ;;  %11860 = vst [vmem:[#allocation31_spill] sm:$0xff] %v10269_v15  ;;  %v3091_v16 = vmul.f32 1.442695, %v3051_v29  ;;  %v3214_v29 = vsel %vm1795_vm4, %v10269_v15, 0.0 }
 0x58e   : > { %7665 = vmatmul.mubr.msk.bf16.gmra.mxu1 %vm1795_vm4, %v2155_v39  ;;  %8304 = vpow2.f32 %v3095_v61  ;;  %v3142_v39 = vsel %vm1795_vm4, %v10254_v56, 0.0  ;;  %v3054_v61 = vsub.f32 %v11865_v50, %v11864_v27 }
 0x58f   : > { %8306 = vpow2.f32 %v4292_v26 }
 0x590   : > { %3209 = vadd.xlane.f32.xlu0 %v3208_v0  ;;  %8308 = vpow2.f32 %v3091_v16  ;;  %v3097_v27 = vmul.f32 1.442695, %v3054_v61  ;;  %v11871_v61 = vld [vmem:[#allocation48_spill] sm:$0xff] }
 0x591   : > { %5426 = vmax.xlane.f32.xlu1 %v5425_v53  ;;  %v10267_v51 = vpop.xlane.xlu0 %4205  ;;  %v2038_v32 = vpop.xlane.xlu1 %2037  ;;  %v11862_v53 = vld [vmem:[#allocation66_spill] sm:$0xff] }
 0x593   : > { %v8293_v52 = vpop.eup %8292 }
 0x594   : > { %3221 = vadd.xlane.f32.xlu0 %v3220_v17  ;;  %v10281_v62 = vmul.f32 %v8293_v52, %v11862_v53  ;;  %v5443_v52 = vsel %vm1795_vm4, %v10046_v31, -inf }
 0x595   : > { %3143 = vadd.xlane.f32.xlu1 %v3142_v39  ;;  %v10275_v36 = vpop.xlane.xlu0 %4199  ;;  %v4185_v0 = vpop.xlane.xlu1 %4184 }
 0x596   : > { %v4265_v5 = vsub.f32 %v11863_v12, %v4185_v0  ;;  %v10290_v39 = vpop.eup %8294  ;;  %v11870_v12 = vld [vmem:[#allocation49_spill] sm:$0xff] }
 0x597   : > { %11866 = vst [vmem:[#allocation82_spill] sm:$0xff] %v10290_v39  ;;  %v10294_v35 = vpop.eup %8296  ;;  %v3232_v26 = vsel %vm1795_vm4, %v10290_v39, 0.0 }
 0x598   : > { %v4304_v45 = vmul.f32 1.442695, %v4265_v5  ;;  %3215 = vadd.xlane.f32.xlu0 %v3214_v29  ;;  %11867 = vst [vmem:[#allocation13_spill] sm:$0xff] %v10294_v35  ;;  %v10300_v53 = vpop.eup %8298  ;;  %v3160_v5 = vsel %vm1795_vm4, %v10294_v35, 0.0  ;;  %v4268_v29 = vsub.f32 %v11870_v12, %v10217_v4 }
 0x599   : > { %5444 = vmax.xlane.f32.xlu1 %v5443_v52  ;;  %v10296_v0 = vpop.xlane.xlu0 %4217  ;;  %v2047_v50 = vpop.xlane.xlu1 %2046  ;;  %11868 = vst [vmem:[#allocation39_spill] sm:$0xff] %v10300_v53  ;;  %v3226_v39 = vsel %vm1795_vm4, %v10300_v53, 0.0 }
 0x59a   : > { %8310 = vpow2.f32 %v4304_v45  ;;  %v10304_v16 = vpop.eup %8300  ;;  %v4310_v12 = vmul.f32 1.442695, %v4268_v29 }
 0x59b   : > { %11869 = vst [vmem:[#allocation34_spill] sm:$0xff] %v10304_v16  ;;  %8312 = vpow2.f32 %v3097_v27  ;;  %v10313_v15 = vpop.eup %8302  ;;  %v3154_v4 = vsel %vm1795_vm4, %v10304_v16, 0.0 }
 0x59c   : > { %3233 = vadd.xlane.f32.xlu0 %v3232_v26  ;;  %11872 = vst [vmem:[#allocation86_spill] sm:$0xff] %v10313_v15  ;;  %v11873_v26 = vld [vmem:[#allocation95_spill] sm:$0xff]  ;;  %8314 = vrcp.f32 %v10236_v48 }
 0x59d   : > { %3161 = vadd.xlane.f32.xlu1 %v3160_v5  ;;  %v10308_v52 = vpop.xlane.xlu0 %4211  ;;  %v4179_v17 = vpop.xlane.xlu1 %4178  ;;  %v3052_v23 = vsub.f32 %v11874_v42, %v11873_v26  ;;  %8316 = vrcp.f32 %v2047_v50  ;;  %v4363_v42 = vsel %vm1795_vm4, %v10313_v15, 0.0 }
 0x59e   : > { %v4263_v45 = vsub.f32 %v11871_v61, %v4179_v17  ;;  %v10320_v5 = vpop.eup %8304  ;;  %v11876_v17 = vld [vmem:[#allocation51_spill] sm:$0xff]  ;;  %8318 = vrcp.f32 %v2038_v32 }
 0x59f   : > { %11875 = vst [vmem:[#allocation14_spill] sm:$0xff] %v10320_v5  ;;  %v4266_v27 = vsub.f32 %v11876_v17, %v10250_v7  ;;  %v10328_v48 = vpop.eup %8306 }
 0x5a0   : > { %v4300_v58 = vmul.f32 1.442695, %v4263_v45  ;;  %3227 = vadd.xlane.f32.xlu0 %v3226_v39  ;;  %11877 = vst [vmem:[#allocation47_spill] sm:$0xff] %v10328_v48  ;;  %v3093_v45 = vmul.f32 1.442695, %v3052_v23  ;;  %v3169_v39 = vsel %vm1795_vm4, %v10320_v5, 0.0  ;;  %v10332_v29 = vpop.eup %8308 }
 0x5a1   : > { %3155 = vadd.xlane.f32.xlu1 %v3154_v4  ;;  %v10324_v61 = vpop.xlane.xlu0 %4232  ;;  %v2041_v53 = vpop.xlane.xlu1 %2040  ;;  %11878 = vst [vmem:[#allocation38_spill] sm:$0xff] %v10332_v29  ;;  %v4306_v7 = vmul.f32 1.442695, %v4266_v27  ;;  %v11880_v23 = vld [vmem:[#allocation99_spill] sm:$0xff]  ;;  %v3163_v17 = vsel %vm1795_vm4, %v10332_v29, 0.0  ;;  %v11884_v5 = vld [vmem:[#allocation21_spill] sm:$0xff] }
 0x5a2   : > { %8320 = vpow2.f32 %v4300_v58  ;;  %v4357_v58 = vsel %vm1795_vm4, %v10328_v48, 0.0 }
 0x5a3   : > { %8322 = vrcp.f32 %v2041_v53  ;;  %v11881_v53 = vld [vmem:[#allocation19_spill] sm:$0xff] }
 0x5a4   : > { %4364 = vadd.xlane.f32.xlu0 %v4363_v42  ;;  %8324 = vpow2.f32 %v4310_v12  ;;  %v3061_v4 = vsub.f32 %v11881_v53, %v11880_v23  ;;  %v11882_v42 = vld [vmem:[#allocation20_spill] sm:$0xff]  ;;  %v5455_v23 = vsel %vm1795_vm4, %v10092_v37, -inf  ;;  %v11887_v37 = vld [vmem:[#allocation23_spill] sm:$0xff] }
 0x5a5   : > { %3170 = vadd.xlane.f32.xlu1 %v3169_v39  ;;  %v10334_v50 = vpop.xlane.xlu0 %4241  ;;  %v10336_v32 = vpop.xlane.xlu1 %2082  ;;  %8326 = vpow2.f32 %v3093_v45  ;;  %v3059_v39 = vsub.f32 %v11882_v42, %v9972_v63  ;;  %v3062_v63 = vsub.f32 %v11884_v5, %v9962_v13  ;;  %v3065_v16 = vsub.f32 %v11887_v37, %v9990_v9  ;;  %v11893_v9 = vld [vmem:[#allocation69_spill] sm:$0xff] }
 0x5a6   : > { %8328 = vpow2.f32 %v4306_v7  ;;  %v3111_v48 = vmul.f32 1.442695, %v3061_v4  ;;  %v11886_v4 = vld [vmem:[#allocation22_spill] sm:$0xff] }
 0x5a7   : > { %v10340_v26 = vpop.eup %8310  ;;  %v3107_v29 = vmul.f32 1.442695, %v3059_v39  ;;  %v3060_v35 = vsub.f32 %v11886_v4, %v9982_v43  ;;  %v11888_v39 = vld [vmem:[#allocation81_spill] sm:$0xff]  ;;  %v3113_v54 = vmul.f32 1.442695, %v3062_v63  ;;  %v11890_v43 = vld [vmem:[#allocation52_spill] sm:$0xff] }
 0x5a8   : > { %11879 = vst [vmem:[#allocation36_spill] sm:$0xff] %v10340_v26  ;;  %4358 = vadd.xlane.f32.xlu0 %v4357_v58  ;;  %v4375_v15 = vsel %vm1795_vm4, %v10340_v26, 0.0  ;;  %v10354_v45 = vpop.eup %8312  ;;  %8330 = vpow2.f32 %v3111_v48 }
 0x5a9   : > { %3164 = vadd.xlane.f32.xlu1 %v3163_v17  ;;  %v10346_v12 = vpop.xlane.xlu0 %4244  ;;  %v10348_v27 = vpop.xlane.xlu1 %2076  ;;  %11883 = vst [vmem:[#allocation87_spill] sm:$0xff] %v10354_v45  ;;  %8332 = vpow2.f32 %v3107_v29 }
 0x5aa   : > { %v8315_v58 = vpop.eup %8314  ;;  %8334 = vpow2.f32 %v3113_v54 }
 0x5ab   : > { %v8317_v17 = vpop.eup %8316  ;;  %v2134_v37 = vmul.f32 %v8315_v58, %v11893_v9  ;;  %v5458_v58 = vsel %vm1795_vm4, %v10117_v41, -inf }
 0x5ac   : > { %4376 = vadd.xlane.f32.xlu0 %v4375_v15  ;;  %v8319_v42 = vpop.eup %8318  ;;  %v3172_v15 = vsel %vm1795_vm4, %v10354_v45, 0.0  ;;  %v2135_v18 = vmul.f32 %v8317_v17, %v11888_v39  ;;  %v11891_v45 = vld [vmem:[#allocation76_spill] sm:$0xff]  ;;  %v3119_v39 = vmul.f32 1.442695, %v3065_v16 }
 0x5ad   : > { %5456 = vmax.xlane.f32.xlu1 %v5455_v23  ;;  %v10358_v7 = vpop.xlane.xlu0 %4238  ;;  %v10360_v53 = vpop.xlane.xlu1 %2049  ;;  %v2132_v56 = vmul.f32 %v8319_v42, %v11891_v45 }
 0x5ae   : > { %v2157_v42 = vpack.c.bf16 %v2135_v18, %v2134_v37 }
 0x5af   : > { %v10364_v26 = vpop.eup %8320 }
 0x5b0   : > { %11885 = vst [vmem:[#allocation15_spill] sm:$0xff] %v10364_v26  ;;  %v8323_v23 = vpop.eup %8322  ;;  %v4369_v13 = vsel %vm1795_vm4, %v10364_v26, 0.0  ;;  %v5449_v26 = vsel %vm1795_vm4, %v10103_v8, -inf }
 0x5b1   : > { %3173 = vadd.xlane.f32.xlu1 %v3172_v15  ;;  %v10372_v31 = vpop.xlane.xlu0 %4253  ;;  %v4197_v5 = vpop.xlane.xlu1 %4196  ;;  %4370 = vadd.xlane.f32.xlu0 %v4369_v13  ;;  %v2133_v25 = vmul.f32 %v8323_v23, %v11892_v59  ;;  %v3109_v15 = vmul.f32 1.442695, %v3060_v35 }
 0x5b2   : > { %v10377_v48 = vpop.eup %8324  ;;  %v4269_v4 = vsub.f32 %v11890_v43, %v4197_v5  ;;  %v11898_v5 = vld [vmem:[#allocation61_spill] sm:$0xff] }
 0x5b3   : > { %11889 = vst [vmem:[#allocation40_spill] sm:$0xff] %v10377_v48  ;;  %v2156_v38 = vpack.c.bf16 %v2133_v25, %v2132_v56  ;;  %v10385_v17 = vpop.eup %8326  ;;  %v4384_v45 = vsel %vm1795_vm4, %v10377_v48, 0.0  ;;  %v11895_v56 = vld [vmem:[#allocation59_spill] sm:$0xff] }
 0x5b4   : > { %v4312_v24 = vmul.f32 1.442695, %v4269_v4  ;;  %v10391_v29 = vpop.eup %8328  ;;  %v3166_v25 = vsel %vm1795_vm4, %v10385_v17, 0.0  ;;  %v4276_v35 = vsub.f32 %v11895_v56, %v10296_v0 }
 0x5b5   : > { %5450 = vmax.xlane.f32.xlu1 %v5449_v26  ;;  %v10387_v63 = vpop.xlane.xlu0 %5387  ;;  %v2059_v59 = vpop.xlane.xlu1 %2058  ;;  %11894 = vst [vmem:[#allocation92_spill] sm:$0xff] %v10391_v29  ;;  %7668 = vmatprep.mubr.msk.bf16.mxu1 %vm1795_vm4, %v2156_v38  ;;  %v4378_v54 = vsel %vm1795_vm4, %v10391_v29, 0.0  ;;  %v11896_v38 = vld [vmem:[#allocation24_spill] sm:$0xff] }
 0x5b6   : > { %4385 = vadd.xlane.f32.xlu0 %v4384_v45  ;;  %8336 = vpow2.f32 %v4312_v24  ;;  %7669 = vmatmul.mubr.msk.bf16.gmra.mxu1 %vm1795_vm4, %v2157_v42  ;;  %v3063_v26 = vsub.f32 %v11896_v38, %v10000_v55  ;;  %v10411_v23 = vpop.eup %8330  ;;  %v4326_v13 = vmul.f32 1.442695, %v4276_v35  ;;  %v11899_v55 = vld [vmem:[#allocation25_spill] sm:$0xff]  ;;  %v11902_v42 = vld [vmem:[#allocation26_spill] sm:$0xff] }
 0x5b7   : > { %8338 = vpow2.f32 %v3109_v15  ;;  %11897 = vst [vmem:[#allocation16_spill] sm:$0xff] %v10411_v23  ;;  %v10420_v43 = vpop.eup %8332  ;;  %v3193_v9 = vsel %vm1795_vm4, %v10411_v23, 0.0 }
 0x5b8   : > { %8340 = vpow2.f32 %v3119_v39  ;;  %v3115_v4 = vmul.f32 1.442695, %v3063_v26  ;;  %v10428_v39 = vpop.eup %8334 }
 0x5b9   : > { %3167 = vadd.xlane.f32.xlu1 %v3166_v25  ;;  %v10399_v18 = vpop.xlane.xlu0 %5399  ;;  %v4191_v16 = vpop.xlane.xlu1 %4190  ;;  %8342 = vrcp.f32 %v10135_v44  ;;  %v4274_v44 = vsub.f32 %v11898_v5, %v10308_v52  ;;  %v3187_v25 = vsel %vm1795_vm4, %v10420_v43, 0.0 }
 0x5ba   : > { %4379 = vadd.xlane.f32.xlu0 %v4378_v54  ;;  %v4267_v24 = vsub.f32 %v9743_v2, %v4191_v16  ;;  %8344 = vrcp.f32 %v10234_v34 }
 0x5bb   : > { %8346 = vrcp.f32 %v10252_v22  ;;  %v3064_v22 = vsub.f32 %v11899_v55, %v10030_v10  ;;  %v4322_v52 = vmul.f32 1.442695, %v4274_v44  ;;  %v11901_v10 = vld [vmem:[#allocation106_spill] sm:$0xff]  ;;  %v3196_v44 = vsel %vm1795_vm4, %v10428_v39, 0.0 }
 0x5bc   : > { %v4308_v0 = vmul.f32 1.442695, %v4267_v24  ;;  %8348 = vrcp.f32 %v2059_v59  ;;  %v3069_v59 = vsub.f32 %v11902_v42, %v11901_v10 }
 0x5bd   : > { %5459 = vmax.xlane.f32.xlu1 %v5458_v58  ;;  %v10415_v2 = vpop.xlane.xlu0 %5393  ;;  %v2053_v34 = vpop.xlane.xlu1 %2052  ;;  %8350 = vrcp.f32 %v10360_v53  ;;  %v3117_v53 = vmul.f32 1.442695, %v3064_v22  ;;  %v11904_v58 = vld [vmem:[#allocation113_spill] sm:$0xff] }
 0x5be   : > { %8352 = vpow2.f32 %v4308_v0  ;;  %v3127_v0 = vmul.f32 1.442695, %v3069_v59 }
 0x5bf   : > { %8354 = vrcp.f32 %v2053_v34 }
 0x5c0   : > { %8356 = vpow2.f32 %v4326_v13  ;;  %v11905_v13 = vld [vmem:[#allocation27_spill] sm:$0xff] }
 0x5c1   : > { %3194 = vadd.xlane.f32.xlu1 %v3193_v9  ;;  %v10424_v37 = vpop.xlane.xlu0 %5411  ;;  %v10426_v15 = vpop.xlane.xlu1 %4208  ;;  %8358 = vpow2.f32 %v3115_v4  ;;  %v3067_v5 = vsub.f32 %v11905_v13, %v11904_v58  ;;  %v11909_v58 = vld [vmem:[#allocation32_spill] sm:$0xff] }
 0x5c2   : > { %8360 = vpow2.f32 %v4322_v52  ;;  %v3071_v13 = vsub.f32 %v11909_v58, %v10095_v1  ;;  %v11913_v1 = vld [vmem:[#allocation101_spill] sm:$0xff] }
 0x5c3   : > { %v10430_v45 = vpop.eup %8336  ;;  %8362 = vrcp.f32 %v10348_v27  ;;  %v11906_v27 = vld [vmem:[#allocation62_spill] sm:$0xff]  ;;  %v3123_v42 = vmul.f32 1.442695, %v3067_v5 }
 0x5c4   : > { %11900 = vst [vmem:[#allocation43_spill] sm:$0xff] %v10430_v45  ;;  %v10436_v56 = vpop.eup %8338  ;;  %v4387_v54 = vsel %vm1795_vm4, %v10430_v45, 0.0  ;;  %8364 = vpow2.f32 %v3117_v53  ;;  %v11915_v45 = vld [vmem:[#allocation70_spill] sm:$0xff] }
 0x5c5   : > { %11903 = vst [vmem:[#allocation66_spill] sm:$0xff] %v10436_v56  ;;  %3188 = vadd.xlane.f32.xlu1 %v3187_v25  ;;  %v10438_v35 = vpop.xlane.xlu0 %5405  ;;  %v10442_v16 = vpop.xlane.xlu1 %4202  ;;  %4388 = vadd.xlane.f32.xlu0 %v4387_v54  ;;  %8366 = vrcp.f32 %v10196_v60  ;;  %v3190_v53 = vsel %vm1795_vm4, %v10436_v56, 0.0  ;;  %v11908_v60 = vld [vmem:[#allocation30_spill] sm:$0xff] }
 0x5c6   : > { %v10444_v24 = vpop.eup %8340  ;;  %8368 = vpow2.f32 %v3127_v0  ;;  %v3073_v59 = vsub.f32 %v11908_v60, %v10083_v19  ;;  %v11910_v0 = vld [vmem:[#allocation97_spill] sm:$0xff] }
 0x5c7   : > { %v8343_v38 = vpop.eup %8342  ;;  %8370 = vrcp.f32 %v10336_v32  ;;  %v11912_v19 = vld [vmem:[#allocation93_spill] sm:$0xff]  ;;  %v3205_v58 = vsel %vm1795_vm4, %v10444_v24, 0.0 }
 0x5c8   : > { %v8345_v26 = vpop.eup %8344  ;;  %8372 = vrcp.f32 %v10186_v47  ;;  %v11914_v32 = vld [vmem:[#allocation73_spill] sm:$0xff] }
 0x5c9   : > { %v8347_v34 = vpop.eup %8346  ;;  %3197 = vadd.xlane.f32.xlu1 %v3196_v44  ;;  %v10452_v55 = vpop.xlane.xlu0 %5423  ;;  %v2138_v29 = vmul.f32 %v8345_v26, %v11915_v45  ;;  %v11918_v45 = vld [vmem:[#allocation65_spill] sm:$0xff] }
 0x5ca   : > { %v4221_v22 = vpop.xlane.xlu1 %4220  ;;  %v8349_v4 = vpop.eup %8348 }
 0x5cb   : > { %v4277_v9 = vsub.f32 %v11906_v27, %v4221_v22  ;;  %v8351_v52 = vpop.eup %8350  ;;  %v2139_v5 = vmul.f32 %v8349_v4, %v11910_v0  ;;  %v11916_v0 = vld [vmem:[#allocation50_spill] sm:$0xff] }
 0x5cc   : > { %v10457_v10 = vpop.eup %8352  ;;  %v2140_v23 = vmul.f32 %v8343_v38, %v11916_v0 }
 0x5cd   : > { %11907 = vst [vmem:[#allocation45_spill] sm:$0xff] %v10457_v10  ;;  %v4328_v25 = vmul.f32 1.442695, %v4277_v9  ;;  %v8355_v54 = vpop.eup %8354  ;;  %3191 = vadd.xlane.f32.xlu1 %v3190_v53  ;;  %v10464_v44 = vpop.xlane.xlu0 %3146  ;;  %v4381_v22 = vsel %vm1795_vm4, %v10457_v10, 0.0  ;;  %v2136_v9 = vmul.f32 %v8351_v52, %v11912_v19  ;;  %v2141_v53 = vmul.f32 %v8347_v34, %v11914_v32 }
 0x5ce   : > { %v10468_v27 = vpop.xlane.xlu1 %4214  ;;  %v10471_v48 = vpop.eup %8356  ;;  %4382 = vadd.xlane.f32.xlu0 %v4381_v22  ;;  %v2137_v60 = vmul.f32 %v8355_v54, %v11913_v1  ;;  %v3135_v10 = vmul.f32 1.442695, %v3073_v59  ;;  %v2159_v34 = vpack.c.bf16 %v2139_v5, %v2138_v29  ;;  %v3131_v22 = vmul.f32 1.442695, %v3071_v13  ;;  %v11919_v59 = vld [vmem:[#allocation35_spill] sm:$0xff]  ;;  %v11920_v29 = vld [vmem:[#allocation68_spill] sm:$0xff] }
 0x5cf   : > { %11911 = vst [vmem:[#allocation89_spill] sm:$0xff] %v10471_v48  ;;  %8374 = vpow2.f32 %v4328_v25  ;;  %v10481_v56 = vpop.eup %8358  ;;  %v4408_v52 = vsel %vm1795_vm4, %v10471_v48, 0.0  ;;  %v4260_v19 = vsub.f32 %v11919_v59, %v10159_v30  ;;  %v4281_v5 = vsub.f32 %v11920_v29, %v10324_v61 }
 0x5d0   : > { %8376 = vpow2.f32 %v3123_v42  ;;  %v2158_v4 = vpack.c.bf16 %v2137_v60, %v2136_v9  ;;  %v10487_v54 = vpop.eup %8360  ;;  %v2160_v42 = vpack.c.bf16 %v2141_v53, %v2140_v23  ;;  %v3199_v13 = vsel %vm1795_vm4, %v10481_v56, 0.0 }
 0x5d1   : > { %3206 = vadd.xlane.f32.xlu1 %v3205_v58  ;;  %v10483_v47 = vpop.xlane.xlu0 %5417  ;;  %11917 = vst [vmem:[#allocation17_spill] sm:$0xff] %v10487_v54  ;;  %v8363_v38 = vpop.eup %8362  ;;  %8378 = vpow2.f32 %v3135_v10  ;;  %v4402_v30 = vsel %vm1795_vm4, %v10487_v54, 0.0  ;;  %v11921_v10 = vld [vmem:[#allocation67_spill] sm:$0xff]  ;;  %v11922_v58 = vld [vmem:[#allocation90_spill] sm:$0xff] }
 0x5d2   : > { %v4230_v25 = vpop.xlane.xlu1 %4229  ;;  %7672 = vmatprep.mubr.msk.bf16.mxu1 %vm1795_vm4, %v2158_v4  ;;  %4409 = vadd.xlane.f32.xlu0 %v4408_v52  ;;  %v10494_v9 = vpop.eup %8364  ;;  %8380 = vpow2.f32 %v3131_v22  ;;  %v2145_v61 = vmul.f32 %v8363_v38, %v11922_v58  ;;  %v4294_v4 = vmul.f32 1.442695, %v4260_v19  ;;  %v11923_v52 = vld [vmem:[#allocation37_spill] sm:$0xff]  ;;  %v11925_v38 = vld [vmem:[#allocation71_spill] sm:$0xff] }
 0x5d3   : > { %v4280_v26 = vsub.f32 %v11918_v45, %v4230_v25  ;;  %7673 = vmatmul.mubr.msk.bf16.gmra.mxu1 %vm1795_vm4, %v2159_v34  ;;  %v8367_v60 = vpop.eup %8366  ;;  %v3202_v0 = vsel %vm1795_vm4, %v10494_v9, 0.0  ;;  %v4258_v34 = vsub.f32 %v11923_v52, %v10173_v40  ;;  %v4336_v25 = vmul.f32 1.442695, %v4281_v5  ;;  %v11930_v52 = vld [vmem:[#allocation85_spill] sm:$0xff] }
 0x5d4   : > { %7676 = vmatprep.mubr.msk.bf16.mxu1 %vm1795_vm4, %v2160_v42  ;;  %v10512_v59 = vpop.eup %8368  ;;  %v11926_v40 = vpack.c.bf16 %v10281_v62, %v10278_v20 }
 0x5d5   : > { %v4334_v1 = vmul.f32 1.442695, %v4280_v26  ;;  %3200 = vadd.xlane.f32.xlu1 %v3199_v13  ;;  %v10501_v23 = vpop.xlane.xlu0 %3140  ;;  %v11924_v26 = vld [vmem:[#allocation63_spill] sm:$0xff]  ;;  %v8371_v13 = vpop.eup %8370 }
 0x5d6   : > { %v4224_v32 = vpop.xlane.xlu1 %4223  ;;  %4403 = vadd.xlane.f32.xlu0 %v4402_v30  ;;  %v2144_v42 = vmul.f32 %v8367_v60, %v11924_v26  ;;  %v8373_v30 = vpop.eup %8372  ;;  %v11928_v60 = vld [vmem:[#allocation41_spill] sm:$0xff] }
 0x5d7   : > { %v4278_v53 = vsub.f32 %v11921_v10, %v4224_v32  ;;  %8382 = vpow2.f32 %v4334_v1  ;;  %v4264_v32 = vsub.f32 %v11928_v60, %v10157_v49  ;;  %v4290_v10 = vmul.f32 1.442695, %v4258_v34 }
 0x5d8   : > { %v2162_v1 = vpack.c.bf16 %v2145_v61, %v2144_v42  ;;  %v11929_v61 = vld [vmem:[#allocation72_spill] sm:$0xff]  ;;  %v2147_v34 = vmul.f32 %v8371_v13, %v11930_v52 }
 0x5d9   : > { %v4330_v45 = vmul.f32 1.442695, %v4278_v53  ;;  %3203 = vadd.xlane.f32.xlu1 %v3202_v0  ;;  %v10514_v22 = vpop.xlane.xlu0 %5435  ;;  %v3217_v53 = vsel %vm1795_vm4, %v10512_v59, 0.0  ;;  %v4302_v26 = vmul.f32 1.442695, %v4264_v32  ;;  %v11932_v42 = vld [vmem:[#allocation44_spill] sm:$0xff] }
 0x5da   : > { %v4227_v29 = vpop.xlane.xlu1 %4226 }
 0x5db   : > { %8384 = vpow2.f32 %v4330_v45  ;;  %v4279_v19 = vsub.f32 %v11925_v38, %v4227_v29  ;;  %7677 = vmatmul.mubr.msk.bf16.gmra.mxu1 %vm1795_vm4, %v11926_v40  ;;  %v4262_v29 = vsub.f32 %v11932_v42, %v10171_v6 }
 0x5dc   : > { %8386 = vpow2.f32 %v4294_v4  ;;  %v10521_v5 = vpop.eup %8374  ;;  %7680 = vmatprep.mubr.msk.bf16.mxu1 %vm1795_vm4, %v2162_v1  ;;  %v4284_v4 = vsub.f32 %v11929_v61, %v10334_v50  ;;  %v11933_v1 = vld [vmem:[#allocation74_spill] sm:$0xff] }
 0x5dd   : > { %11927 = vst [vmem:[#allocation49_spill] sm:$0xff] %v10521_v5  ;;  %8388 = vpow2.f32 %v4336_v25  ;;  %v10528_v58 = vpop.eup %8376  ;;  %v4332_v20 = vmul.f32 1.442695, %v4279_v19  ;;  %3218 = vadd.xlane.f32.xlu1 %v3217_v53  ;;  %v10532_v62 = vpop.xlane.xlu0 %3158  ;;  %v4411_v0 = vsel %vm1795_vm4, %v10521_v5, 0.0  ;;  %v11931_v25 = vld [vmem:[#allocation60_spill] sm:$0xff] }
 0x5de   : > { %v4236_v49 = vpop.xlane.xlu1 %4235  ;;  %4412 = vadd.xlane.f32.xlu0 %v4411_v0  ;;  %v2146_v45 = vmul.f32 %v8373_v30, %v11931_v25  ;;  %8390 = vpow2.f32 %v4290_v10  ;;  %v3211_v50 = vsel %vm1795_vm4, %v10528_v58, 0.0  ;;  %v10542_v38 = vpop.eup %8378  ;;  %v4342_v19 = vmul.f32 1.442695, %v4284_v4  ;;  %v11935_v10 = vld [vmem:[#allocation55_spill] sm:$0xff] }
 0x5df   : > { %8392 = vpow2.f32 %v4332_v20  ;;  %v4282_v40 = vsub.f32 %v11933_v1, %v4236_v49  ;;  %v10547_v30 = vpop.eup %8380  ;;  %v4298_v32 = vmul.f32 1.442695, %v4262_v29  ;;  %v4272_v61 = vsub.f32 %v11935_v10, %v10267_v51  ;;  %v11936_v20 = vld [vmem:[#allocation78_spill] sm:$0xff] }
 0x5e0   : > { %v2163_v13 = vpack.c.bf16 %v2147_v34, %v2146_v45  ;;  %8394 = vpow2.f32 %v4302_v26  ;;  %v3229_v4 = vsel %vm1795_vm4, %v10542_v38, 0.0  ;;  %v4288_v0 = vsub.f32 %v11936_v20, %v10372_v31  ;;  %v11938_v31 = vld [vmem:[#allocation56_spill] sm:$0xff] }
 0x5e1   : > { %3212 = vadd.xlane.f32.xlu1 %v3211_v50  ;;  %v10545_v60 = vpop.xlane.xlu0 %5429  ;;  %8396 = vpow2.f32 %v4342_v19  ;;  %v4338_v49 = vmul.f32 1.442695, %v4282_v40  ;;  %v3223_v51 = vsel %vm1795_vm4, %v10547_v30, 0.0  ;;  %v4318_v42 = vmul.f32 1.442695, %v4272_v61  ;;  %v11940_v40 = vld [vmem:[#allocation79_spill] sm:$0xff] }
 0x5e2   : > { %v4248_v53 = vpop.xlane.xlu1 %4247  ;;  %8398 = vpow2.f32 %v4298_v32  ;;  %v4270_v29 = vsub.f32 %v11938_v31, %v10275_v36  ;;  %v4350_v1 = vmul.f32 1.442695, %v4288_v0  ;;  %v11941_v61 = vld [vmem:[#allocation57_spill] sm:$0xff] }
 0x5e3   : > { %7681 = vmatmul.mubr.msk.bf16.gmra.mxu1 %vm1795_vm4, %v2163_v13  ;;  %8400 = vpow2.f32 %v4338_v49  ;;  %v4286_v13 = vsub.f32 %v11940_v40, %v4248_v53  ;;  %v4273_v36 = vsub.f32 %v11941_v61, %v10426_v15 }
 0x5e4   : > { %v10550_v6 = vpop.eup %8382  ;;  %8402 = vpow2.f32 %v4318_v42  ;;  %v4314_v32 = vmul.f32 1.442695, %v4270_v29  ;;  %v11943_v29 = vld [vmem:[#allocation58_spill] sm:$0xff] }
 0x5e5   : > { %11934 = vst [vmem:[#allocation48_spill] sm:$0xff] %v10550_v6  ;;  %3230 = vadd.xlane.f32.xlu1 %v3229_v4  ;;  %v10558_v52 = vpop.xlane.xlu0 %3152  ;;  %v4420_v34 = vsel %vm1795_vm4, %v10550_v6, 0.0  ;;  %8404 = vpow2.f32 %v4350_v1  ;;  %v4346_v0 = vmul.f32 1.442695, %v4286_v13  ;;  %v4320_v15 = vmul.f32 1.442695, %v4273_v36 }
 0x5e6   : > { %v10562_v25 = vpop.xlane.xlu1 %4256  ;;  %4421 = vadd.xlane.f32.xlu0 %v4420_v34  ;;  %8406 = vpow2.f32 %v4314_v32  ;;  %v11945_v36 = vld [vmem:[#allocation64_spill] sm:$0xff] }
 0x5e7   : > { %8408 = vpow2.f32 %v4346_v0 }
 0x5e8   : > { %v10564_v45 = vpop.eup %8384  ;;  %8410 = vpow2.f32 %v4320_v15 }
 0x5e9   : > { %11937 = vst [vmem:[#allocation95_spill] sm:$0xff] %v10564_v45  ;;  %v10568_v26 = vpop.eup %8386  ;;  %v4414_v50 = vsel %vm1795_vm4, %v10564_v45, 0.0  ;;  %3224 = vadd.xlane.f32.xlu1 %v3223_v51  ;;  %v10577_v10 = vpop.xlane.xlu0 %5438 }
 0x5ea   : > { %v10574_v19 = vpop.eup %8388  ;;  %v10579_v4 = vpop.xlane.xlu1 %4250  ;;  %4415 = vadd.xlane.f32.xlu0 %v4414_v50  ;;  %v4360_v20 = vsel %vm1795_vm4, %v10568_v26, 0.0  ;;  %v4271_v50 = vsub.f32 %v11943_v29, %v10442_v16 }
 0x5eb   : > { %11939 = vst [vmem:[#allocation18_spill] sm:$0xff] %v10574_v19  ;;  %v10585_v34 = vpop.eup %8390  ;;  %v4423_v49 = vsel %vm1795_vm4, %v10574_v19, 0.0 }
 0x5ec   : > { %v10591_v51 = vpop.eup %8392  ;;  %v4354_v1 = vsel %vm1795_vm4, %v10585_v34, 0.0  ;;  %v4316_v16 = vmul.f32 1.442695, %v4271_v50 }
 0x5ed   : > { %4361 = vadd.xlane.f32.xlu1 %v4360_v20  ;;  %v10587_v53 = vpop.xlane.xlu0 %5447  ;;  %11942 = vst [vmem:[#allocation51_spill] sm:$0xff] %v10591_v51  ;;  %v10598_v40 = vpop.eup %8394  ;;  %v4417_v20 = vsel %vm1795_vm4, %v10591_v51, 0.0 }
 0x5ee   : > { %4424 = vadd.xlane.f32.xlu0 %v4423_v49  ;;  %v5385_v42 = vpop.xlane.xlu1 %5384  ;;  %v10604_v49 = vpop.eup %8396  ;;  %v4372_v0 = vsel %vm1795_vm4, %v10598_v40, 0.0 }
 0x5ef   : > { %v5475_v31 = vsub.f32 %v9866_v11, %v5385_v42  ;;  %11944 = vst [vmem:[#allocation99_spill] sm:$0xff] %v10604_v49  ;;  %v4275_v42 = vsub.f32 %v11945_v36, %v10468_v27  ;;  %v11947_v27 = vld [vmem:[#allocation75_spill] sm:$0xff] }
 0x5f0   : > { %v4285_v15 = vsub.f32 %v11947_v27, %v10346_v12 }
 0x5f1   : > { %v5509_v13 = vmul.f32 1.442695, %v5475_v31  ;;  %4355 = vadd.xlane.f32.xlu1 %v4354_v1  ;;  %v10600_v61 = vpop.xlane.xlu0 %5441  ;;  %v10611_v31 = vpop.eup %8398  ;;  %v4324_v50 = vmul.f32 1.442695, %v4275_v42  ;;  %v11950_v42 = vld [vmem:[#allocation77_spill] sm:$0xff] }
 0x5f2   : > { %4418 = vadd.xlane.f32.xlu0 %v4417_v20  ;;  %v5379_v11 = vpop.xlane.xlu1 %5378  ;;  %v4432_v20 = vsel %vm1795_vm4, %v10604_v49, 0.0  ;;  %v10617_v6 = vpop.eup %8400  ;;  %v4283_v27 = vsub.f32 %v11950_v42, %v10358_v7 }
 0x5f3   : > { %v5473_v32 = vsub.f32 %v9872_v46, %v5379_v11  ;;  %8412 = vpow2.f32 %v5509_v13  ;;  %11946 = vst [vmem:[#allocation19_spill] sm:$0xff] %v10617_v6  ;;  %v4366_v13 = vsel %vm1795_vm4, %v10611_v31, 0.0  ;;  %v10625_v11 = vpop.eup %8402  ;;  %v4426_v36 = vsel %vm1795_vm4, %v10617_v6, 0.0 }
 0x5f4   : > { %8414 = vpow2.f32 %v4316_v16  ;;  %11948 = vst [vmem:[#allocation20_spill] sm:$0xff] %v10625_v11  ;;  %v4344_v16 = vmul.f32 1.442695, %v4285_v15  ;;  %v4340_v15 = vmul.f32 1.442695, %v4283_v27 }
 0x5f5   : > { %v5505_v29 = vmul.f32 1.442695, %v5473_v32  ;;  %4373 = vadd.xlane.f32.xlu1 %v4372_v0  ;;  %v10613_v1 = vpop.xlane.xlu0 %3182  ;;  %v10631_v0 = vpop.eup %8404 }
 0x5f6   : > { %4433 = vadd.xlane.f32.xlu0 %v4432_v20  ;;  %v10619_v46 = vpop.xlane.xlu1 %5381  ;;  %11949 = vst [vmem:[#allocation21_spill] sm:$0xff] %v10631_v0 }
 0x5f7   : > { %8416 = vpow2.f32 %v5505_v29  ;;  %v4396_v29 = vsel %vm1795_vm4, %v10625_v11, 0.0 }
 0x5f8   : > { %8418 = vpow2.f32 %v4324_v50  ;;  %v11952_v50 = vld [vmem:[#allocation80_spill] sm:$0xff] }
 0x5f9   : > { %4367 = vadd.xlane.f32.xlu1 %v4366_v13  ;;  %v10627_v32 = vpop.xlane.xlu0 %5453  ;;  %v10638_v13 = vpop.eup %8406 }
 0x5fa   : > { %4427 = vadd.xlane.f32.xlu0 %v4426_v36  ;;  %v5397_v20 = vpop.xlane.xlu1 %5396  ;;  %v4444_v36 = vsel %vm1795_vm4, %v10631_v0, 0.0  ;;  %v10644_v6 = vpop.eup %8408 }
 0x5fb   : > { %v5479_v12 = vsub.f32 %v9890_v33, %v5397_v20  ;;  %11951 = vst [vmem:[#allocation22_spill] sm:$0xff] %v10644_v6  ;;  %v4289_v20 = vsub.f32 %v11952_v50, %v10562_v25  ;;  %v10651_v42 = vpop.eup %8410 }
 0x5fc   : > { %v4399_v27 = vsel %vm1795_vm4, %v10651_v42, 0.0 }
 0x5fd   : > { %v5517_v49 = vmul.f32 1.442695, %v5479_v12  ;;  %4397 = vadd.xlane.f32.xlu1 %v4396_v29  ;;  %v10640_v19 = vpop.xlane.xlu0 %3176  ;;  %v4390_v12 = vsel %vm1795_vm4, %v10638_v13, 0.0  ;;  %v4352_v25 = vmul.f32 1.442695, %v4289_v20 }
 0x5fe   : > { %4445 = vadd.xlane.f32.xlu0 %v4444_v36  ;;  %v5391_v33 = vpop.xlane.xlu1 %5390  ;;  %v4438_v36 = vsel %vm1795_vm4, %v10644_v6, 0.0 }
 0x5ff   : > { %8420 = vpow2.f32 %v5517_v49  ;;  %v5477_v7 = vsub.f32 %v9902_v3, %v5391_v33 }
 0x600   : > { %8422 = vpow2.f32 %v4344_v16  ;;  %v10657_v49 = vpop.eup %8412  ;;  %v4287_v16 = vsub.f32 %v9860_v14, %v10579_v4 }
 0x601   : > { %v5513_v29 = vmul.f32 1.442695, %v5477_v7  ;;  %4391 = vadd.xlane.f32.xlu1 %v4390_v12  ;;  %v10653_v0 = vpop.xlane.xlu0 %5468  ;;  %11953 = vst [vmem:[#allocation23_spill] sm:$0xff] %v10657_v49  ;;  %v10665_v33 = vpop.eup %8414  ;;  %v5575_v50 = vsel %vm1795_vm4, %v10657_v49, 0.0 }
 0x602   : > { %4439 = vadd.xlane.f32.xlu0 %v4438_v36  ;;  %v10659_v3 = vpop.xlane.xlu1 %5408  ;;  %v4348_v14 = vmul.f32 1.442695, %v4287_v16  ;;  %v4393_v4 = vsel %vm1795_vm4, %v10665_v33, 0.0 }
 0x603   : > { %8424 = vpow2.f32 %v5513_v29 }
 0x604   : > { %8426 = vpow2.f32 %v4340_v15  ;;  %v10671_v12 = vpop.eup %8416  ;;  %v11955_v15 = vld [vmem:[#allocation83_spill] sm:$0xff] }
 0x605   : > { %4400 = vadd.xlane.f32.xlu1 %v4399_v27  ;;  %v10667_v7 = vpop.xlane.xlu0 %3185  ;;  %11954 = vst [vmem:[#allocation81_spill] sm:$0xff] %v10671_v12  ;;  %v5476_v20 = vsub.f32 %v11955_v15, %v10387_v63  ;;  %8428 = vpow2.f32 %v4352_v25  ;;  %v10679_v36 = vpop.eup %8418  ;;  %v5569_v49 = vsel %vm1795_vm4, %v10671_v12, 0.0  ;;  %v5474_v25 = vsub.f32 %v9888_v21, %v10619_v46 }
 0x606   : > { %5576 = vadd.xlane.f32.xlu0 %v5575_v50  ;;  %v10673_v29 = vpop.xlane.xlu1 %5402  ;;  %11956 = vst [vmem:[#allocation52_spill] sm:$0xff] %v10679_v36  ;;  %8430 = vpow2.f32 %v4348_v14  ;;  %v4405_v16 = vsel %vm1795_vm4, %v10679_v36, 0.0  ;;  %v11961_v14 = vld [vmem:[#allocation88_spill] sm:$0xff] }
 0x607   : > { %v5511_v63 = vmul.f32 1.442695, %v5476_v20  ;;  %v5507_v51 = vmul.f32 1.442695, %v5474_v25 }
 0x609   : > { %4394 = vadd.xlane.f32.xlu1 %v4393_v4  ;;  %v10681_v27 = vpop.xlane.xlu0 %5462  ;;  %v11959_v4 = vld [vmem:[#allocation102_spill] sm:$0xff] }
 0x60a   : > { %5570 = vadd.xlane.f32.xlu0 %v5569_v49  ;;  %v5421_v50 = vpop.xlane.xlu1 %5420  ;;  %v5488_v48 = vsub.f32 %v11959_v4, %v10452_v55 }
 0x60b   : > { %v5487_v6 = vsub.f32 %v9970_v28, %v5421_v50  ;;  %v5480_v50 = vsub.f32 %v11961_v14, %v10399_v18 }
 0x60c   : > { %v10686_v45 = vpop.eup %8420 }
 0x60d   : > { %11957 = vst [vmem:[#allocation76_spill] sm:$0xff] %v10686_v45  ;;  %v10692_v15 = vpop.eup %8422  ;;  %v5533_v12 = vmul.f32 1.442695, %v5487_v6  ;;  %4406 = vadd.xlane.f32.xlu1 %v4405_v16  ;;  %v10696_v49 = vpop.xlane.xlu0 %3179  ;;  %v5587_v28 = vsel %vm1795_vm4, %v10686_v45, 0.0  ;;  %v5535_v16 = vmul.f32 1.442695, %v5488_v48 }
 0x60e   : > { %11958 = vst [vmem:[#allocation84_spill] sm:$0xff] %v10692_v15  ;;  %5588 = vadd.xlane.f32.xlu0 %v5587_v28  ;;  %v5415_v20 = vpop.xlane.xlu1 %5414  ;;  %v4435_v55 = vsel %vm1795_vm4, %v10692_v15, 0.0  ;;  %v5519_v25 = vmul.f32 1.442695, %v5480_v50 }
 0x60f   : > { %8432 = vpow2.f32 %v5533_v12  ;;  %v5485_v21 = vsub.f32 %v9980_v57, %v5415_v20 }
 0x610   : > { %v10701_v46 = vpop.eup %8424  ;;  %8434 = vpow2.f32 %v5511_v63  ;;  %v11963_v63 = vld [vmem:[#allocation91_spill] sm:$0xff] }
 0x611   : > { %11960 = vst [vmem:[#allocation69_spill] sm:$0xff] %v10701_v46  ;;  %v10707_v6 = vpop.eup %8426  ;;  %v5529_v4 = vmul.f32 1.442695, %v5485_v21  ;;  %4436 = vadd.xlane.f32.xlu1 %v4435_v55  ;;  %v10709_v28 = vpop.xlane.xlu0 %5471  ;;  %v5581_v57 = vsel %vm1795_vm4, %v10701_v46, 0.0  ;;  %v5478_v18 = vsub.f32 %v11963_v63, %v10415_v2 }
 0x612   : > { %11962 = vst [vmem:[#allocation59_spill] sm:$0xff] %v10707_v6  ;;  %5582 = vadd.xlane.f32.xlu0 %v5581_v57  ;;  %v10713_v12 = vpop.xlane.xlu1 %5432  ;;  %v4429_v20 = vsel %vm1795_vm4, %v10707_v6, 0.0  ;;  %v10719_v48 = vpop.eup %8428  ;;  %v11965_v57 = vld [vmem:[#allocation94_spill] sm:$0xff]  ;;  %v11983_v6 = vld [vmem:[#allocation104_spill] sm:$0xff] }
 0x613   : > { %8436 = vpow2.f32 %v5529_v4  ;;  %11964 = vst [vmem:[#allocation24_spill] sm:$0xff] %v10719_v48  ;;  %v5515_v55 = vmul.f32 1.442695, %v5478_v18  ;;  %v5483_v45 = vsub.f32 %v11965_v57, %v10659_v3  ;;  %v4447_v2 = vsel %vm1795_vm4, %v10719_v48, 0.0  ;;  %v10727_v50 = vpop.eup %8430  ;;  %v11968_v18 = vld [vmem:[#allocation96_spill] sm:$0xff] }
 0x614   : > { %8438 = vpow2.f32 %v5507_v51  ;;  %11966 = vst [vmem:[#allocation61_spill] sm:$0xff] %v10727_v50  ;;  %v5481_v3 = vsub.f32 %v11968_v18, %v10673_v29 }
 0x615   : > { %8440 = vpow2.f32 %v5535_v16  ;;  %4430 = vadd.xlane.f32.xlu1 %v4429_v20  ;;  %v10721_v21 = vpop.xlane.xlu0 %5465  ;;  %v5525_v16 = vmul.f32 1.442695, %v5483_v45 }
 0x616   : > { %v3150_v14 = vpop.xlane.xlu1 %3149  ;;  %8442 = vpow2.f32 %v5519_v25  ;;  %v4441_v25 = vsel %vm1795_vm4, %v10727_v50, 0.0  ;;  %v5521_v18 = vmul.f32 1.442695, %v5481_v3 }
 0x617   : > { %8444 = vpow2.f32 %v5515_v55 }
 0x618   : > { %8446 = vrcp.f32 %v10464_v44  ;;  %v11970_v44 = vld [vmem:[#allocation98_spill] sm:$0xff] }
 0x619   : > { %4448 = vadd.xlane.f32.xlu1 %v4447_v2  ;;  %v10729_v51 = vpop.xlane.xlu0 %3209  ;;  %8448 = vrcp.f32 %v3150_v14  ;;  %v5484_v2 = vsub.f32 %v11970_v44, %v10424_v37 }
 0x61a   : > { %v10731_v4 = vpop.xlane.xlu1 %5426  ;;  %8450 = vrcp.f32 %v10501_v23 }
 0x61b   : > { %8452 = vpow2.f32 %v5525_v16  ;;  %v5527_v16 = vmul.f32 1.442695, %v5484_v2 }
 0x61c   : > { %v10733_v63 = vpop.eup %8432 }
 0x61d   : > { %11967 = vst [vmem:[#allocation25_spill] sm:$0xff] %v10733_v63  ;;  %v10740_v20 = vpop.eup %8434  ;;  %4442 = vadd.xlane.f32.xlu1 %v4441_v25  ;;  %v10742_v57 = vpop.xlane.xlu0 %3221  ;;  %v5611_v55 = vsel %vm1795_vm4, %v10733_v63, 0.0 }
 0x61e   : > { %11969 = vst [vmem:[#allocation106_spill] sm:$0xff] %v10740_v20  ;;  %5612 = vadd.xlane.f32.xlu0 %v5611_v55  ;;  %v3144_v45 = vpop.xlane.xlu1 %3143  ;;  %v5578_v14 = vsel %vm1795_vm4, %v10740_v20, 0.0 }
 0x61f   : > { %8454 = vrcp.f32 %v3144_v45  ;;  %v11974_v45 = vld [vmem:[#allocation100_spill] sm:$0xff] }
 0x620   : > { %v10749_v29 = vpop.eup %8436  ;;  %v5482_v46 = vsub.f32 %v11974_v45, %v10438_v35  ;;  %8456 = vpow2.f32 %v5521_v18  ;;  %v11976_v35 = vld [vmem:[#allocation103_spill] sm:$0xff] }
 0x621   : > { %11971 = vst [vmem:[#allocation26_spill] sm:$0xff] %v10749_v29  ;;  %v10753_v25 = vpop.eup %8438  ;;  %5579 = vadd.xlane.f32.xlu1 %v5578_v14  ;;  %v5605_v63 = vsel %vm1795_vm4, %v10749_v29, 0.0  ;;  %v10761_v44 = vpop.xlane.xlu0 %3215  ;;  %8458 = vpow2.f32 %v5527_v16  ;;  %v5486_v18 = vsub.f32 %v11976_v35, %v10483_v47 }
 0x622   : > { %11972 = vst [vmem:[#allocation113_spill] sm:$0xff] %v10753_v25  ;;  %v10757_v23 = vpop.eup %8440  ;;  %v7654_v55 = vpop.f32.mrf.mxu1  ;;  %5606 = vadd.xlane.f32.xlu0 %v5605_v63  ;;  %v5572_v14 = vsel %vm1795_vm4, %v10753_v25, 0.0  ;;  %v5523_v50 = vmul.f32 1.442695, %v5482_v46  ;;  %8460 = vrcp.f32 %v10558_v52 }
 0x623   : > { %11973 = vst [vmem:[#allocation27_spill] sm:$0xff] %v10757_v23  ;;  %v10759_v37 = vpop.xlane.xlu1 %5444  ;;  %v7192_v3 = vpack.c.bf16 %v7654_v55, %v7654_v55  ;;  %v10767_v29 = vpop.eup %8442  ;;  %v5614_v63 = vsel %vm1795_vm4, %v10757_v23, 0.0  ;;  %v5531_v46 = vmul.f32 1.442695, %v5486_v18  ;;  %v11981_v18 = vld [vmem:[#allocation108_spill] sm:$0xff] }
 0x624   : > { %v2258_v20 = vpop.f32.mrf.mxu1  ;;  %11975 = vst [vmem:[#allocation62_spill] sm:$0xff] %v10767_v29  ;;  %v10775_v25 = vpop.eup %8444 }
 0x625   : > { %2516 = vst.msk [vmem:[#allocation4 + $0x8] sm:$0xf] %vm2513_vm5, %v7192_v3  ;;  %v7190_v48 = vpack.c.bf16 %v2258_v20, %v2258_v20  ;;  %5573 = vadd.xlane.f32.xlu1 %v5572_v14  ;;  %11977 = vst [vmem:[#allocation30_spill] sm:$0xff] %v10775_v25  ;;  %v5590_v3 = vsel %vm1795_vm4, %v10767_v29, 0.0  ;;  %v8447_v14 = vpop.eup %8446  ;;  %v10780_v23 = vpop.xlane.xlu0 %3233 }
 0x626   : > { %v7655_v2 = vpop.f32.mrf.mxu1  ;;  %5615 = vadd.xlane.f32.xlu0 %v5614_v63  ;;  %v8449_v47 = vpop.eup %8448  ;;  %v3269_v5 = vmul.f32 %v8447_v14, %v11983_v6 }
 0x627   : > { %v3162_v55 = vpop.xlane.xlu1 %3161  ;;  %2514 = vst.msk [vmem:[#allocation4] sm:$0xf] %vm2513_vm5, %v7190_v48  ;;  %v7193_v45 = vpack.c.bf16 %v7655_v2, %v7655_v2  ;;  %v8451_v63 = vpop.eup %8450  ;;  %v11979_v2 = vld [vmem:[#allocation105_spill] sm:$0xff] }
 0x628   : > { %v2261_v20 = vpop.f32.mrf.mxu1  ;;  %8462 = vrcp.f32 %v3162_v55  ;;  %v10785_v52 = vpop.eup %8452  ;;  %v5491_v35 = vsub.f32 %v11979_v2, %v10713_v12  ;;  %v5584_v55 = vsel %vm1795_vm4, %v10775_v25, 0.0  ;;  %v3267_v15 = vmul.f32 %v8451_v63, %v11981_v18  ;;  %v11984_v25 = vld [vmem:[#allocation107_spill] sm:$0xff]  ;;  %v11989_v18 = vld [vmem:[#allocation110_spill] sm:$0xff] }
 0x629   : > { %2517 = vst.msk [vmem:[#allocation4 + $0xc] sm:$0xf] %vm2513_vm5, %v7193_v45  ;;  %v7191_v16 = vpack.c.bf16 %v2261_v20, %v2261_v20  ;;  %5591 = vadd.xlane.f32.xlu1 %v5590_v3  ;;  %8464 = vrcp.f32 %v10532_v62  ;;  %11978 = vst [vmem:[#allocation32_spill] sm:$0xff] %v10785_v52  ;;  %v11980_v20 = vld [vmem:[#allocation42_spill] sm:$0xff]  ;;  %v5489_v36 = vsub.f32 %v11984_v25, %v10731_v4 }
 0x62a   : > { %v3270_v3 = vmul.f32 %v8449_v47, %v11980_v20  ;;  %v5541_v2 = vmul.f32 1.442695, %v5491_v35  ;;  %v5599_v47 = vsel %vm1795_vm4, %v10785_v52, 0.0 }
 0x62b   : > { %v3156_v48 = vpop.xlane.xlu1 %3155  ;;  %2515 = vst.msk [vmem:[#allocation4 + $0x4] sm:$0xf] %vm2513_vm5, %v7191_v16  ;;  %v11982_v16 = vld [vmem:[#allocation54_spill] sm:$0xff] }
 0x62c   : > { %8466 = vrcp.f32 %v3156_v48  ;;  %v8455_v45 = vpop.eup %8454  ;;  %v3300_v6 = vpack.c.bf16 %v3270_v3, %v3269_v5 }
 0x62d   : > { %8468 = vpow2.f32 %v5523_v50  ;;  %5585 = vadd.xlane.f32.xlu1 %v5584_v55  ;;  %v3268_v48 = vmul.f32 %v8455_v45, %v11982_v16  ;;  %v10797_v50 = vpop.xlane.xlu0 %3227  ;;  %v10803_v20 = vpop.eup %8456  ;;  %v5537_v45 = vmul.f32 1.442695, %v5489_v36  ;;  %v5490_v16 = vsub.f32 %v11989_v18, %v10545_v60  ;;  %v11994_v18 = vld [vmem:[#allocation34_spill] sm:$0xff] }
 0x62e   : > { %v7658_v62 = vpop.f32.mrf.mxu1  ;;  %8470 = vpow2.f32 %v5531_v46  ;;  %11985 = vst [vmem:[#allocation97_spill] sm:$0xff] %v10803_v20  ;;  %v10811_v25 = vpop.eup %8458  ;;  %v5593_v3 = vsel %vm1795_vm4, %v10803_v20, 0.0 }
 0x62f   : > { %v10792_v29 = vpop.xlane.xlu1 %3170  ;;  %v7196_v12 = vpack.c.bf16 %v7658_v62, %v7658_v62  ;;  %v3299_v55 = vpack.c.bf16 %v3268_v48, %v3267_v15  ;;  %11986 = vst [vmem:[#allocation93_spill] sm:$0xff] %v10811_v25  ;;  %v11987_v15 = vld [vmem:[#allocation109_spill] sm:$0xff]  ;;  %8472 = vpow2.f32 %v5541_v2  ;;  %v8461_v62 = vpop.eup %8460 }
 0x630   : > { %v2274_v54 = vpop.f32.mrf.mxu1  ;;  %v5492_v35 = vsub.f32 %v11987_v15, %v10514_v22  ;;  %8474 = vpow2.f32 %v5537_v45  ;;  %v5539_v15 = vmul.f32 1.442695, %v5490_v16  ;;  %v8680_v16 = vld [vmem:[#allocation2] sm:$0xff]  }
 0x631   : > { %2520 = vst.msk [vmem:[#allocation4 + $0x18] sm:$0xf] %vm2513_vm5, %v7196_v12  ;;  %v7194_v63 = vpack.c.bf16 %v2274_v54, %v2274_v54  ;;  %5600 = vadd.xlane.f32.xlu1 %v5599_v47  ;;  %7732 = vmatprep.mubr.msk.bf16.mxu1 %vm1795_vm4, %v3299_v55  ;;  %v11988_v54 = vld [vmem:[#allocation8_spill] sm:$0xff]  ;;  %v10820_v48 = vpop.xlane.xlu0 %4364  ;;  %v11990_v12 = vld [vmem:[#allocation10_spill] sm:$0xff] }
 0x632   : > { %v7659_v14 = vpop.f32.mrf.mxu1  ;;  %7733 = vmatmul.mubr.msk.bf16.vlgmr.msra.gmra.mxu1 %vm1795_vm4, %v3300_v6  ;;  %v11991_v6 = vld [vmem:[#allocation112_spill] sm:$0xff] }
 0x633   : > { %v10807_v46 = vpop.xlane.xlu1 %3164  ;;  %2518 = vst.msk [vmem:[#allocation4 + $0x10] sm:$0xf] %vm2513_vm5, %v7194_v63  ;;  %v7197_v4 = vpack.c.bf16 %v7659_v14, %v7659_v14  ;;  %7805 = vmatpush3.bf16.msra.mxu1 %v11988_v54  ;;  %v5543_v63 = vmul.f32 1.442695, %v5492_v35  ;;  %v5495_v60 = vsub.f32 %v11991_v6, %v10759_v37  ;;  %v5602_v14 = vsel %vm1795_vm4, %v10811_v25, 0.0  ;;  %v11992_v54 = vld [vmem:[#allocation5_spill] sm:$0xff] }
 0x634   : > { %v2277_v5 = vpop.f32.mrf.mxu1  ;;  %7806 = vmatprep.subr.bf16.mxu1 %v11990_v12  ;;  %v11995_v35 = vld [vmem:[#allocation13_spill] sm:$0xff] }
 0x635   : > { %2521 = vst.msk [vmem:[#allocation4 + $0x1c] sm:$0xf] %vm2513_vm5, %v7197_v4  ;;  %v7195_v47 = vpack.c.bf16 %v2277_v5, %v2277_v5  ;;  %5594 = vadd.xlane.f32.xlu1 %v5593_v3  ;;  %v8463_v22 = vpop.eup %8462  ;;  %v11993_v5 = vld [vmem:[#allocation115_spill] sm:$0xff]  ;;  %v10838_v20 = vpop.xlane.xlu0 %4358  ;;  %8476 = vpow2.f32 %v5543_v63  ;;  %v5549_v25 = vmul.f32 1.442695, %v5495_v60  ;;  %v11998_v63 = vld [vmem:[#allocation116_spill] sm:$0xff] }
 0x636   : > { %v8465_v2 = vpop.eup %8464  ;;  %v3271_v3 = vmul.f32 %v8461_v62, %v11993_v5  ;;  %v3274_v45 = vmul.f32 %v8463_v22, %v11995_v35  ;;  %8478 = vpow2.f32 %v5539_v15  ;;  %v11997_v22 = vld [vmem:[#allocation7_spill] sm:$0xff]  ;;  %v5496_v60 = vsub.f32 %v11998_v63, %v10587_v53  ;;  %v12001_v53 = vld [vmem:[#allocation114_spill] sm:$0xff] }
 0x637   : > { %v10824_v36 = vpop.xlane.xlu1 %5456  ;;  %2519 = vst.msk [vmem:[#allocation4 + $0x14] sm:$0xf] %vm2513_vm5, %v7195_v47  ;;  %7807 = vmatpush3.bf16.msra.mxu1 %v11990_v12  ;;  %v11996_v12 = vld [vmem:[#allocation111_spill] sm:$0xff]  ;;  %8480 = vrcp.f32 %v10640_v19  ;;  %v5493_v5 = vsub.f32 %v12001_v53, %v10577_v10 }
 0x638   : > { %7808 = vmatprep.subr.bf16.mxu1 %v11992_v54  ;;  %v3273_v6 = vmul.f32 %v8465_v2, %v11996_v12  ;;  %8482 = vrcp.f32 %v10696_v49 }
 0x639   : > { %v8467_v55 = vpop.eup %8466  ;;  %5603 = vadd.xlane.f32.xlu1 %v5602_v14  ;;  %8484 = vpow2.f32 %v5549_v25  ;;  %v10861_v19 = vpop.xlane.xlu0 %4376  ;;  %v5551_v25 = vmul.f32 1.442695, %v5496_v60  ;;  %v5545_v35 = vmul.f32 1.442695, %v5493_v5 }
 0x63a   : > { %v10832_v4 = vpop.eup %8468  ;;  %v3272_v47 = vmul.f32 %v8467_v55, %v11994_v18  ;;  %v3302_v55 = vpack.c.bf16 %v3274_v45, %v3273_v6  ;;  %v12003_v45 = vld [vmem:[#allocation46_spill] sm:$0xff] }
 0x63b   : > { %v3174_v52 = vpop.xlane.xlu1 %3173  ;;  %v10841_v11 = vpop.eup %8470  ;;  %7809 = vmatpush3.bf16.msra.mxu1 %v11992_v54  ;;  %v5596_v62 = vsel %vm1795_vm4, %v10832_v4, 0.0  ;;  %v12000_v54 = vld [vmem:[#allocation9_spill] sm:$0xff]  ;;  %v5502_v10 = vsub.f32 %v12003_v45, %v10721_v21 }
 0x63c   : > { %v3301_v37 = vpack.c.bf16 %v3272_v47, %v3271_v3  ;;  %5745 = vrot.lane.b32.xlu0 %v8680_v16, %s8711_s14  ;;  %7810 = vmatprep.subr.bf16.mxu1 %v11997_v22  ;;  %v5608_v14 = vsel %vm1795_vm4, %v10841_v11, 0.0  ;;  %v10859_v15 = vpop.eup %8472  ;;  %8486 = vrcp.f32 %v3174_v52  ;;  %v12002_v3 = vld [vmem:[#allocation117_spill] sm:$0xff] }
 0x63d   : > { %5597 = vadd.xlane.f32.xlu1 %v5596_v62  ;;  %11999 = vst [vmem:[#allocation101_spill] sm:$0xff] %v10859_v15  ;;  %8488 = vrcp.f32 %v10807_v46  ;;  %v5494_v18 = vsub.f32 %v12002_v3, %v10600_v61  ;;  %v5623_v47 = vsel %vm1795_vm4, %v10859_v15, 0.0  ;;  %v10872_v52 = vpop.eup %8474  ;;  %v10878_v46 = vpop.xlane.xlu0 %4370  ;;  %v12004_v61 = vld [vmem:[#allocation118_spill] sm:$0xff]  ;;  %v12005_v21 = vld [vmem:[#allocation29_spill] sm:$0xff] }
 0x63e   : > { %7736 = vmatprep.mubr.msk.bf16.mxu1 %vm1795_vm4, %v3301_v37  ;;  %8490 = vrcp.f32 %v10792_v29  ;;  %v5499_v6 = vsub.f32 %v12004_v61, %v10824_v36  ;;  %v5617_v62 = vsel %vm1795_vm4, %v10872_v52, 0.0 }
 0x63f   : > { %v10850_v2 = vpop.xlane.xlu1 %5450  ;;  %7737 = vmatmul.mubr.msk.bf16.gmra.mxu1 %vm1795_vm4, %v3302_v55  ;;  %v5547_v12 = vmul.f32 1.442695, %v5494_v18  ;;  %v5504_v55 = vsub.f32 %v12005_v21, %v10709_v28 }
 0x640   : > { %7811 = vmatpush3.bf16.msra.mxu1 %v11997_v22  ;;  %v5557_v28 = vmul.f32 1.442695, %v5499_v6 }
 0x641   : > { %7884 = vmatprep.subr.bf16.mxu1 %v12000_v54  ;;  %5609 = vadd.xlane.f32.xlu1 %v5608_v14  ;;  %v5563_v14 = vmul.f32 1.442695, %v5502_v10  ;;  %v5567_v10 = vmul.f32 1.442695, %v5504_v55 }
 0x642   : > { %v10884_v22 = vpop.eup %8476 }
 0x643   : > { %v3168_v49 = vpop.xlane.xlu1 %3167  ;;  %v10889_v60 = vpop.eup %8478  ;;  %v5626_v18 = vsel %vm1795_vm4, %v10884_v22, 0.0 }
 0x644   : > { %8492 = vrcp.f32 %v3168_v49  ;;  %v8481_v5 = vpop.eup %8480  ;;  %v5497_v49 = vsub.f32 %v10103_v8, %v10850_v2 }
 0x645   : > { %5624 = vadd.xlane.f32.xlu1 %v5623_v47  ;;  %8494 = vpow2.f32 %v5551_v25  ;;  %v8483_v25 = vpop.eup %8482 }
 0x646   : > { %v7662_v29 = vpop.f32.mrf.mxu1  ;;  %8496 = vrcp.f32 %v10667_v7  ;;  %v10898_v47 = vpop.eup %8484  ;;  %v5553_v6 = vmul.f32 1.442695, %v5497_v49 }
 0x647   : > { %v10876_v37 = vpop.xlane.xlu1 %5459  ;;  %v7200_v16 = vpack.c.bf16 %v7662_v29, %v7662_v29  ;;  %8498 = vpow2.f32 %v5545_v35  ;;  %v12006_v35 = vld [vmem:[#allocation120_spill] sm:$0xff] }
 0x648   : > { %v2290_v63 = vpop.f32.mrf.mxu1  ;;  %8500 = vrcp.f32 %v10613_v1  ;;  %v5498_v45 = vsub.f32 %v12006_v35, %v10627_v32  ;;  %v10902_v1 = vpop.xlane.xlu0 %4385  ;;  %v5620_v32 = vsel %vm1795_vm4, %v10889_v60, 0.0 }
 0x649   : > { %5618 = vadd.xlane.f32.xlu1 %v5617_v62  ;;  %2524 = vst.msk [vmem:[#allocation4 + $0x28] sm:$0xf] %vm2513_vm5, %v7200_v16  ;;  %v7198_v36 = vpack.c.bf16 %v2290_v63, %v2290_v63  ;;  %8502 = vpow2.f32 %v5547_v12  ;;  %v8487_v8 = vpop.eup %8486 }
 0x64a   : > { %v7663_v7 = vpop.f32.mrf.mxu1  ;;  %8504 = vpow2.f32 %v5563_v14  ;;  %v8489_v61 = vpop.eup %8488  ;;  %v5555_v63 = vmul.f32 1.442695, %v5498_v45  ;;  %v12007_v14 = vld [vmem:[#allocation87_spill] sm:$0xff]  ;;  %v5635_v45 = vsel %vm1795_vm4, %v10898_v47, 0.0 }
 0x64b   : > { %v3195_v53 = vpop.xlane.xlu1 %3194  ;;  %2522 = vst.msk [vmem:[#allocation4 + $0x20] sm:$0xf] %vm2513_vm5, %v7198_v36  ;;  %v7201_v3 = vpack.c.bf16 %v7663_v7, %v7663_v7  ;;  %v8491_v62 = vpop.eup %8490  ;;  %8506 = vpow2.f32 %v5557_v28  ;;  %v3278_v7 = vmul.f32 %v8487_v8, %v12007_v14  ;;  %v12011_v8 = vld [vmem:[#allocation121_spill] sm:$0xff] }
 0x64c   : > { %v2293_v29 = vpop.f32.mrf.mxu1  ;;  %8508 = vpow2.f32 %v5567_v10  ;;  %v12010_v10 = vld [vmem:[#allocation14_spill] sm:$0xff]  ;;  %v3279_v14 = vmul.f32 %v8481_v5, %v12011_v8 }
 0x64d   : > { %5627 = vadd.xlane.f32.xlu1 %v5626_v18  ;;  %2525 = vst.msk [vmem:[#allocation4 + $0x2c] sm:$0xf] %vm2513_vm5, %v7201_v3  ;;  %v7199_v2 = vpack.c.bf16 %v2293_v29, %v2293_v29  ;;  %v12008_v18 = vld [vmem:[#allocation38_spill] sm:$0xff]  ;;  %v12009_v29 = vld [vmem:[#allocation12_spill] sm:$0xff]  ;;  %8510 = vpow2.f32 %v5553_v6 }
 0x64e   : > { %v7666_v16 = vpop.f32.mrf.mxu1  ;;  %v3275_v35 = vmul.f32 %v8489_v61, %v12008_v18  ;;  %v5500_v61 = vsub.f32 %v10117_v41, %v10876_v37  ;;  %v12012_v41 = vld [vmem:[#allocation28_spill] sm:$0xff]  ;;  %v12015_v8 = vld [vmem:[#allocation122_spill] sm:$0xff] }
 0x64f   : > { %v3189_v12 = vpop.xlane.xlu1 %3188  ;;  %2523 = vst.msk [vmem:[#allocation4 + $0x24] sm:$0xf] %vm2513_vm5, %v7199_v2  ;;  %v7204_v21 = vpack.c.bf16 %v7666_v16, %v7666_v16  ;;  %v3280_v2 = vmul.f32 %v8483_v25, %v12009_v29  ;;  %v10913_v16 = vpop.xlane.xlu0 %4379 }
 0x650   : > { %v2306_v36 = vpop.f32.mrf.mxu1 }
 0x651   : > { %v8493_v55 = vpop.eup %8492  ;;  %5621 = vadd.xlane.f32.xlu1 %v5620_v32  ;;  %2528 = vst.msk [vmem:[#allocation4 + $0x38] sm:$0xf] %vm2513_vm5, %v7204_v21  ;;  %v7202_v3 = vpack.c.bf16 %v2306_v36, %v2306_v36  ;;  %v3277_v32 = vmul.f32 %v8491_v62, %v12010_v10  ;;  %v3305_v18 = vpack.c.bf16 %v3280_v2, %v3279_v14  ;;  %v12014_v10 = vld [vmem:[#allocation119_spill] sm:$0xff] }
 0x652   : > { %v3276_v28 = vmul.f32 %v8493_v55, %v10385_v17  ;;  %v7667_v15 = vpop.f32.mrf.mxu1  ;;  %v10919_v21 = vpop.eup %8494  ;;  %v5503_v14 = vsub.f32 %v12015_v8, %v10653_v0  ;;  %v12017_v8 = vld [vmem:[#allocation16_spill] sm:$0xff] }
 0x653   : > { %v3198_v49 = vpop.xlane.xlu1 %3197  ;;  %2526 = vst.msk [vmem:[#allocation4 + $0x30] sm:$0xf] %vm2513_vm5, %v7202_v3  ;;  %v7205_v17 = vpack.c.bf16 %v7667_v15, %v7667_v15  ;;  %v3304_v55 = vpack.c.bf16 %v3278_v7, %v3277_v32  ;;  %v8497_v36 = vpop.eup %8496  ;;  %v5501_v15 = vsub.f32 %v12012_v41, %v10681_v27  ;;  %v5638_v7 = vsel %vm1795_vm4, %v10919_v21, 0.0 }
 0x654   : > { %8512 = vrcp.f32 %v3198_v49  ;;  %v3303_v25 = vpack.c.bf16 %v3276_v28, %v3275_v35  ;;  %v2309_v6 = vpop.f32.mrf.mxu1  ;;  %v10926_v29 = vpop.eup %8498  ;;  %v12013_v49 = vld [vmem:[#allocation123_spill] sm:$0xff]  ;;  %v5565_v0 = vmul.f32 1.442695, %v5503_v14 }
 0x655   : > { %8514 = vrcp.f32 %v3189_v12  ;;  %5636 = vadd.xlane.f32.xlu1 %v5635_v45  ;;  %2529 = vst.msk [vmem:[#allocation4 + $0x3c] sm:$0xf] %vm2513_vm5, %v7205_v17  ;;  %v7203_v62 = vpack.c.bf16 %v2309_v6, %v2309_v6  ;;  %v10930_v37 = vpop.xlane.xlu0 %4388  ;;  %v8501_v12 = vpop.eup %8500  ;;  %v3282_v27 = vmul.f32 %v8497_v36, %v12013_v49  ;;  %v5629_v28 = vsel %vm1795_vm4, %v10926_v29, 0.0 }
 0x656   : > { %8516 = vrcp.f32 %v3195_v53  ;;  %7740 = vmatprep.mubr.msk.bf16.mxu1 %vm1795_vm4, %v3303_v25  ;;  %v5559_v53 = vmul.f32 1.442695, %v5500_v61  ;;  %v10937_v3 = vpop.eup %8502  ;;  %v3281_v32 = vmul.f32 %v8501_v12, %v12014_v10 }
 0x657   : > { %v3192_v5 = vpop.xlane.xlu1 %3191  ;;  %7741 = vmatmul.mubr.msk.bf16.gmra.mxu1 %vm1795_vm4, %v3304_v55  ;;  %2527 = vst.msk [vmem:[#allocation4 + $0x34] sm:$0xf] %vm2513_vm5, %v7203_v62  ;;  %v10942_v2 = vpop.eup %8504  ;;  %v5632_v61 = vsel %vm1795_vm4, %v10937_v3, 0.0 }
 0x658   : > { %8518 = vrcp.f32 %v3192_v5  ;;  %7744 = vmatprep.mubr.msk.bf16.mxu1 %vm1795_vm4, %v3305_v18  ;;  %v10951_v17 = vpop.eup %8506  ;;  %v3306_v25 = vpack.c.bf16 %v3282_v27, %v3281_v32  ;;  %v5656_v36 = vsel %vm1795_vm4, %v10942_v2, 0.0 }
 0x659   : > { %8520 = vpow2.f32 %v5555_v63  ;;  %5639 = vadd.xlane.f32.xlu1 %v5638_v7  ;;  %v5561_v63 = vmul.f32 1.442695, %v5501_v15  ;;  %v10944_v45 = vpop.xlane.xlu0 %4382  ;;  %v10953_v6 = vpop.eup %8508  ;;  %v5647_v5 = vsel %vm1795_vm4, %v10951_v17, 0.0 }
 0x65a   : > { %8522 = vpow2.f32 %v5559_v53  ;;  %v10958_v62 = vpop.eup %8510  ;;  %v5662_v53 = vsel %vm1795_vm4, %v10953_v6, 0.0 }
 0x65b   : > { %v3207_v35 = vpop.xlane.xlu1 %3206  ;;  %5630 = vadd.xlane.f32.xlu0 %v5629_v28  ;;  %8524 = vpow2.f32 %v5561_v63  ;;  %v5641_v27 = vsel %vm1795_vm4, %v10958_v62, 0.0 }
 0x65c   : > { %8526 = vrcp.f32 %v3207_v35 }
 0x65d   : > { %5633 = vadd.xlane.f32.xlu1 %v5632_v61  ;;  %v10962_v41 = vpop.xlane.xlu0 %4409 }
 0x65f   : > { %v3201_v55 = vpop.xlane.xlu1 %3200  ;;  %7745 = vmatmul.mubr.msk.bf16.gmra.mxu1 %vm1795_vm4, %v3306_v25  ;;  %5657 = vadd.xlane.f32.xlu0 %v5656_v36 }
 0x660   : > { %8528 = vrcp.f32 %v3201_v55 }
 0x661   : > { %v8513_v18 = vpop.eup %8512  ;;  %5648 = vadd.xlane.f32.xlu1 %v5647_v5  ;;  %8530 = vrcp.f32 %v10729_v51  ;;  %v12016_v51 = vld [vmem:[#allocation66_spill] sm:$0xff]  ;;  %v10975_v61 = vpop.xlane.xlu0 %4403 }
 0x662   : > { %v8515_v15 = vpop.eup %8514  ;;  %v3286_v35 = vmul.f32 %v8513_v18, %v10428_v39 }
 0x663   : > { %v3204_v12 = vpop.xlane.xlu1 %3203  ;;  %v8517_v7 = vpop.eup %8516  ;;  %5663 = vadd.xlane.f32.xlu0 %v5662_v53  ;;  %v3283_v63 = vmul.f32 %v8515_v15, %v10420_v43 }
 0x664   : > { %8532 = vrcp.f32 %v3204_v12  ;;  %v3285_v14 = vmul.f32 %v8517_v7, %v12017_v8 }
 0x665   : > { %v8519_v49 = vpop.eup %8518  ;;  %8534 = vpow2.f32 %v5565_v0  ;;  %5642 = vadd.xlane.f32.xlu1 %v5641_v27 }
 0x666   : > { %v10970_v28 = vpop.eup %8520  ;;  %v3284_v10 = vmul.f32 %v8519_v49, %v12016_v51  ;;  %v3308_v36 = vpack.c.bf16 %v3286_v35, %v3285_v14 }
 0x667   : > { %v3219_v32 = vpop.xlane.xlu1 %3218  ;;  %v5644_v55 = vsel %vm1795_vm4, %v10970_v28, 0.0  ;;  %v10979_v0 = vpop.eup %8522 }
 0x668   : > { %v3307_v25 = vpack.c.bf16 %v3284_v10, %v3283_v63  ;;  %8536 = vrcp.f32 %v3219_v32  ;;  %v10985_v39 = vpop.xlane.xlu0 %4412  ;;  %v10987_v5 = vpop.eup %8524  ;;  %v5650_v18 = vsel %vm1795_vm4, %v10979_v0, 0.0  ;;  %v12018_v32 = vld [vmem:[#allocation53_spill] sm:$0xff] }
 0x669   : > { %8538 = vrcp.f32 %v10761_v44  ;;  %5645 = vadd.xlane.f32.xlu1 %v5644_v55  ;;  %v8527_v15 = vpop.eup %8526 }
 0x66a   : > { %7748 = vmatprep.mubr.msk.bf16.mxu1 %vm1795_vm4, %v3307_v25  ;;  %8540 = vrcp.f32 %v10742_v57  ;;  %v5653_v57 = vsel %vm1795_vm4, %v10987_v5, 0.0  ;;  %v3289_v27 = vmul.f32 %v8527_v15, %v10444_v24 }
 0x66b   : > { %7749 = vmatmul.mubr.msk.bf16.gmra.mxu1 %vm1795_vm4, %v3308_v36  ;;  %v3213_v43 = vpop.xlane.xlu1 %3212 }
 0x66c   : > { %8542 = vrcp.f32 %v3213_v43 }
 0x66d   : > { %5651 = vadd.xlane.f32.xlu1 %v5650_v18  ;;  %v8529_v12 = vpop.eup %8528 }
 0x66e   : > { %v8531_v53 = vpop.eup %8530  ;;  %v3287_v63 = vmul.f32 %v8529_v12, %v10481_v56 }
 0x66f   : > { %v3231_v44 = vpop.xlane.xlu1 %3230  ;;  %v10991_v7 = vpop.xlane.xlu0 %4421  ;;  %v3290_v8 = vmul.f32 %v8531_v53, %v12018_v32 }
 0x670   : > { %8544 = vrcp.f32 %v3231_v44 }
 0x671   : > { %v8533_v49 = vpop.eup %8532  ;;  %8546 = vrcp.f32 %v10797_v50  ;;  %5654 = vadd.xlane.f32.xlu1 %v5653_v57  ;;  %v3310_v55 = vpack.c.bf16 %v3290_v8, %v3289_v27 }
 0x672   : > { %v10996_v35 = vpop.eup %8534  ;;  %v3288_v51 = vmul.f32 %v8533_v49, %v10494_v9  ;;  %8548 = vrcp.f32 %v10780_v23  ;;  %v12019_v49 = vld [vmem:[#allocation31_spill] sm:$0xff] }
 0x673   : > { %v3225_v10 = vpop.xlane.xlu1 %3224  ;;  %v11003_v14 = vpop.xlane.xlu0 %4415  ;;  %v5659_v24 = vsel %vm1795_vm4, %v10996_v35, 0.0 }
 0x674   : > { %8550 = vrcp.f32 %v3225_v10  ;;  %v3309_v25 = vpack.c.bf16 %v3288_v51, %v3287_v63  ;;  %v12020_v51 = vld [vmem:[#allocation33_spill] sm:$0xff] }
 0x675   : > { %v8537_v36 = vpop.eup %8536  ;;  %5660 = vadd.xlane.f32.xlu1 %v5659_v24 }
 0x676   : > { %7752 = vmatprep.mubr.msk.bf16.mxu1 %vm1795_vm4, %v3309_v25  ;;  %v8539_v56 = vpop.eup %8538  ;;  %v7670_v50 = vpop.f32.mrf.mxu1  ;;  %v3293_v12 = vmul.f32 %v8537_v36, %v10512_v59 }
 0x677   : > { %7753 = vmatmul.mubr.msk.bf16.gmra.mxu1 %vm1795_vm4, %v3310_v55  ;;  %v4362_v9 = vpop.xlane.xlu1 %4361  ;;  %v8541_v23 = vpop.eup %8540  ;;  %v7208_v15 = vpack.c.bf16 %v7670_v50, %v7670_v50  ;;  %v3292_v57 = vmul.f32 %v8539_v56, %v12019_v49 }
 0x678   : > { %v11009_v43 = vpop.xlane.xlu0 %4424  ;;  %8552 = vrcp.f32 %v4362_v9  ;;  %v2322_v44 = vpop.f32.mrf.mxu1  ;;  %v3294_v10 = vmul.f32 %v8541_v23, %v12020_v51 }
 0x679   : > { %v8543_v18 = vpop.eup %8542  ;;  %8554 = vrcp.f32 %v10838_v20  ;;  %2532 = vst.msk [vmem:[#allocation4 + $0x48] sm:$0xf] %vm2513_vm5, %v7208_v15  ;;  %v7206_v27 = vpack.c.bf16 %v2322_v44, %v2322_v44  ;;  %v12022_v44 = vld [vmem:[#allocation82_spill] sm:$0xff] }
 0x67a   : > { %v3291_v53 = vmul.f32 %v8543_v18, %v10528_v58  ;;  %8556 = vrcp.f32 %v10820_v48  ;;  %v7671_v32 = vpop.f32.mrf.mxu1  ;;  %v3312_v25 = vpack.c.bf16 %v3294_v10, %v3293_v12  ;;  %v12021_v18 = vld [vmem:[#allocation39_spill] sm:$0xff] }
 0x67b   : > { %v4356_v63 = vpop.xlane.xlu1 %4355  ;;  %2530 = vst.msk [vmem:[#allocation4 + $0x40] sm:$0xf] %vm2513_vm5, %v7206_v27  ;;  %v7209_v20 = vpack.c.bf16 %v7671_v32, %v7671_v32  ;;  %v12023_v32 = vld [vmem:[#allocation47_spill] sm:$0xff] }
 0x67c   : > { %8558 = vrcp.f32 %v4356_v63  ;;  %v11018_v8 = vpop.xlane.xlu0 %4418  ;;  %v3311_v59 = vpack.c.bf16 %v3292_v57, %v3291_v53  ;;  %v2325_v24 = vpop.f32.mrf.mxu1 }
 0x67d   : > { %v8545_v58 = vpop.eup %8544  ;;  %8560 = vrcp.f32 %v10861_v19  ;;  %2533 = vst.msk [vmem:[#allocation4 + $0x4c] sm:$0xf] %vm2513_vm5, %v7209_v20  ;;  %v7207_v55 = vpack.c.bf16 %v2325_v24, %v2325_v24  ;;  %v12024_v20 = vld [vmem:[#allocation86_spill] sm:$0xff] }
 0x67e   : > { %7756 = vmatprep.mubr.msk.bf16.mxu1 %vm1795_vm4, %v3311_v59  ;;  %v8547_v48 = vpop.eup %8546  ;;  %8562 = vrcp.f32 %v10878_v46  ;;  %v3297_v50 = vmul.f32 %v8545_v58, %v10542_v38 }
 0x67f   : > { %7757 = vmatmul.mubr.msk.bf16.gmra.mxu1 %vm1795_vm4, %v3312_v25  ;;  %v4374_v36 = vpop.xlane.xlu1 %4373  ;;  %v8549_v56 = vpop.eup %8548  ;;  %2531 = vst.msk [vmem:[#allocation4 + $0x44] sm:$0xf] %vm2513_vm5, %v7207_v55  ;;  %v3296_v15 = vmul.f32 %v8547_v48, %v12021_v18 }
 0x680   : > { %v11026_v9 = vpop.xlane.xlu0 %4433  ;;  %8564 = vrcp.f32 %v4374_v36  ;;  %v3298_v53 = vmul.f32 %v8549_v56, %v12022_v44 }
 0x681   : > { %v8551_v23 = vpop.eup %8550  ;;  %8566 = vrcp.f32 %v10944_v45 }
 0x682   : > { %v3295_v19 = vmul.f32 %v8551_v23, %v10547_v30  ;;  %8568 = vrcp.f32 %v10913_v16  ;;  %v3314_v57 = vpack.c.bf16 %v3298_v53, %v3297_v50  ;;  %v12027_v53 = vld [vmem:[#allocation45_spill] sm:$0xff] }
 0x683   : > { %v4368_v12 = vpop.xlane.xlu1 %4367 }
 0x684   : > { %8570 = vrcp.f32 %v4368_v12  ;;  %v11035_v46 = vpop.xlane.xlu0 %4427  ;;  %v3313_v49 = vpack.c.bf16 %v3296_v15, %v3295_v19  ;;  %v12026_v12 = vld [vmem:[#allocation15_spill] sm:$0xff] }
 0x685   : > { %v8553_v27 = vpop.eup %8552  ;;  %8572 = vrcp.f32 %v10930_v37 }
 0x686   : > { %7760 = vmatprep.mubr.msk.bf16.mxu1 %vm1795_vm4, %v3313_v49  ;;  %v8555_v38 = vpop.eup %8554  ;;  %v4484_v16 = vmul.f32 %v8553_v27, %v10568_v26  ;;  %8574 = vrcp.f32 %v10902_v1  ;;  %v12025_v1 = vld [vmem:[#allocation11_spill] sm:$0xff]  ;;  %v12028_v27 = vld [vmem:[#allocation36_spill] sm:$0xff] }
 0x687   : > { %7761 = vmatmul.mubr.msk.bf16.gmra.mxu1 %vm1795_vm4, %v3314_v57  ;;  %v4398_v45 = vpop.xlane.xlu1 %4397  ;;  %v8557_v30 = vpop.eup %8556  ;;  %v4483_v59 = vmul.f32 %v8555_v38, %v12023_v32 }
 0x688   : > { %v11039_v63 = vpop.xlane.xlu0 %4445  ;;  %v4485_v25 = vmul.f32 %v8557_v30, %v12024_v20 }
 0x689   : > { %v8559_v51 = vpop.eup %8558 }
 0x68a   : > { %v4482_v10 = vmul.f32 %v8559_v51, %v10585_v34  ;;  %v8561_v24 = vpop.eup %8560  ;;  %v4515_v56 = vpack.c.bf16 %v4485_v25, %v4484_v16  ;;  %v12029_v51 = vld [vmem:[#allocation92_spill] sm:$0xff] }
 0x68b   : > { %v4392_v58 = vpop.xlane.xlu1 %4391  ;;  %v8563_v36 = vpop.eup %8562  ;;  %v4489_v38 = vmul.f32 %v8561_v24, %v12028_v27 }
 0x68c   : > { %v11047_v48 = vpop.xlane.xlu0 %4439  ;;  %v4514_v55 = vpack.c.bf16 %v4483_v59, %v4482_v10  ;;  %v4487_v44 = vmul.f32 %v8563_v36, %v12026_v12  ;;  %v12030_v10 = vld [vmem:[#allocation6_spill] sm:$0xff]  ;;  %v12031_v36 = vld [vmem:[#allocation43_spill] sm:$0xff] }
 0x68d   : > { %v8565_v23 = vpop.eup %8564 }
 0x68e   : > { %7812 = vmatprep.mubr.msk.bf16.mxu1 %vm1795_vm4, %v4514_v55  ;;  %v8567_v37 = vpop.eup %8566  ;;  %v4488_v19 = vmul.f32 %v8565_v23, %v10598_v40 }
 0x68f   : > { %7813 = vmatmul.mubr.msk.bf16.vlgmr.msra.gmra.mxu1 %vm1795_vm4, %v4515_v56  ;;  %v4401_v26 = vpop.xlane.xlu1 %4400  ;;  %v8569_v34 = vpop.eup %8568  ;;  %v4491_v49 = vmul.f32 %v8567_v37, %v12027_v53 }
 0x690   : > { %7885 = vmatpush3.bf16.msra.mxu1 %v12000_v54  ;;  %8576 = vrcp.f32 %v4401_v26  ;;  %v11054_v18 = vpop.xlane.xlu0 %5576  ;;  %v4490_v40 = vmul.f32 %v8569_v34, %v12029_v51  ;;  %v4517_v32 = vpack.c.bf16 %v4489_v38, %v4488_v19  ;;  %v12032_v34 = vld [vmem:[#allocation40_spill] sm:$0xff] }
 0x691   : > { %v8571_v50 = vpop.eup %8570  ;;  %7886 = vmatprep.subr.bf16.mxu1 %v12025_v1  ;;  %8578 = vrcp.f32 %v4392_v58 }
 0x692   : > { %v4486_v15 = vmul.f32 %v8571_v50, %v10611_v31  ;;  %8580 = vrcp.f32 %v4398_v45  ;;  %v8573_v31 = vpop.eup %8572  ;;  %v4518_v45 = vpack.c.bf16 %v4491_v49, %v4490_v40 }
 0x693   : > { %v4395_v57 = vpop.xlane.xlu1 %4394  ;;  %v7674_v54 = vpop.f32.mrf.mxu1  ;;  %v4493_v56 = vmul.f32 %v8573_v31, %v12031_v36 }
 0x694   : > { %7887 = vmatpush3.bf16.msra.mxu1 %v12025_v1  ;;  %8582 = vrcp.f32 %v4395_v57  ;;  %v4516_v30 = vpack.c.bf16 %v4487_v44, %v4486_v15  ;;  %v7212_v16 = vpack.c.bf16 %v7674_v54, %v7674_v54  ;;  %v8575_v58 = vpop.eup %8574  ;;  %v11067_v24 = vpop.xlane.xlu0 %5570 }
 0x695   : > { %7888 = vmatprep.subr.bf16.mxu1 %v12030_v10  ;;  %8584 = vrcp.f32 %v10975_v61  ;;  %v2338_v59 = vpop.f32.mrf.mxu1  ;;  %v4492_v50 = vmul.f32 %v8575_v58, %v12032_v34 }
 0x696   : > { %7816 = vmatprep.mubr.msk.bf16.mxu1 %vm1795_vm4, %v4516_v30  ;;  %2536 = vst.msk [vmem:[#allocation4 + $0x58] sm:$0xf] %vm2513_vm5, %v7212_v16  ;;  %v7210_v20 = vpack.c.bf16 %v2338_v59, %v2338_v59 }
 0x697   : > { %7817 = vmatmul.mubr.msk.bf16.gmra.mxu1 %vm1795_vm4, %v4517_v32  ;;  %v4407_v25 = vpop.xlane.xlu1 %4406  ;;  %v7675_v55 = vpop.f32.mrf.mxu1  ;;  %v4519_v19 = vpack.c.bf16 %v4493_v56, %v4492_v50  ;;  %v12033_v32 = vld [vmem:[#allocation20_spill] sm:$0xff] }
 0x698   : > { %7889 = vmatpush3.bf16.msra.mxu1 %v12030_v10  ;;  %8586 = vrcp.f32 %v4407_v25  ;;  %7820 = vmatprep.mubr.msk.bf16.mxu1 %vm1795_vm4, %v4518_v45  ;;  %2534 = vst.msk [vmem:[#allocation4 + $0x50] sm:$0xf] %vm2513_vm5, %v7210_v20  ;;  %v7213_v61 = vpack.c.bf16 %v7675_v55, %v7675_v55  ;;  %v11080_v12 = vpop.xlane.xlu0 %5588  ;;  %v12035_v55 = vld [vmem:[#allocation52_spill] sm:$0xff] }
 0x699   : > { %8588 = vrcp.f32 %v10985_v39  ;;  %v2341_v23 = vpop.f32.mrf.mxu1 }
 0x69a   : > { %8590 = vrcp.f32 %v11018_v8  ;;  %2537 = vst.msk [vmem:[#allocation4 + $0x5c] sm:$0xf] %vm2513_vm5, %v7213_v61  ;;  %v7211_v37 = vpack.c.bf16 %v2341_v23, %v2341_v23 }
 0x69b   : > { %8592 = vrcp.f32 %v10962_v41  ;;  %v4437_v26 = vpop.xlane.xlu1 %4436  ;;  %v7678_v1 = vpop.f32.mrf.mxu1 }
 0x69c   : > { %8594 = vrcp.f32 %v11003_v14  ;;  %2535 = vst.msk [vmem:[#allocation4 + $0x54] sm:$0xf] %vm2513_vm5, %v7211_v37  ;;  %v7216_v39 = vpack.c.bf16 %v7678_v1, %v7678_v1  ;;  %v11093_v31 = vpop.xlane.xlu0 %5582 }
 0x69d   : > { %v8577_v15 = vpop.eup %8576  ;;  %v2354_v8 = vpop.f32.mrf.mxu1  ;;  %8596 = vrcp.f32 %v11009_v43 }
 0x69e   : > { %v8579_v44 = vpop.eup %8578  ;;  %2540 = vst.msk [vmem:[#allocation4 + $0x68] sm:$0xf] %vm2513_vm5, %v7216_v39  ;;  %v7214_v41 = vpack.c.bf16 %v2354_v8, %v2354_v8  ;;  %v4497_v38 = vmul.f32 %v8577_v15, %v10651_v42 }
 0x69f   : > { %7821 = vmatmul.mubr.msk.bf16.gmra.mxu1 %vm1795_vm4, %v4519_v19  ;;  %v4431_v53 = vpop.xlane.xlu1 %4430  ;;  %v8581_v49 = vpop.eup %8580  ;;  %v4494_v30 = vmul.f32 %v8579_v44, %v10638_v13  ;;  %v12036_v19 = vld [vmem:[#allocation49_spill] sm:$0xff]  ;;  %v12037_v44 = vld [vmem:[#allocation51_spill] sm:$0xff] }
 0x6a0   : > { %v7679_v57 = vpop.f32.mrf.mxu1  ;;  %2538 = vst.msk [vmem:[#allocation4 + $0x60] sm:$0xf] %vm2513_vm5, %v7214_v41  ;;  %8598 = vrcp.f32 %v4431_v53  ;;  %v4496_v43 = vmul.f32 %v8581_v49, %v12033_v32 }
 0x6a1   : > { %v8583_v27 = vpop.eup %8582  ;;  %v7217_v14 = vpack.c.bf16 %v7679_v57, %v7679_v57  ;;  %8600 = vrcp.f32 %v10991_v7  ;;  %v12034_v7 = vld [vmem:[#allocation17_spill] sm:$0xff] }
 0x6a2   : > { %v2357_v54 = vpop.f32.mrf.mxu1  ;;  %v4495_v51 = vmul.f32 %v8583_v27, %v10665_v33  ;;  %v8585_v40 = vpop.eup %8584  ;;  %8602 = vrcp.f32 %v11035_v46  ;;  %v4521_v33 = vpack.c.bf16 %v4497_v38, %v4496_v43  ;;  %v12038_v57 = vld [vmem:[#allocation89_spill] sm:$0xff] }
 0x6a3   : > { %2541 = vst.msk [vmem:[#allocation4 + $0x6c] sm:$0xf] %vm2513_vm5, %v7217_v14  ;;  %v7215_v16 = vpack.c.bf16 %v2357_v54, %v2357_v54  ;;  %v4449_v10 = vpop.xlane.xlu1 %4448  ;;  %v4498_v58 = vmul.f32 %v8585_v40, %v12034_v7  ;;  %8604 = vrcp.f32 %v4437_v26  ;;  %v12039_v14 = vld [vmem:[#allocation95_spill] sm:$0xff] }
 0x6a4   : > { %v7682_v42 = vpop.f32.mrf.mxu1  ;;  %v4520_v59 = vpack.c.bf16 %v4495_v51, %v4494_v30  ;;  %v12043_v7 = vld [vmem:[#allocation19_spill] sm:$0xff] }
 0x6a5   : > { %v8587_v45 = vpop.eup %8586  ;;  %2539 = vst.msk [vmem:[#allocation4 + $0x64] sm:$0xf] %vm2513_vm5, %v7215_v16  ;;  %v7220_v13 = vpack.c.bf16 %v7682_v42, %v7682_v42 }
 0x6a6   : > { %v8589_v20 = vpop.eup %8588  ;;  %v2370_v25 = vpop.f32.mrf.mxu1  ;;  %7824 = vmatprep.mubr.msk.bf16.mxu1 %vm1795_vm4, %v4520_v59  ;;  %v4499_v61 = vmul.f32 %v8587_v45, %v12035_v55  ;;  %v12041_v59 = vld [vmem:[#allocation59_spill] sm:$0xff] }
 0x6a7   : > { %v8591_v36 = vpop.eup %8590  ;;  %2544 = vst.msk [vmem:[#allocation4 + $0x78] sm:$0xf] %vm2513_vm5, %v7220_v13  ;;  %v7218_v46 = vpack.c.bf16 %v2370_v25, %v2370_v25  ;;  %7825 = vmatmul.mubr.msk.bf16.gmra.mxu1 %vm1795_vm4, %v4521_v33  ;;  %v4443_v56 = vpop.xlane.xlu1 %4442  ;;  %v4501_v15 = vmul.f32 %v8589_v20, %v12036_v19  ;;  %v12042_v33 = vld [vmem:[#allocation48_spill] sm:$0xff] }
 0x6a8   : > { %v8593_v23 = vpop.eup %8592  ;;  %v7683_v37 = vpop.f32.mrf.mxu1  ;;  %v4522_v50 = vpack.c.bf16 %v4499_v61, %v4498_v58  ;;  %8606 = vrcp.f32 %v4443_v56  ;;  %v4503_v41 = vmul.f32 %v8591_v36, %v12037_v44 }
 0x6a9   : > { %v11101_v34 = vpop.xlane.xlu0 %5612  ;;  %v8595_v1 = vpop.eup %8594  ;;  %2542 = vst.msk [vmem:[#allocation4 + $0x70] sm:$0xf] %vm2513_vm5, %v7218_v46  ;;  %v7221_v39 = vpack.c.bf16 %v7683_v37, %v7683_v37  ;;  %8608 = vrcp.f32 %v11026_v9  ;;  %v4500_v27 = vmul.f32 %v8593_v23, %v12038_v57  ;;  %v12044_v23 = vld [vmem:[#allocation84_spill] sm:$0xff] }
 0x6aa   : > { %v2373_v8 = vpop.f32.mrf.mxu1  ;;  %7828 = vmatprep.mubr.msk.bf16.mxu1 %vm1795_vm4, %v4522_v50  ;;  %8610 = vrcp.f32 %v11047_v48  ;;  %v4502_v38 = vmul.f32 %v8595_v1, %v12039_v14  ;;  %v8597_v30 = vpop.eup %8596  ;;  %v12040_v48 = vld [vmem:[#allocation18_spill] sm:$0xff] }
 0x6ab   : > { %2545 = vst.msk [vmem:[#allocation4 + $0x7c] sm:$0xf] %vm2513_vm5, %v7221_v39  ;;  %v7219_v53 = vpack.c.bf16 %v2373_v8, %v2373_v8  ;;  %v5580_v49 = vpop.xlane.xlu1 %5579  ;;  %v4523_v54 = vpack.c.bf16 %v4501_v15, %v4500_v27  ;;  %8612 = vrcp.f32 %v4449_v10  ;;  %v4505_v42 = vmul.f32 %v8597_v30, %v12040_v48  ;;  %v12046_v39 = vld [vmem:[#allocation99_spill] sm:$0xff]  ;;  %v12047_v15 = vld [vmem:[#allocation22_spill] sm:$0xff] }
 0x6ac   : > { %v4524_v51 = vpack.c.bf16 %v4503_v41, %v4502_v38 }
 0x6ad   : > { %v11111_v26 = vpop.xlane.xlu0 %5606  ;;  %2543 = vst.msk [vmem:[#allocation4 + $0x74] sm:$0xf] %vm2513_vm5, %v7219_v53  ;;  %v8599_v40 = vpop.eup %8598 }
 0x6ae   : > { %v8601_v16 = vpop.eup %8600  ;;  %v4507_v45 = vmul.f32 %v8599_v40, %v12041_v59 }
 0x6af   : > { %7829 = vmatmul.mubr.msk.bf16.gmra.mxu1 %vm1795_vm4, %v4523_v54  ;;  %v5574_v9 = vpop.xlane.xlu1 %5573  ;;  %v8603_v43 = vpop.eup %8602  ;;  %v4504_v20 = vmul.f32 %v8601_v16, %v12042_v33  ;;  %v12049_v54 = vld [vmem:[#allocation113_spill] sm:$0xff] }
 0x6b0   : > { %7832 = vmatprep.mubr.msk.bf16.mxu1 %vm1795_vm4, %v4524_v51  ;;  %8614 = vrcp.f32 %v5574_v9  ;;  %v4506_v58 = vmul.f32 %v8603_v43, %v12043_v7  ;;  %v8605_v61 = vpop.eup %8604  ;;  %v12050_v51 = vld [vmem:[#allocation21_spill] sm:$0xff] }
 0x6b1   : > { %v11116_v32 = vpop.xlane.xlu0 %5615  ;;  %8616 = vrcp.f32 %v11039_v63  ;;  %v4525_v55 = vpack.c.bf16 %v4505_v42, %v4504_v20  ;;  %v4509_v37 = vmul.f32 %v8605_v61, %v12044_v23  ;;  %v12051_v9 = vld [vmem:[#allocation81_spill] sm:$0xff]  ;;  %v12052_v20 = vld [vmem:[#allocation106_spill] sm:$0xff] }
 0x6b2   : > { %8618 = vrcp.f32 %v11067_v24  ;;  %v4526_v10 = vpack.c.bf16 %v4507_v45, %v4506_v58  ;;  %v12045_v24 = vld [vmem:[#allocation61_spill] sm:$0xff]  ;;  %v12054_v58 = vld [vmem:[#allocation23_spill] sm:$0xff] }
 0x6b3   : > { %v5592_v13 = vpop.xlane.xlu1 %5591  ;;  %8620 = vrcp.f32 %v5580_v49 }
 0x6b5   : > { %v5746_v25 = vpop.permute.xlu0 %5745  ;;  %v8607_v36 = vpop.eup %8606 }
 0x6b6   : > { %7890 = vmatprep.subr.bf16.mxu1 %v5746_v25  ;;  %v8609_v56 = vpop.eup %8608  ;;  %v4511_v50 = vmul.f32 %v8607_v36, %v12045_v24 }
 0x6b7   : > { %7891 = vmatpush3.bf16.msra.mxu1 %v5746_v25  ;;  %v5586_v46 = vpop.xlane.xlu1 %5585  ;;  %v8611_v63 = vpop.eup %8610  ;;  %v4508_v19 = vmul.f32 %v8609_v56, %v12046_v39  ;;  %v12053_v25 = vld [vmem:[#allocation30_spill] sm:$0xff]  ;;  %v12057_v39 = vld [vmem:[#allocation76_spill] sm:$0xff] }
 0x6b8   : > { %7833 = vmatmul.mubr.msk.bf16.gmra.mxu1 %vm1795_vm4, %v4525_v55  ;;  %8622 = vrcp.f32 %v5586_v46  ;;  %v4510_v8 = vmul.f32 %v8611_v63, %v12047_v15  ;;  %v8613_v41 = vpop.eup %8612 }
 0x6b9   : > { %7836 = vmatprep.mubr.msk.bf16.mxu1 %vm1795_vm4, %v4526_v10  ;;  %8624 = vrcp.f32 %v11054_v18  ;;  %v4527_v44 = vpack.c.bf16 %v4509_v37, %v4508_v19  ;;  %v12048_v18 = vld [vmem:[#allocation24_spill] sm:$0xff]  ;;  %v12055_v10 = vld [vmem:[#allocation69_spill] sm:$0xff] }
 0x6ba   : > { %8626 = vrcp.f32 %v11093_v31  ;;  %v4528_v53 = vpack.c.bf16 %v4511_v50, %v4510_v8  ;;  %v4513_v38 = vmul.f32 %v8613_v41, %v12048_v18  ;;  %v12058_v41 = vld [vmem:[#allocation97_spill] sm:$0xff] }
 0x6bb   : > { %v5601_v1 = vpop.xlane.xlu1 %5600  ;;  %8628 = vrcp.f32 %v5592_v13 }
 0x6bc   : > { %8630 = vrcp.f32 %v11080_v12 }
 0x6bd   : > { %v8615_v57 = vpop.eup %8614 }
 0x6be   : > { %v8617_v27 = vpop.eup %8616  ;;  %v5698_v30 = vmul.f32 %v8615_v57, %v12049_v54 }
 0x6bf   : > { %v5595_v49 = vpop.xlane.xlu1 %5594  ;;  %v8619_v14 = vpop.eup %8618  ;;  %v4512_v40 = vmul.f32 %v8617_v27, %v12050_v51 }
 0x6c0   : > { %7837 = vmatmul.mubr.msk.bf16.gmra.mxu1 %vm1795_vm4, %v4527_v44  ;;  %v5697_v16 = vmul.f32 %v8619_v14, %v12051_v9  ;;  %v8621_v48 = vpop.eup %8620  ;;  %8632 = vrcp.f32 %v5595_v49 }
 0x6c1   : > { %7840 = vmatprep.mubr.msk.bf16.mxu1 %vm1795_vm4, %v4528_v53  ;;  %v4529_v43 = vpack.c.bf16 %v4513_v38, %v4512_v40  ;;  %v5700_v12 = vmul.f32 %v8621_v48, %v12052_v20  ;;  %v12059_v38 = vld [vmem:[#allocation93_spill] sm:$0xff] }
 0x6c2   : > { %v5729_v42 = vpack.c.bf16 %v5698_v30, %v5697_v16 }
 0x6c3   : > { %v5604_v31 = vpop.xlane.xlu1 %5603 }
 0x6c5   : > { %v8623_v59 = vpop.eup %8622 }
 0x6c6   : > { %v8625_v13 = vpop.eup %8624  ;;  %v5702_v7 = vmul.f32 %v8623_v59, %v12053_v25  ;;  %v12062_v59 = vld [vmem:[#allocation27_spill] sm:$0xff] }
 0x6c7   : > { %v5598_v45 = vpop.xlane.xlu1 %5597  ;;  %v8627_v33 = vpop.eup %8626  ;;  %v5699_v55 = vmul.f32 %v8625_v13, %v12054_v58 }
 0x6c8   : > { %7841 = vmatmul.mubr.msk.bf16.gmra.mxu1 %vm1795_vm4, %v4529_v43  ;;  %8634 = vrcp.f32 %v5598_v45  ;;  %v5701_v36 = vmul.f32 %v8627_v33, %v12055_v10  ;;  %v8629_v56 = vpop.eup %8628 }
 0x6c9   : > { %7892 = vmatprep.mubr.msk.bf16.mxu1 %vm1795_vm4, %v5729_v42  ;;  %8636 = vrcp.f32 %v5604_v31  ;;  %v5730_v46 = vpack.c.bf16 %v5700_v12, %v5699_v55  ;;  %v8631_v37 = vpop.eup %8630  ;;  %v12060_v31 = vld [vmem:[#allocation32_spill] sm:$0xff] }
 0x6ca   : > { %8638 = vrcp.f32 %v11111_v26  ;;  %v5731_v63 = vpack.c.bf16 %v5702_v7, %v5701_v36  ;;  %v12056_v26 = vld [vmem:[#allocation62_spill] sm:$0xff]  ;;  %v5703_v19 = vmul.f32 %v8631_v37, %v12057_v39 }
 0x6cb   : > { %8640 = vrcp.f32 %v5601_v1  ;;  %v5610_v61 = vpop.xlane.xlu1 %5609  ;;  %v5704_v24 = vmul.f32 %v8629_v56, %v12056_v26 }
 0x6cc   : > { %8642 = vrcp.f32 %v5610_v61 }
 0x6cd   : > { %8644 = vrcp.f32 %v11116_v32  ;;  %v8633_v50 = vpop.eup %8632  ;;  %v5732_v8 = vpack.c.bf16 %v5704_v24, %v5703_v19 }
 0x6ce   : > { %8646 = vrcp.f32 %v11101_v34  ;;  %v5705_v53 = vmul.f32 %v8633_v50, %v12058_v41 }
 0x6cf   : > { %v5625_v23 = vpop.xlane.xlu1 %5624 }
 0x6d0   : > { %7893 = vmatmul.mubr.msk.bf16.vlgmr.msra.gmra.mxu1 %vm1795_vm4, %v5730_v46 }
 0x6d1   : > { %7896 = vmatprep.mubr.msk.bf16.mxu1 %vm1795_vm4, %v5731_v63  ;;  %v12064_v63 = vld [vmem:[#allocation101_spill] sm:$0xff] }
 0x6d3   : > { %v5619_v1 = vpop.xlane.xlu1 %5618 }
 0x6d5   : > { %v8635_v15 = vpop.eup %8634 }
 0x6d6   : > { %v8637_v44 = vpop.eup %8636  ;;  %v5706_v57 = vmul.f32 %v8635_v15, %v10832_v4  ;;  %v12061_v4 = vld [vmem:[#allocation26_spill] sm:$0xff] }
 0x6d7   : > { %v8639_v49 = vpop.eup %8638  ;;  %v5628_v27 = vpop.xlane.xlu1 %5627  ;;  %v5708_v34 = vmul.f32 %v8637_v44, %v12059_v38 }
 0x6d8   : > { %7897 = vmatmul.mubr.msk.bf16.gmra.mxu1 %vm1795_vm4, %v5732_v8  ;;  %v8641_v32 = vpop.eup %8640  ;;  %v5733_v14 = vpack.c.bf16 %v5706_v57, %v5705_v53  ;;  %8648 = vrcp.f32 %v5628_v27  ;;  %v5709_v40 = vmul.f32 %v8639_v49, %v12061_v4 }
 0x6d9   : > { %v8643_v18 = vpop.eup %8642  ;;  %8650 = vrcp.f32 %v5619_v1  ;;  %v5707_v51 = vmul.f32 %v8641_v32, %v12060_v31 }
 0x6da   : > { %7900 = vmatprep.mubr.msk.bf16.mxu1 %vm1795_vm4, %v5733_v14  ;;  %v5710_v54 = vmul.f32 %v8643_v18, %v10841_v11  ;;  %8652 = vrcp.f32 %v5625_v23  ;;  %v8645_v16 = vpop.eup %8644  ;;  %v12063_v11 = vld [vmem:[#allocation25_spill] sm:$0xff] }
 0x6db   : > { %v5622_v30 = vpop.xlane.xlu1 %5621  ;;  %v5734_v9 = vpack.c.bf16 %v5708_v34, %v5707_v51  ;;  %v8647_v42 = vpop.eup %8646  ;;  %v5712_v45 = vmul.f32 %v8645_v16, %v12062_v59 }
 0x6dc   : > { %8654 = vrcp.f32 %v5622_v30  ;;  %v5735_v43 = vpack.c.bf16 %v5710_v54, %v5709_v40  ;;  %v5711_v33 = vmul.f32 %v8647_v42, %v12063_v11 }
 0x6de   : > { %v5736_v12 = vpack.c.bf16 %v5712_v45, %v5711_v33 }
 0x6df   : > { %v5637_v48 = vpop.xlane.xlu1 %5636 }
 0x6e0   : > { %7901 = vmatmul.mubr.msk.bf16.gmra.mxu1 %vm1795_vm4, %v5734_v9 }
 0x6e1   : > { %7904 = vmatprep.mubr.msk.bf16.mxu1 %vm1795_vm4, %v5735_v43 }
 0x6e3   : > { %v5640_v13 = vpop.xlane.xlu1 %5639 }
 0x6e4   : > { %8656 = vrcp.f32 %v5640_v13  ;;  %v5631_v20 = vpop.xlane.xlu0 %5630 }
 0x6e5   : > { %v8649_v25 = vpop.eup %8648  ;;  %8658 = vrcp.f32 %v5631_v20 }
 0x6e6   : > { %v8651_v7 = vpop.eup %8650  ;;  %8660 = vrcp.f32 %v5637_v48  ;;  %v5716_v10 = vmul.f32 %v8649_v25, %v10884_v22 }
 0x6e7   : > { %v5634_v58 = vpop.xlane.xlu1 %5633  ;;  %v8653_v55 = vpop.eup %8652  ;;  %v5713_v36 = vmul.f32 %v8651_v7, %v10872_v52 }
 0x6e8   : > { %7905 = vmatmul.mubr.msk.bf16.gmra.mxu1 %vm1795_vm4, %v5736_v12  ;;  %8662 = vrcp.f32 %v5634_v58  ;;  %v5715_v23 = vmul.f32 %v8653_v55, %v12064_v63  ;;  %v5658_v15 = vpop.xlane.xlu0 %5657 }
 0x6e9   : > { %v8655_v61 = vpop.eup %8654 }
 0x6ea   : > { %v5714_v46 = vmul.f32 %v8655_v61, %v10889_v60  ;;  %v5738_v26 = vpack.c.bf16 %v5716_v10, %v5715_v23 }
 0x6eb   : > { %v5649_v56 = vpop.xlane.xlu1 %5648 }
 0x6ec   : > { %v5737_v37 = vpack.c.bf16 %v5714_v46, %v5713_v36 }
 0x6ee   : > { %7908 = vmatprep.mubr.msk.bf16.mxu1 %vm1795_vm4, %v5737_v37 }
 0x6ef   : > { %v5643_v24 = vpop.xlane.xlu1 %5642 }
 0x6f0   : > { %7909 = vmatmul.mubr.msk.bf16.gmra.mxu1 %vm1795_vm4, %v5738_v26  ;;  %8664 = vrcp.f32 %v5643_v24 }
 0x6f1   : > { %v8657_v50 = vpop.eup %8656 }
 0x6f2   : > { %v8659_v1 = vpop.eup %8658  ;;  %v7734_v22 = vpop.f32.mrf.mxu1  ;;  %v5720_v8 = vmul.f32 %v8657_v50, %v10919_v21 }
 0x6f3   : > { %v5646_v39 = vpop.xlane.xlu1 %5645  ;;  %v8661_v19 = vpop.eup %8660  ;;  %v7224_v60 = vpack.c.bf16 %v7734_v22, %v7734_v22  ;;  %v5717_v41 = vmul.f32 %v8659_v1, %v10926_v29 }
 0x6f4   : > { %8666 = vrcp.f32 %v5646_v39  ;;  %v3409_v44 = vpop.f32.mrf.mxu1  ;;  %v5719_v49 = vmul.f32 %v8661_v19, %v10898_v47  ;;  %v5664_v21 = vpop.xlane.xlu0 %5663 }
 0x6f5   : > { %v8663_v52 = vpop.eup %8662  ;;  %8668 = vrcp.f32 %v5649_v56  ;;  %3636 = vrot.lane.b32.xlu1 %v7224_v60, %s8712_s15  ;;  %v7222_v14 = vpack.c.bf16 %v3409_v44, %v3409_v44 }
 0x6f6   : > { %v5718_v53 = vmul.f32 %v8663_v52, %v10937_v3  ;;  %v7735_v27 = vpop.f32.mrf.mxu1  ;;  %v5740_v18 = vpack.c.bf16 %v5720_v8, %v5719_v49 }
 0x6f7   : > { %v5652_v57 = vpop.xlane.xlu1 %5651  ;;  %v7225_v3 = vpack.c.bf16 %v7735_v27, %v7735_v27 }
 0x6f8   : > { %8670 = vrcp.f32 %v5652_v57  ;;  %v5739_v32 = vpack.c.bf16 %v5718_v53, %v5717_v41  ;;  %v3412_v38 = vpop.f32.mrf.mxu1 }
 0x6f9   : > { %8672 = vrcp.f32 %v5658_v15  ;;  %v7223_v34 = vpack.c.bf16 %v3412_v38, %v3412_v38  ;;  %3632 = vrot.lane.b32.xlu1 %v7222_v14, %s8712_s15 }
 0x6fa   : > { %7912 = vmatprep.mubr.msk.bf16.mxu1 %vm1795_vm4, %v5739_v32 }
 0x6fb   : > { %7913 = vmatmul.mubr.msk.bf16.gmra.mxu1 %vm1795_vm4, %v5740_v18  ;;  %v5655_v29 = vpop.xlane.xlu1 %5654  ;;  %3634 = vrot.lane.b32.xlu0 %v7223_v34, %s8712_s15 }
 0x6fc   : > { %8674 = vrcp.f32 %v5655_v29 }
 0x6fd   : > { %8676 = vrcp.f32 %v5664_v21  ;;  %v8665_v47 = vpop.eup %8664  ;;  %3638 = vrot.lane.b32.xlu1 %v7225_v3, %s8712_s15 }
 0x6fe   : > { %v5721_v40 = vmul.f32 %v8665_v47, %v10958_v62 }
 0x6ff   : > { %v5661_v54 = vpop.xlane.xlu1 %5660  ;;  %v7738_v30 = vpop.f32.mrf.mxu1 }
 0x700   : > { %8678 = vrcp.f32 %v5661_v54  ;;  %v7228_v51 = vpack.c.bf16 %v7738_v30, %v7738_v30 }
 0x701   : > { %v8667_v31 = vpop.eup %8666  ;;  %v3425_v4 = vpop.f32.mrf.mxu1 }
 0x702   : > { %v5722_v9 = vmul.f32 %v8667_v31, %v10970_v28  ;;  %v8669_v16 = vpop.eup %8668  ;;  %3644 = vrot.lane.b32.xlu0 %v7228_v51, %s8712_s15  ;;  %v7226_v59 = vpack.c.bf16 %v3425_v4, %v3425_v4 }
 0x703   : > { %v7739_v43 = vpop.f32.mrf.mxu1  ;;  %v5723_v11 = vmul.f32 %v8669_v16, %v10951_v17 }
 0x704   : > { %v5741_v48 = vpack.c.bf16 %v5722_v9, %v5721_v40  ;;  %v7229_v45 = vpack.c.bf16 %v7739_v43, %v7739_v43 }
 0x705   : > { %v8671_v42 = vpop.eup %8670  ;;  %v3428_v13 = vpop.f32.mrf.mxu1 }
 0x706   : > { %7916 = vmatprep.mubr.msk.bf16.mxu1 %vm1795_vm4, %v5741_v48  ;;  %v5724_v33 = vmul.f32 %v8671_v42, %v10979_v0  ;;  %v8673_v20 = vpop.eup %8672  ;;  %3640 = vrot.lane.b32.xlu0 %v7226_v59, %s8712_s15  ;;  %v7227_v12 = vpack.c.bf16 %v3428_v13, %v3428_v13 }
 0x707   : > { %3646 = vrot.lane.b32.xlu1 %v7229_v45, %s8712_s15  ;;  %v5726_v7 = vmul.f32 %v8673_v20, %v10942_v2 }
 0x708   : > { %v5742_v62 = vpack.c.bf16 %v5724_v33, %v5723_v11 }
 0x709   : > { %v8675_v28 = vpop.eup %8674 }
 0x70a   : > { %7917 = vmatmul.mubr.msk.bf16.gmra.mxu1 %vm1795_vm4, %v5742_v62  ;;  %v5725_v25 = vmul.f32 %v8675_v28, %v10987_v5  ;;  %v8677_v58 = vpop.eup %8676 }
 0x70b   : > { %3642 = vrot.lane.b32.xlu1 %v7227_v12, %s8712_s15  ;;  %v5728_v61 = vmul.f32 %v8677_v58, %v10953_v6 }
 0x70c   : > { %v5743_v17 = vpack.c.bf16 %v5726_v7, %v5725_v25 }
 0x70d   : > { %v8679_v55 = vpop.eup %8678 }
 0x70e   : > { %7920 = vmatprep.mubr.msk.bf16.mxu1 %vm1795_vm4, %v5743_v17  ;;  %v5727_v0 = vmul.f32 %v8679_v55, %v10996_v35 }
 0x710   : > { %v5744_v10 = vpack.c.bf16 %v5728_v61, %v5727_v0 }
 0x712   : > { %7921 = vmatmul.mubr.msk.bf16.gmra.mxu1 %vm1795_vm4, %v5744_v10 }
 0x717   : > { %v7742_v36 = vpop.f32.mrf.mxu1 }
 0x718   : > { %v7232_v46 = vpack.c.bf16 %v7742_v36, %v7742_v36 }
 0x719   : > { %v3441_v56 = vpop.f32.mrf.mxu1 }
 0x71a   : > { %3652 = vrot.lane.b32.xlu0 %v7232_v46, %s8712_s15  ;;  %v7230_v5 = vpack.c.bf16 %v3441_v56, %v3441_v56 }
 0x71b   : > { %v7743_v2 = vpop.f32.mrf.mxu1 }
 0x71c   : > { %v7233_v63 = vpack.c.bf16 %v7743_v2, %v7743_v2 }
 0x71d   : > { %v3444_v23 = vpop.f32.mrf.mxu1 }
 0x71e   : > { %3648 = vrot.lane.b32.xlu0 %v7230_v5, %s8712_s15  ;;  %3654 = vrot.lane.b32.xlu1 %v7233_v63, %s8712_s15  ;;  %v7231_v35 = vpack.c.bf16 %v3444_v23, %v3444_v23 }
 0x71f   : > { %v7746_v37 = vpop.f32.mrf.mxu1 }
 0x720   : > { %v7236_v26 = vpack.c.bf16 %v7746_v37, %v7746_v37  ;;  %v8134_v37 = vld [vmem:[%s11538_s10 + $0x8] sm:$0xff]  }
 0x721   : > { %v3457_v6 = vpop.f32.mrf.mxu1  ;;  %7924 = vmatprep.subr.bf16.mxu0 %v8134_v37 }
 0x722   : > { %3660 = vrot.lane.b32.xlu0 %v7236_v26, %s8712_s15  ;;  %3650 = vrot.lane.b32.xlu1 %v7231_v35, %s8712_s15  ;;  %v7234_v50 = vpack.c.bf16 %v3457_v6, %v3457_v6 }
 0x723   : > { %v7747_v24 = vpop.f32.mrf.mxu1  ;;  %7925 = vmatpush3.bf16.msra.mxu0 %v8134_v37 }
 0x724   : > { %v7237_v1 = vpack.c.bf16 %v7747_v24, %v7747_v24 }
 0x725   : > { %v3460_v39 = vpop.f32.mrf.mxu1 }
 0x726   : > { %3656 = vrot.lane.b32.xlu0 %v7234_v50, %s8712_s15  ;;  %3662 = vrot.lane.b32.xlu1 %v7237_v1, %s8712_s15  ;;  %v7235_v19 = vpack.c.bf16 %v3460_v39, %v3460_v39 }
 0x72a   : > { %3658 = vrot.lane.b32.xlu1 %v7235_v19, %s8712_s15 }
 0x72b   : > { %v7750_v22 = vpop.f32.mrf.mxu1 }
 0x72c   : > { %v7240_v52 = vpack.c.bf16 %v7750_v22, %v7750_v22 }
 0x72d   : > { %v3473_v15 = vpop.f32.mrf.mxu1 }
 0x72e   : > { %3668 = vrot.lane.b32.xlu0 %v7240_v52, %s8712_s15  ;;  %v7238_v8 = vpack.c.bf16 %v3473_v15, %v3473_v15 }
 0x72f   : > { %v7751_v60 = vpop.f32.mrf.mxu1 }
 0x730   : > { %v7241_v44 = vpack.c.bf16 %v7751_v60, %v7751_v60 }
 0x731   : > { %v3476_v41 = vpop.f32.mrf.mxu1 }
 0x732   : > { %3664 = vrot.lane.b32.xlu0 %v7238_v8, %s8712_s15  ;;  %3670 = vrot.lane.b32.xlu1 %v7241_v44, %s8712_s15  ;;  %v7239_v53 = vpack.c.bf16 %v3476_v41, %v3476_v41 }
 0x736   : > { %3666 = vrot.lane.b32.xlu1 %v7239_v53, %s8712_s15 }
 0x737   : > { %v7754_v57 = vpop.f32.mrf.mxu1 }
 0x738   : > { %v7244_v49 = vpack.c.bf16 %v7754_v57, %v7754_v57 }
 0x739   : > { %v3489_v27 = vpop.f32.mrf.mxu1 }
 0x73a   : > { %3676 = vrot.lane.b32.xlu0 %v7244_v49, %s8712_s15  ;;  %v7242_v14 = vpack.c.bf16 %v3489_v27, %v3489_v27 }
 0x73b   : > { %v7755_v32 = vpop.f32.mrf.mxu1 }
 0x73c   : > { %v7245_v18 = vpack.c.bf16 %v7755_v32, %v7755_v32 }
 0x73d   : > { %v3492_v38 = vpop.f32.mrf.mxu1 }
 0x73e   : > { %3672 = vrot.lane.b32.xlu0 %v7242_v14, %s8712_s15  ;;  %3678 = vrot.lane.b32.xlu1 %v7245_v18, %s8712_s15  ;;  %v7243_v34 = vpack.c.bf16 %v3492_v38, %v3492_v38 }
 0x73f   : > { %v7758_v21 = vpop.f32.mrf.mxu1 }
 0x740   : > { %v7248_v29 = vpack.c.bf16 %v7758_v21, %v7758_v21 }
 0x741   : > { %v3505_v3 = vpop.f32.mrf.mxu1 }
 0x742   : > { %3684 = vrot.lane.b32.xlu0 %v7248_v29, %s8712_s15  ;;  %3674 = vrot.lane.b32.xlu1 %v7243_v34, %s8712_s15  ;;  %v7246_v54 = vpack.c.bf16 %v3505_v3, %v3505_v3 }
 0x743   : > { %v7759_v47 = vpop.f32.mrf.mxu1 }
 0x744   : > { %v7249_v30 = vpack.c.bf16 %v7759_v47, %v7759_v47 }
 0x745   : > { %v3508_v31 = vpop.f32.mrf.mxu1 }
 0x746   : > { %3680 = vrot.lane.b32.xlu0 %v7246_v54, %s8712_s15  ;;  %3686 = vrot.lane.b32.xlu1 %v7249_v30, %s8712_s15  ;;  %v7247_v4 = vpack.c.bf16 %v3508_v31, %v3508_v31 }
 0x747   : > { %v7762_v51 = vpop.f32.mrf.mxu1 }
 0x748   : > { %v7252_v40 = vpack.c.bf16 %v7762_v51, %v7762_v51 }
 0x749   : > { %v3521_v9 = vpop.f32.mrf.mxu1 }
 0x74a   : > { %3692 = vrot.lane.b32.xlu0 %v7252_v40, %s8712_s15  ;;  %3682 = vrot.lane.b32.xlu1 %v7247_v4, %s8712_s15  ;;  %v7250_v43 = vpack.c.bf16 %v3521_v9, %v3521_v9 }
 0x74b   : > { %v7763_v16 = vpop.f32.mrf.mxu1 }
 0x74c   : > { %v7253_v48 = vpack.c.bf16 %v7763_v16, %v7763_v16 }
 0x74d   : > { %v3524_v42 = vpop.f32.mrf.mxu1 }
 0x74e   : > { %3688 = vrot.lane.b32.xlu0 %v7250_v43, %s8712_s15  ;;  %3694 = vrot.lane.b32.xlu1 %v7253_v48, %s8712_s15  ;;  %v7251_v45 = vpack.c.bf16 %v3524_v42, %v3524_v42 }
 0x74f   : > { %v7814_v59 = vpop.f32.mrf.mxu1 }
 0x750   : > { %v7256_v13 = vpack.c.bf16 %v7814_v59, %v7814_v59 }
 0x751   : > { %v4624_v11 = vpop.f32.mrf.mxu1 }
 0x752   : > { %4851 = vrot.lane.b32.xlu0 %v7256_v13, %s8713_s17  ;;  %3690 = vrot.lane.b32.xlu1 %v7251_v45, %s8712_s15  ;;  %v7254_v20 = vpack.c.bf16 %v4624_v11, %v4624_v11  ;;  %v8135_v45 = vld [vmem:[%s11538_s10] sm:$0xff]  }
 0x753   : > { %v7815_v33 = vpop.f32.mrf.mxu1  ;;  %7926 = vmatprep.subr.bf16.mxu0 %v8135_v45 }
 0x754   : > { %v7257_v62 = vpack.c.bf16 %v7815_v33, %v7815_v33  ;;  %7927 = vmatpush3.bf16.msra.mxu0 %v8135_v45 }
 0x755   : > { %v4627_v28 = vpop.f32.mrf.mxu1 }
 0x756   : > { %4847 = vrot.lane.b32.xlu0 %v7254_v20, %s8713_s17  ;;  %4853 = vrot.lane.b32.xlu1 %v7257_v62, %s8713_s17  ;;  %v7255_v25 = vpack.c.bf16 %v4627_v28, %v4627_v28 }
 0x757   : > { %v7818_v12 = vpop.f32.mrf.mxu1 }
 0x758   : > { %v7260_v7 = vpack.c.bf16 %v7818_v12, %v7818_v12 }
 0x759   : > { %v4640_v58 = vpop.f32.mrf.mxu1 }
 0x75a   : > { %4859 = vrot.lane.b32.xlu0 %v7260_v7, %s8713_s17  ;;  %4849 = vrot.lane.b32.xlu1 %v7255_v25, %s8713_s17  ;;  %v7258_v55 = vpack.c.bf16 %v4640_v58, %v4640_v58 }
 0x75b   : > { %v7819_v17 = vpop.f32.mrf.mxu1 }
 0x75c   : > { %v7261_v0 = vpack.c.bf16 %v7819_v17, %v7819_v17 }
 0x75d   : > { %v4643_v61 = vpop.f32.mrf.mxu1 }
 0x75e   : > { %4855 = vrot.lane.b32.xlu0 %v7258_v55, %s8713_s17  ;;  %4861 = vrot.lane.b32.xlu1 %v7261_v0, %s8713_s17  ;;  %v7259_v36 = vpack.c.bf16 %v4643_v61, %v4643_v61 }
 0x75f   : > { %v7822_v10 = vpop.f32.mrf.mxu1 }
 0x760   : > { %v7264_v46 = vpack.c.bf16 %v7822_v10, %v7822_v10 }
 0x761   : > { %v4656_v56 = vpop.f32.mrf.mxu1 }
 0x762   : > { %4867 = vrot.lane.b32.xlu0 %v7264_v46, %s8713_s17  ;;  %4857 = vrot.lane.b32.xlu1 %v7259_v36, %s8713_s17  ;;  %v7262_v5 = vpack.c.bf16 %v4656_v56, %v4656_v56 }
 0x763   : > { %v7823_v2 = vpop.f32.mrf.mxu1 }
 0x764   : > { %v7265_v63 = vpack.c.bf16 %v7823_v2, %v7823_v2 }
 0x765   : > { %v4659_v23 = vpop.f32.mrf.mxu1 }
 0x766   : > { %4863 = vrot.lane.b32.xlu0 %v7262_v5, %s8713_s17  ;;  %4869 = vrot.lane.b32.xlu1 %v7265_v63, %s8713_s17  ;;  %v7263_v26 = vpack.c.bf16 %v4659_v23, %v4659_v23 }
 0x767   : > { %v7826_v35 = vpop.f32.mrf.mxu1  ;;  %v3637_v24 = vpop.permute.xlu1 %3636 }
 0x768   : > { %v7268_v6 = vpack.c.bf16 %v7826_v35, %v7826_v35  ;;  %3731 = vst.msk [vmem:[#allocation4 + $0x8] sm:$0xf] %vm3728_vm6, %v3637_v24 }
 0x769   : > { %v4672_v50 = vpop.f32.mrf.mxu1 }
 0x76a   : > { %4875 = vrot.lane.b32.xlu0 %v7268_v6, %s8713_s17  ;;  %4865 = vrot.lane.b32.xlu1 %v7263_v26, %s8713_s17  ;;  %v7266_v39 = vpack.c.bf16 %v4672_v50, %v4672_v50 }
 0x76b   : > { %v7827_v1 = vpop.f32.mrf.mxu1  ;;  %v3633_v22 = vpop.permute.xlu1 %3632 }
 0x76c   : > { %v7269_v19 = vpack.c.bf16 %v7827_v1, %v7827_v1  ;;  %3729 = vst.msk [vmem:[#allocation4] sm:$0xf] %vm3728_vm6, %v3633_v22 }
 0x76d   : > { %v4675_v52 = vpop.f32.mrf.mxu1  ;;  %v3635_v15 = vpop.permute.xlu0 %3634 }
 0x76e   : > { %4871 = vrot.lane.b32.xlu0 %v7266_v39, %s8713_s17  ;;  %4877 = vrot.lane.b32.xlu1 %v7269_v19, %s8713_s17  ;;  %v7267_v8 = vpack.c.bf16 %v4675_v52, %v4675_v52  ;;  %3730 = vst.msk [vmem:[#allocation4 + $0x4] sm:$0xf] %vm3728_vm6, %v3635_v15 }
 0x76f   : > { %v7830_v60 = vpop.f32.mrf.mxu1  ;;  %v3639_v41 = vpop.permute.xlu1 %3638 }
 0x770   : > { %v7272_v44 = vpack.c.bf16 %v7830_v60, %v7830_v60  ;;  %3732 = vst.msk [vmem:[#allocation4 + $0xc] sm:$0xf] %vm3728_vm6, %v3639_v41 }
 0x771   : > { %v4688_v53 = vpop.f32.mrf.mxu1 }
 0x772   : > { %4883 = vrot.lane.b32.xlu0 %v7272_v44, %s8713_s17  ;;  %4873 = vrot.lane.b32.xlu1 %v7267_v8, %s8713_s17  ;;  %v7270_v49 = vpack.c.bf16 %v4688_v53, %v4688_v53 }
 0x773   : > { %v7831_v57 = vpop.f32.mrf.mxu1 }
 0x774   : > { %v7273_v27 = vpack.c.bf16 %v7831_v57, %v7831_v57  ;;  %v3645_v32 = vpop.permute.xlu0 %3644 }
 0x775   : > { %v4691_v14 = vpop.f32.mrf.mxu1  ;;  %3735 = vst.msk [vmem:[#allocation4 + $0x18] sm:$0xf] %vm3728_vm6, %v3645_v32 }
 0x776   : > { %4879 = vrot.lane.b32.xlu0 %v7270_v49, %s8713_s17  ;;  %4885 = vrot.lane.b32.xlu1 %v7273_v27, %s8713_s17  ;;  %v7271_v38 = vpack.c.bf16 %v4691_v14, %v4691_v14 }
 0x778   : > { %v7834_v18 = vpop.f32.mrf.mxu1  ;;  %v3641_v34 = vpop.permute.xlu0 %3640 }
 0x779   : > { %v7276_v21 = vpack.c.bf16 %v7834_v18, %v7834_v18  ;;  %v3647_v29 = vpop.permute.xlu1 %3646  ;;  %3733 = vst.msk [vmem:[#allocation4 + $0x10] sm:$0xf] %vm3728_vm6, %v3641_v34 }
 0x77a   : > { %3736 = vst.msk [vmem:[#allocation4 + $0x1c] sm:$0xf] %vm3728_vm6, %v3647_v29  ;;  %v4704_v3 = vpop.f32.mrf.mxu1  ;;  %4881 = vrot.lane.b32.xlu1 %v7271_v38, %s8713_s17 }
 0x77b   : > { %4891 = vrot.lane.b32.xlu0 %v7276_v21, %s8713_s17  ;;  %v7274_v47 = vpack.c.bf16 %v4704_v3, %v4704_v3 }
 0x77c   : > { %v7835_v54 = vpop.f32.mrf.mxu1 }
 0x77d   : > { %v7277_v30 = vpack.c.bf16 %v7835_v54, %v7835_v54  ;;  %v3643_v31 = vpop.permute.xlu1 %3642 }
 0x77e   : > { %3734 = vst.msk [vmem:[#allocation4 + $0x14] sm:$0xf] %vm3728_vm6, %v3643_v31  ;;  %v4707_v51 = vpop.f32.mrf.mxu1 }
 0x77f   : > { %4887 = vrot.lane.b32.xlu0 %v7274_v47, %s8713_s17  ;;  %4893 = vrot.lane.b32.xlu1 %v7277_v30, %s8713_s17  ;;  %v7275_v40 = vpack.c.bf16 %v4707_v51, %v4707_v51 }
 0x780   : > { %v7838_v4 = vpop.f32.mrf.mxu1 }
 0x781   : > { %v7280_v9 = vpack.c.bf16 %v7838_v4, %v7838_v4 }
 0x782   : > { %v4720_v16 = vpop.f32.mrf.mxu1 }
 0x783   : > { %4899 = vrot.lane.b32.xlu0 %v7280_v9, %s8713_s17  ;;  %4889 = vrot.lane.b32.xlu1 %v7275_v40, %s8713_s17  ;;  %v7278_v48 = vpack.c.bf16 %v4720_v16, %v4720_v16 }
 0x784   : > { %v7839_v43 = vpop.f32.mrf.mxu1 }
 0x785   : > { %v7281_v42 = vpack.c.bf16 %v7839_v43, %v7839_v43 }
 0x786   : > { %v4723_v59 = vpop.f32.mrf.mxu1 }
 0x787   : > { %4895 = vrot.lane.b32.xlu0 %v7278_v48, %s8713_s17  ;;  %4901 = vrot.lane.b32.xlu1 %v7281_v42, %s8713_s17  ;;  %v7279_v11 = vpack.c.bf16 %v4723_v59, %v4723_v59 }
 0x788   : > { %v11263_v13 = vpop.f32.mrf.mxu1 }
 0x78a   : > { %v4736_v33 = vpop.f32.mrf.mxu1 }
 0x78b   : > { %v7282_v20 = vpack.c.bf16 %v4736_v33, %v4736_v33  ;;  %4897 = vrot.lane.b32.xlu1 %v7279_v11, %s8713_s17 }
 0x78c   : > { %v11266_v62 = vpop.f32.mrf.mxu1  ;;  %v3653_v28 = vpop.permute.xlu0 %3652 }
 0x78d   : > { %4903 = vrot.lane.b32.xlu0 %v7282_v20, %s8713_s17  ;;  %3739 = vst.msk [vmem:[#allocation4 + $0x28] sm:$0xf] %vm3728_vm6, %v3653_v28 }
 0x78e   : > { %v4739_v12 = vpop.f32.mrf.mxu1 }
 0x78f   : > { %v7283_v25 = vpack.c.bf16 %v4739_v12, %v4739_v12 }
 0x790   : > { %v7894_v7 = vpop.f32.mrf.mxu1  ;;  %v3649_v17 = vpop.permute.xlu0 %3648 }
 0x791   : > { %v7288_v58 = vpack.c.bf16 %v7894_v7, %v7894_v7  ;;  %4905 = vrot.lane.b32.xlu1 %v7283_v25, %s8713_s17  ;;  %v3655_v55 = vpop.permute.xlu1 %3654  ;;  %3737 = vst.msk [vmem:[#allocation4 + $0x20] sm:$0xf] %vm3728_vm6, %v3649_v17 }
 0x792   : > { %3740 = vst.msk [vmem:[#allocation4 + $0x2c] sm:$0xf] %vm3728_vm6, %v3655_v55  ;;  %v5839_v0 = vpop.f32.mrf.mxu1 }
 0x793   : > { %6066 = vrot.lane.b32.xlu0 %v7288_v58, %s8714_s20  ;;  %v7286_v10 = vpack.c.bf16 %v5839_v0, %v5839_v0 }
 0x794   : > { %v7895_v61 = vpop.f32.mrf.mxu1  ;;  %v3661_v46 = vpop.permute.xlu0 %3660 }
 0x795   : > { %v7289_v36 = vpack.c.bf16 %v7895_v61, %v7895_v61  ;;  %v3651_v56 = vpop.permute.xlu1 %3650  ;;  %3743 = vst.msk [vmem:[#allocation4 + $0x38] sm:$0xf] %vm3728_vm6, %v3661_v46 }
 0x796   : > { %3738 = vst.msk [vmem:[#allocation4 + $0x24] sm:$0xf] %vm3728_vm6, %v3651_v56  ;;  %v5842_v2 = vpop.f32.mrf.mxu1 }
 0x797   : > { %6062 = vrot.lane.b32.xlu0 %v7286_v10, %s8714_s20  ;;  %6068 = vrot.lane.b32.xlu1 %v7289_v36, %s8714_s20  ;;  %v7287_v63 = vpack.c.bf16 %v5842_v2, %v5842_v2 }
 0x798   : > { %v7898_v5 = vpop.f32.mrf.mxu1  ;;  %v3657_v37 = vpop.permute.xlu0 %3656 }
 0x799   : > { %v7292_v23 = vpack.c.bf16 %v7898_v5, %v7898_v5  ;;  %v3663_v35 = vpop.permute.xlu1 %3662  ;;  %3741 = vst.msk [vmem:[#allocation4 + $0x30] sm:$0xf] %vm3728_vm6, %v3657_v37 }
 0x79a   : > { %3744 = vst.msk [vmem:[#allocation4 + $0x3c] sm:$0xf] %vm3728_vm6, %v3663_v35  ;;  %v5855_v26 = vpop.f32.mrf.mxu1 }
 0x79b   : > { %6074 = vrot.lane.b32.xlu0 %v7292_v23, %s8714_s20  ;;  %6064 = vrot.lane.b32.xlu1 %v7287_v63, %s8714_s20  ;;  %v7290_v24 = vpack.c.bf16 %v5855_v26, %v5855_v26 }
 0x79c   : > { %v7899_v6 = vpop.f32.mrf.mxu1 }
 0x79d   : > { %v7293_v50 = vpack.c.bf16 %v7899_v6, %v7899_v6  ;;  %v3659_v1 = vpop.permute.xlu1 %3658 }
 0x79e   : > { %3742 = vst.msk [vmem:[#allocation4 + $0x34] sm:$0xf] %vm3728_vm6, %v3659_v1  ;;  %v5858_v39 = vpop.f32.mrf.mxu1 }
 0x79f   : > { %6070 = vrot.lane.b32.xlu0 %v7290_v24, %s8714_s20  ;;  %6076 = vrot.lane.b32.xlu1 %v7293_v50, %s8714_s20  ;;  %v7291_v52 = vpack.c.bf16 %v5858_v39, %v5858_v39 }
 0x7a0   : > { %v7902_v19 = vpop.f32.mrf.mxu1  ;;  %v3669_v22 = vpop.permute.xlu0 %3668 }
 0x7a1   : > { %v7296_v15 = vpack.c.bf16 %v7902_v19, %v7902_v19  ;;  %3747 = vst.msk [vmem:[#allocation4 + $0x48] sm:$0xf] %vm3728_vm6, %v3669_v22 }
 0x7a2   : > { %v5871_v60 = vpop.f32.mrf.mxu1 }
 0x7a3   : > { %6082 = vrot.lane.b32.xlu0 %v7296_v15, %s8714_s20  ;;  %6072 = vrot.lane.b32.xlu1 %v7291_v52, %s8714_s20  ;;  %v7294_v41 = vpack.c.bf16 %v5871_v60, %v5871_v60  ;;  %v7284_v52 = vpack.c.bf16 %v11263_v13, %v11263_v13 }
 0x7a4   : > { %v7903_v8 = vpop.f32.mrf.mxu1  ;;  %v3665_v44 = vpop.permute.xlu0 %3664 }
 0x7a5   : > { %v7297_v53 = vpack.c.bf16 %v7903_v8, %v7903_v8  ;;  %3745 = vst.msk [vmem:[#allocation4 + $0x40] sm:$0xf] %vm3728_vm6, %v3665_v44  ;;  %v3671_v57 = vpop.permute.xlu1 %3670 }
 0x7a6   : > { %3748 = vst.msk [vmem:[#allocation4 + $0x4c] sm:$0xf] %vm3728_vm6, %v3671_v57  ;;  %v5874_v49 = vpop.f32.mrf.mxu1 }
 0x7a7   : > { %6078 = vrot.lane.b32.xlu0 %v7294_v41, %s8714_s20  ;;  %6084 = vrot.lane.b32.xlu1 %v7297_v53, %s8714_s20  ;;  %v7295_v32 = vpack.c.bf16 %v5874_v49, %v5874_v49  ;;  %v7285_v53 = vpack.c.bf16 %v11266_v62, %v11266_v62 }
 0x7a8   : > { %v7906_v27 = vpop.f32.mrf.mxu1 }
 0x7a9   : > { %v7300_v14 = vpack.c.bf16 %v7906_v27, %v7906_v27  ;;  %v3667_v18 = vpop.permute.xlu1 %3666 }
 0x7aa   : > { %3746 = vst.msk [vmem:[#allocation4 + $0x44] sm:$0xf] %vm3728_vm6, %v3667_v18  ;;  %v5887_v38 = vpop.f32.mrf.mxu1 }
 0x7ab   : > { %6090 = vrot.lane.b32.xlu0 %v7300_v14, %s8714_s20  ;;  %6080 = vrot.lane.b32.xlu1 %v7295_v32, %s8714_s20  ;;  %v7298_v29 = vpack.c.bf16 %v5887_v38, %v5887_v38 }
 0x7ac   : > { %v7907_v21 = vpop.f32.mrf.mxu1  ;;  %v3677_v34 = vpop.permute.xlu0 %3676 }
 0x7ad   : > { %v7301_v3 = vpack.c.bf16 %v7907_v21, %v7907_v21  ;;  %3751 = vst.msk [vmem:[#allocation4 + $0x58] sm:$0xf] %vm3728_vm6, %v3677_v34 }
 0x7ae   : > { %v5890_v47 = vpop.f32.mrf.mxu1 }
 0x7af   : > { %6086 = vrot.lane.b32.xlu0 %v7298_v29, %s8714_s20  ;;  %6092 = vrot.lane.b32.xlu1 %v7301_v3, %s8714_s20  ;;  %v7299_v31 = vpack.c.bf16 %v5890_v47, %v5890_v47 }
 0x7b0   : > { %v7910_v54 = vpop.f32.mrf.mxu1  ;;  %v3673_v30 = vpop.permute.xlu0 %3672 }
 0x7b1   : > { %v7304_v51 = vpack.c.bf16 %v7910_v54, %v7910_v54  ;;  %3749 = vst.msk [vmem:[#allocation4 + $0x50] sm:$0xf] %vm3728_vm6, %v3673_v30  ;;  %v3679_v4 = vpop.permute.xlu1 %3678 }
 0x7b2   : > { %3752 = vst.msk [vmem:[#allocation4 + $0x5c] sm:$0xf] %vm3728_vm6, %v3679_v4  ;;  %v5903_v40 = vpop.f32.mrf.mxu1 }
 0x7b3   : > { %6098 = vrot.lane.b32.xlu0 %v7304_v51, %s8714_s20  ;;  %6088 = vrot.lane.b32.xlu1 %v7299_v31, %s8714_s20  ;;  %v7302_v43 = vpack.c.bf16 %v5903_v40, %v5903_v40 }
 0x7b4   : > { %v7911_v9 = vpop.f32.mrf.mxu1  ;;  %v3685_v16 = vpop.permute.xlu0 %3684 }
 0x7b5   : > { %v7305_v48 = vpack.c.bf16 %v7911_v9, %v7911_v9  ;;  %3755 = vst.msk [vmem:[#allocation4 + $0x68] sm:$0xf] %vm3728_vm6, %v3685_v16  ;;  %v3675_v42 = vpop.permute.xlu1 %3674 }
 0x7b6   : > { %3750 = vst.msk [vmem:[#allocation4 + $0x54] sm:$0xf] %vm3728_vm6, %v3675_v42  ;;  %v5906_v59 = vpop.f32.mrf.mxu1 }
 0x7b7   : > { %6094 = vrot.lane.b32.xlu0 %v7302_v43, %s8714_s20  ;;  %6100 = vrot.lane.b32.xlu1 %v7305_v48, %s8714_s20  ;;  %v7303_v11 = vpack.c.bf16 %v5906_v59, %v5906_v59 }
 0x7b8   : > { %v3681_v45 = vpop.permute.xlu0 %3680 }
 0x7b9   : > { %3753 = vst.msk [vmem:[#allocation4 + $0x60] sm:$0xf] %vm3728_vm6, %v3681_v45  ;;  %v3687_v33 = vpop.permute.xlu1 %3686 }
 0x7ba   : > { %3756 = vst.msk [vmem:[#allocation4 + $0x6c] sm:$0xf] %vm3728_vm6, %v3687_v33 }
 0x7bb   : > { %6096 = vrot.lane.b32.xlu1 %v7303_v11, %s8714_s20  ;;  %v7914_v20 = vpop.f32.mrf.mxu1 }
 0x7bc   : > { %v7308_v28 = vpack.c.bf16 %v7914_v20, %v7914_v20  ;;  %v3693_v12 = vpop.permute.xlu0 %3692 }
 0x7bd   : > { %3759 = vst.msk [vmem:[#allocation4 + $0x78] sm:$0xf] %vm3728_vm6, %v3693_v12  ;;  %v3683_v25 = vpop.permute.xlu1 %3682  ;;  %v5919_v7 = vpop.f32.mrf.mxu1 }
 0x7be   : > { %3754 = vst.msk [vmem:[#allocation4 + $0x64] sm:$0xf] %vm3728_vm6, %v3683_v25  ;;  %6106 = vrot.lane.b32.xlu0 %v7308_v28, %s8714_s20  ;;  %v7306_v17 = vpack.c.bf16 %v5919_v7, %v5919_v7 }
 0x7bf   : > { %v7915_v58 = vpop.f32.mrf.mxu1 }
 0x7c0   : > { %v7309_v55 = vpack.c.bf16 %v7915_v58, %v7915_v58  ;;  %v3689_v0 = vpop.permute.xlu0 %3688 }
 0x7c1   : > { %3757 = vst.msk [vmem:[#allocation4 + $0x70] sm:$0xf] %vm3728_vm6, %v3689_v0  ;;  %v3695_v61 = vpop.permute.xlu1 %3694  ;;  %v5922_v10 = vpop.f32.mrf.mxu1 }
 0x7c2   : > { %3760 = vst.msk [vmem:[#allocation4 + $0x7c] sm:$0xf] %vm3728_vm6, %v3695_v61  ;;  %6102 = vrot.lane.b32.xlu0 %v7306_v17, %s8714_s20  ;;  %6108 = vrot.lane.b32.xlu1 %v7309_v55, %s8714_s20  ;;  %v7307_v36 = vpack.c.bf16 %v5922_v10, %v5922_v10 }
 0x7c4   : > { %v4852_v46 = vpop.permute.xlu0 %4851 }
 0x7c5   : > { %4946 = vst.msk [vmem:[#allocation4 + $0x8] sm:$0xf] %vm4943_vm7, %v4852_v46  ;;  %v3691_v56 = vpop.permute.xlu1 %3690 }
 0x7c6   : > { %3758 = vst.msk [vmem:[#allocation4 + $0x74] sm:$0xf] %vm3728_vm6, %v3691_v56  ;;  %6104 = vrot.lane.b32.xlu1 %v7307_v36, %s8714_s20 }
 0x7c8   : > { %v4848_v2 = vpop.permute.xlu0 %4847 }
 0x7c9   : > { %4944 = vst.msk [vmem:[#allocation4] sm:$0xf] %vm4943_vm7, %v4848_v2  ;;  %v4854_v5 = vpop.permute.xlu1 %4853 }
 0x7ca   : > { %4947 = vst.msk [vmem:[#allocation4 + $0xc] sm:$0xf] %vm4943_vm7, %v4854_v5  ;;  %v7918_v63 = vpop.f32.mrf.mxu1 }
 0x7cb   : > { %v7312_v23 = vpack.c.bf16 %v7918_v63, %v7918_v63 }
 0x7cc   : > { %v4860_v37 = vpop.permute.xlu0 %4859  ;;  %v5935_v35 = vpop.f32.mrf.mxu1 }
 0x7cd   : > { %4950 = vst.msk [vmem:[#allocation4 + $0x18] sm:$0xf] %vm4943_vm7, %v4860_v37  ;;  %v4850_v26 = vpop.permute.xlu1 %4849  ;;  %6114 = vrot.lane.b32.xlu0 %v7312_v23, %s8714_s20  ;;  %v7310_v24 = vpack.c.bf16 %v5935_v35, %v5935_v35 }
 0x7ce   : > { %4945 = vst.msk [vmem:[#allocation4 + $0x4] sm:$0xf] %vm4943_vm7, %v4850_v26  ;;  %v7919_v6 = vpop.f32.mrf.mxu1 }
 0x7cf   : > { %v7313_v50 = vpack.c.bf16 %v7919_v6, %v7919_v6 }
 0x7d0   : > { %v4856_v1 = vpop.permute.xlu0 %4855  ;;  %v5938_v39 = vpop.f32.mrf.mxu1 }
 0x7d1   : > { %4948 = vst.msk [vmem:[#allocation4 + $0x10] sm:$0xf] %vm4943_vm7, %v4856_v1  ;;  %v4862_v19 = vpop.permute.xlu1 %4861  ;;  %6110 = vrot.lane.b32.xlu0 %v7310_v24, %s8714_s20  ;;  %6116 = vrot.lane.b32.xlu1 %v7313_v50, %s8714_s20  ;;  %v7311_v15 = vpack.c.bf16 %v5938_v39, %v5938_v39 }
 0x7d2   : > { %4951 = vst.msk [vmem:[#allocation4 + $0x1c] sm:$0xf] %vm4943_vm7, %v4862_v19  ;;  %v7922_v22 = vpop.f32.mrf.mxu1 }
 0x7d3   : > { %v7316_v32 = vpack.c.bf16 %v7922_v22, %v7922_v22 }
 0x7d4   : > { %v4868_v60 = vpop.permute.xlu0 %4867  ;;  %v5951_v8 = vpop.f32.mrf.mxu1 }
 0x7d5   : > { %4954 = vst.msk [vmem:[#allocation4 + $0x28] sm:$0xf] %vm4943_vm7, %v4868_v60  ;;  %v4858_v44 = vpop.permute.xlu1 %4857  ;;  %4907 = vrot.lane.b32.xlu0 %v7284_v52, %s8713_s17  ;;  %6112 = vrot.lane.b32.xlu1 %v7311_v15, %s8714_s20  ;;  %v7314_v57 = vpack.c.bf16 %v5951_v8, %v5951_v8 }
 0x7d6   : > { %4949 = vst.msk [vmem:[#allocation4 + $0x14] sm:$0xf] %vm4943_vm7, %v4858_v44  ;;  %v7923_v41 = vpop.f32.mrf.mxu1 }
 0x7d7   : > { %v7317_v62 = vpack.c.bf16 %v7923_v41, %v7923_v41 }
 0x7d8   : > { %v4864_v49 = vpop.permute.xlu0 %4863  ;;  %v5954_v27 = vpop.f32.mrf.mxu1 }
 0x7d9   : > { %4952 = vst.msk [vmem:[#allocation4 + $0x20] sm:$0xf] %vm4943_vm7, %v4864_v49  ;;  %v4870_v13 = vpop.permute.xlu1 %4869  ;;  %4909 = vrot.lane.b32.xlu1 %v7285_v53, %s8713_s17  ;;  %6118 = vrot.lane.b32.xlu0 %v7314_v57, %s8714_s20  ;;  %v7315_v14 = vpack.c.bf16 %v5954_v27, %v5954_v27 }
 0x7da   : > { %4955 = vst.msk [vmem:[#allocation4 + $0x2c] sm:$0xf] %vm4943_vm7, %v4870_v13 }
 0x7dc   : > { %v4876_v18 = vpop.permute.xlu0 %4875 }
 0x7dd   : > { %4958 = vst.msk [vmem:[#allocation4 + $0x38] sm:$0xf] %vm4943_vm7, %v4876_v18  ;;  %v4866_v38 = vpop.permute.xlu1 %4865  ;;  %6122 = vrot.lane.b32.xlu0 %v7316_v32, %s8714_s20  ;;  %6120 = vrot.lane.b32.xlu1 %v7315_v14, %s8714_s20 }
 0x7de   : > { %4953 = vst.msk [vmem:[#allocation4 + $0x24] sm:$0xf] %vm4943_vm7, %v4866_v38 }
 0x7e0   : > { %v4872_v21 = vpop.permute.xlu0 %4871 }
 0x7e1   : > { %4956 = vst.msk [vmem:[#allocation4 + $0x30] sm:$0xf] %vm4943_vm7, %v4872_v21  ;;  %v4878_v34 = vpop.permute.xlu1 %4877  ;;  %6124 = vrot.lane.b32.xlu1 %v7317_v62, %s8714_s20 }
 0x7e2   : > { %4959 = vst.msk [vmem:[#allocation4 + $0x3c] sm:$0xf] %vm4943_vm7, %v4878_v34 }
 0x7e4   : > { %v4884_v29 = vpop.permute.xlu0 %4883 }
 0x7e5   : > { %4962 = vst.msk [vmem:[#allocation4 + $0x48] sm:$0xf] %vm4943_vm7, %v4884_v29  ;;  %v4874_v3 = vpop.permute.xlu1 %4873 }
 0x7e6   : > { %4957 = vst.msk [vmem:[#allocation4 + $0x34] sm:$0xf] %vm4943_vm7, %v4874_v3  ;;  %v11416_v3 = vld [vmem:[%s11539_s11] ss:$0 sm:$0xff] }
 0x7e8   : > { %v4880_v47 = vpop.permute.xlu0 %4879 }
 0x7e9   : > { %4960 = vst.msk [vmem:[#allocation4 + $0x40] sm:$0xf] %vm4943_vm7, %v4880_v47  ;;  %v4886_v54 = vpop.permute.xlu1 %4885 }
 0x7ea   : > { %4963 = vst.msk [vmem:[#allocation4 + $0x4c] sm:$0xf] %vm4943_vm7, %v4886_v54 }
 0x7ed   : > { %v4892_v30 = vpop.permute.xlu0 %4891  ;;  %v4882_v31 = vpop.permute.xlu1 %4881 }
 0x7ee   : > { %4966 = vst.msk [vmem:[#allocation4 + $0x58] sm:$0xf] %vm4943_vm7, %v4892_v30  ;;  %4961 = vst.msk [vmem:[#allocation4 + $0x44] sm:$0xf] %vm4943_vm7, %v4882_v31 }
 0x7f1   : > { %v4888_v51 = vpop.permute.xlu0 %4887  ;;  %v4894_v4 = vpop.permute.xlu1 %4893 }
 0x7f2   : > { %4964 = vst.msk [vmem:[#allocation4 + $0x50] sm:$0xf] %vm4943_vm7, %v4888_v51  ;;  %4967 = vst.msk [vmem:[#allocation4 + $0x5c] sm:$0xf] %vm4943_vm7, %v4894_v4 }
 0x7f5   : > { %v4900_v40 = vpop.permute.xlu0 %4899  ;;  %v4890_v9 = vpop.permute.xlu1 %4889 }
 0x7f6   : > { %4970 = vst.msk [vmem:[#allocation4 + $0x68] sm:$0xf] %vm4943_vm7, %v4900_v40  ;;  %4965 = vst.msk [vmem:[#allocation4 + $0x54] sm:$0xf] %vm4943_vm7, %v4890_v9 }
 0x7f9   : > { %v4896_v16 = vpop.permute.xlu0 %4895  ;;  %v4902_v43 = vpop.permute.xlu1 %4901 }
 0x7fa   : > { %4968 = vst.msk [vmem:[#allocation4 + $0x60] sm:$0xf] %vm4943_vm7, %v4896_v16  ;;  %4971 = vst.msk [vmem:[#allocation4 + $0x6c] sm:$0xf] %vm4943_vm7, %v4902_v43 }
 0x7fd   : > { %v4898_v48 = vpop.permute.xlu1 %4897 }
 0x7fe   : > { %4969 = vst.msk [vmem:[#allocation4 + $0x64] sm:$0xf] %vm4943_vm7, %v4898_v48 }
 0x7ff   : > { %v4904_v42 = vpop.permute.xlu0 %4903 }
 0x800   : > { %4972 = vst.msk [vmem:[#allocation4 + $0x70] sm:$0xf] %vm4943_vm7, %v4904_v42 }
 0x803   : > { %v4906_v59 = vpop.permute.xlu1 %4905 }
 0x804   : > { %4973 = vst.msk [vmem:[#allocation4 + $0x74] sm:$0xf] %vm4943_vm7, %v4906_v59 }
 0x805   : > { %v6067_v45 = vpop.permute.xlu0 %6066 }
 0x806   : > { %6161 = vst.msk [vmem:[#allocation4 + $0x8] sm:$0xf] %vm6158_vm8, %v6067_v45 }
 0x809   : > { %v6063_v11 = vpop.permute.xlu0 %6062  ;;  %v6069_v33 = vpop.permute.xlu1 %6068 }
 0x80a   : > { %6159 = vst.msk [vmem:[#allocation4] sm:$0xf] %vm6158_vm8, %v6063_v11  ;;  %6162 = vst.msk [vmem:[#allocation4 + $0xc] sm:$0xf] %vm6158_vm8, %v6069_v33 }
 0x80d   : > { %v6075_v20 = vpop.permute.xlu0 %6074  ;;  %v6065_v28 = vpop.permute.xlu1 %6064 }
 0x80e   : > { %6165 = vst.msk [vmem:[#allocation4 + $0x18] sm:$0xf] %vm6158_vm8, %v6075_v20  ;;  %6160 = vst.msk [vmem:[#allocation4 + $0x4] sm:$0xf] %vm6158_vm8, %v6065_v28 }
 0x811   : > { %v6071_v12 = vpop.permute.xlu0 %6070  ;;  %v6077_v25 = vpop.permute.xlu1 %6076  ;;  %v8137_v55 = vld [vmem:[#allocation4 + $0x8] sm:$0xff]  }
 0x812   : > { %6163 = vst.msk [vmem:[#allocation4 + $0x10] sm:$0xf] %vm6158_vm8, %v6071_v12  ;;  %6166 = vst.msk [vmem:[#allocation4 + $0x1c] sm:$0xf] %vm6158_vm8, %v6077_v25 }
 0x815   : > { %v6083_v7 = vpop.permute.xlu0 %6082  ;;  %v6073_v58 = vpop.permute.xlu1 %6072  ;;  %v8136_v17 = vld [vmem:[#allocation4] sm:$0xff]  }
 0x816   : > { %6169 = vst.msk [vmem:[#allocation4 + $0x28] sm:$0xf] %vm6158_vm8, %v6083_v7  ;;  %6164 = vst.msk [vmem:[#allocation4 + $0x14] sm:$0xf] %vm6158_vm8, %v6073_v58  ;;  %7928 = vmatprep.mubr.msk.bf16.mxu0 %vm646_vm0, %v8136_v17 }
 0x817   : > { %7929 = vmatmul.mubr.msk.bf16.vlgmr.msra.gmra.mxu0 %vm646_vm0, %v8137_v55 }
 0x819   : > { %v6079_v0 = vpop.permute.xlu0 %6078  ;;  %v6085_v61 = vpop.permute.xlu1 %6084  ;;  %v8139_v56 = vld [vmem:[#allocation4 + $0x18] sm:$0xff]  }
 0x81a   : > { %6167 = vst.msk [vmem:[#allocation4 + $0x20] sm:$0xf] %vm6158_vm8, %v6079_v0  ;;  %6170 = vst.msk [vmem:[#allocation4 + $0x2c] sm:$0xf] %vm6158_vm8, %v6085_v61 }
 0x81d   : > { %v6091_v10 = vpop.permute.xlu0 %6090  ;;  %v6081_v36 = vpop.permute.xlu1 %6080  ;;  %v8138_v46 = vld [vmem:[#allocation4 + $0x10] sm:$0xff]  }
 0x81e   : > { %6173 = vst.msk [vmem:[#allocation4 + $0x38] sm:$0xf] %vm6158_vm8, %v6091_v10  ;;  %6168 = vst.msk [vmem:[#allocation4 + $0x24] sm:$0xf] %vm6158_vm8, %v6081_v36  ;;  %7932 = vmatprep.mubr.msk.bf16.mxu0 %vm646_vm0, %v8138_v46 }
 0x81f   : > { %7933 = vmatmul.mubr.msk.bf16.gmra.mxu0 %vm646_vm0, %v8139_v56 }
 0x821   : > { %v6087_v2 = vpop.permute.xlu0 %6086  ;;  %v6093_v5 = vpop.permute.xlu1 %6092  ;;  %v8141_v35 = vld [vmem:[#allocation4 + $0x28] sm:$0xff]  }
 0x822   : > { %6171 = vst.msk [vmem:[#allocation4 + $0x30] sm:$0xf] %vm6158_vm8, %v6087_v2  ;;  %6174 = vst.msk [vmem:[#allocation4 + $0x3c] sm:$0xf] %vm6158_vm8, %v6093_v5 }
 0x825   : > { %v6099_v63 = vpop.permute.xlu0 %6098  ;;  %v6089_v23 = vpop.permute.xlu1 %6088  ;;  %v8140_v37 = vld [vmem:[#allocation4 + $0x20] sm:$0xff]  }
 0x826   : > { %6177 = vst.msk [vmem:[#allocation4 + $0x48] sm:$0xf] %vm6158_vm8, %v6099_v63  ;;  %6172 = vst.msk [vmem:[#allocation4 + $0x34] sm:$0xf] %vm6158_vm8, %v6089_v23  ;;  %7936 = vmatprep.mubr.msk.bf16.mxu0 %vm646_vm0, %v8140_v37 }
 0x827   : > { %7937 = vmatmul.mubr.msk.bf16.gmra.mxu0 %vm646_vm0, %v8141_v35 }
 0x829   : > { %v6095_v26 = vpop.permute.xlu0 %6094  ;;  %v6101_v6 = vpop.permute.xlu1 %6100  ;;  %v8143_v1 = vld [vmem:[#allocation4 + $0x38] sm:$0xff]  }
 0x82a   : > { %6175 = vst.msk [vmem:[#allocation4 + $0x40] sm:$0xf] %vm6158_vm8, %v6095_v26  ;;  %6178 = vst.msk [vmem:[#allocation4 + $0x4c] sm:$0xf] %vm6158_vm8, %v6101_v6 }
 0x82d   : > { %v6097_v24 = vpop.permute.xlu1 %6096  ;;  %v8142_v50 = vld [vmem:[#allocation4 + $0x30] sm:$0xff]  }
 0x82e   : > { %6176 = vst.msk [vmem:[#allocation4 + $0x44] sm:$0xf] %vm6158_vm8, %v6097_v24  ;;  %7940 = vmatprep.mubr.msk.bf16.mxu0 %vm646_vm0, %v8142_v50 }
 0x82f   : > { %7941 = vmatmul.mubr.msk.bf16.gmra.mxu0 %vm646_vm0, %v8143_v1 }
 0x830   : > { %v6107_v39 = vpop.permute.xlu0 %6106 }
 0x831   : > { %6181 = vst.msk [vmem:[#allocation4 + $0x58] sm:$0xf] %vm6158_vm8, %v6107_v39  ;;  %v8145_v15 = vld [vmem:[#allocation4 + $0x48] sm:$0xff]  }
 0x834   : > { %v6103_v19 = vpop.permute.xlu0 %6102  ;;  %v6109_v22 = vpop.permute.xlu1 %6108 }
 0x835   : > { %6179 = vst.msk [vmem:[#allocation4 + $0x50] sm:$0xf] %vm6158_vm8, %v6103_v19  ;;  %6182 = vst.msk [vmem:[#allocation4 + $0x5c] sm:$0xf] %vm6158_vm8, %v6109_v22  ;;  %v8144_v52 = vld [vmem:[#allocation4 + $0x40] sm:$0xff]  }
 0x836   : > { %7944 = vmatprep.mubr.msk.bf16.mxu0 %vm646_vm0, %v8144_v52 }
 0x837   : > { %7945 = vmatmul.mubr.msk.bf16.gmra.mxu0 %vm646_vm0, %v8145_v15 }
 0x838   : > { %v6105_v60 = vpop.permute.xlu1 %6104 }
 0x839   : > { %6180 = vst.msk [vmem:[#allocation4 + $0x54] sm:$0xf] %vm6158_vm8, %v6105_v60 }
 0x83c   : > { %v8147_v41 = vld [vmem:[#allocation4 + $0x58] sm:$0xff]  }
 0x83f   : > { %v6115_v8 = vpop.permute.xlu0 %6114 }
 0x840   : > { %6185 = vst.msk [vmem:[#allocation4 + $0x68] sm:$0xf] %vm6158_vm8, %v6115_v8  ;;  %v8146_v44 = vld [vmem:[#allocation4 + $0x50] sm:$0xff]  }
 0x841   : > { %7948 = vmatprep.mubr.msk.bf16.mxu0 %vm646_vm0, %v8146_v44 }
 0x842   : > { %7949 = vmatmul.mubr.msk.bf16.gmra.mxu0 %vm646_vm0, %v8147_v41 }
 0x843   : > { %v6111_v53 = vpop.permute.xlu0 %6110  ;;  %v6117_v57 = vpop.permute.xlu1 %6116 }
 0x844   : > { %6183 = vst.msk [vmem:[#allocation4 + $0x60] sm:$0xf] %vm6158_vm8, %v6111_v53  ;;  %6186 = vst.msk [vmem:[#allocation4 + $0x6c] sm:$0xf] %vm6158_vm8, %v6117_v57 }
 0x847   : > { %v4908_v49 = vpop.permute.xlu0 %4907  ;;  %v6113_v27 = vpop.permute.xlu1 %6112 }
 0x848   : > { %4974 = vst.msk [vmem:[#allocation4 + $0x78] sm:$0xf] %vm4943_vm7, %v4908_v49 }
 0x849   : > { %6184 = vst.msk [vmem:[#allocation4 + $0x64] sm:$0xf] %vm6158_vm8, %v6113_v27 }
 0x84b   : > { %v6119_v13 = vpop.permute.xlu0 %6118  ;;  %v4910_v32 = vpop.permute.xlu1 %4909  ;;  %v8149_v62 = vld [vmem:[#allocation4 + $0x68] sm:$0xff]  }
 0x84c   : > { %6187 = vst.msk [vmem:[#allocation4 + $0x70] sm:$0xf] %vm6158_vm8, %v6119_v13 }
 0x84d   : > { %4975 = vst.msk [vmem:[#allocation4 + $0x7c] sm:$0xf] %vm4943_vm7, %v4910_v32 }
 0x84f   : > { %v6123_v14 = vpop.permute.xlu0 %6122  ;;  %v6121_v18 = vpop.permute.xlu1 %6120 }
 0x850   : > { %v8148_v38 = vld [vmem:[#allocation4 + $0x60] sm:$0xff]   ;;  %6189 = vst.msk [vmem:[#allocation4 + $0x78] sm:$0xf] %vm6158_vm8, %v6123_v14  ;;  %6188 = vst.msk [vmem:[#allocation4 + $0x74] sm:$0xf] %vm6158_vm8, %v6121_v18 }
 0x851   : > { %7952 = vmatprep.mubr.msk.bf16.mxu0 %vm646_vm0, %v8148_v38 }
 0x852   : > { %7953 = vmatmul.mubr.msk.bf16.gmra.mxu0 %vm646_vm0, %v8149_v62 }
 0x853   : > { %v6125_v21 = vpop.permute.xlu1 %6124 }
 0x854   : > { %6190 = vst.msk [vmem:[#allocation4 + $0x7c] sm:$0xf] %vm6158_vm8, %v6125_v21 }
 0x857   : > { %v8150_v34 = vld [vmem:[#allocation4 + $0x70] sm:$0xff]  }
 0x858   : > { %7956 = vmatprep.mubr.msk.bf16.mxu0 %vm646_vm0, %v8150_v34 }
 0x85b   : > { %v8151_v29 = vld [vmem:[#allocation4 + $0x78] sm:$0xff]  }
 0x85c   : > { %7957 = vmatmul.mubr.msk.bf16.gmra.mxu0 %vm646_vm0, %v8151_v29 }
 0x8d7   : > { %v7930_v47 = vpop.f32.mrf.mxu0 }
 0x8d8   : > { %v6417_v54 = vadd.f32 %v7930_v47, %v11416_v3 }
 0x8d9   : > { %v6408_v30 = vpop.f32.mrf.mxu0 }
 0x8da   : > { %6537 = vst.msk [vmem:[%s11421_s13 + $0x10] sm:$0xff] %vm646_vm0, %v6417_v54  ;;  %v6409_v31 = vadd.f32 %v11416_v3, %v6408_v30 }
 0x8db   : > { %v7931_v51 = vpop.f32.mrf.mxu0 }
 0x8dc   : > { %6535 = vst.msk [vmem:[%s11421_s13] sm:$0xff] %vm646_vm0, %v6409_v31  ;;  %v6420_v4 = vadd.f32 %v7931_v51, %v11416_v3 }
 0x8dd   : > { %v6411_v40 = vpop.f32.mrf.mxu0 }
 0x8de   : > { %6538 = vst.msk [vmem:[%s11421_s13 + $0x18] sm:$0xff] %vm646_vm0, %v6420_v4  ;;  %v6412_v9 = vadd.f32 %v11416_v3, %v6411_v40 }
 0x8df   : > { %v7934_v16 = vpop.f32.mrf.mxu0 }
 0x8e0   : > { %6536 = vst.msk [vmem:[%s11421_s13 + $0x8] sm:$0xff] %vm646_vm0, %v6412_v9  ;;  %v6433_v43 = vadd.f32 %v7934_v16, %v11416_v3 }
 0x8e1   : > { %v6424_v48 = vpop.f32.mrf.mxu0 }
 0x8e2   : > { %6541 = vst.msk [vmem:[%s11421_s13 + $0x30] sm:$0xff] %vm646_vm0, %v6433_v43  ;;  %v6425_v42 = vadd.f32 %v11416_v3, %v6424_v48 }
 0x8e3   : > { %v7935_v59 = vpop.f32.mrf.mxu0 }
 0x8e4   : > { %6539 = vst.msk [vmem:[%s11421_s13 + $0x20] sm:$0xff] %vm646_vm0, %v6425_v42  ;;  %v6436_v45 = vadd.f32 %v7935_v59, %v11416_v3 }
 0x8e5   : > { %v6427_v11 = vpop.f32.mrf.mxu0 }
 0x8e6   : > { %6542 = vst.msk [vmem:[%s11421_s13 + $0x38] sm:$0xff] %vm646_vm0, %v6436_v45  ;;  %v6428_v33 = vadd.f32 %v11416_v3, %v6427_v11 }
 0x8e7   : > { %v7938_v20 = vpop.f32.mrf.mxu0 }
 0x8e8   : > { %6540 = vst.msk [vmem:[%s11421_s13 + $0x28] sm:$0xff] %vm646_vm0, %v6428_v33  ;;  %v6449_v28 = vadd.f32 %v7938_v20, %v11416_v3 }
 0x8e9   : > { %v6440_v12 = vpop.f32.mrf.mxu0 }
 0x8ea   : > { %6545 = vst.msk [vmem:[%s11421_s13 + $0x50] sm:$0xff] %vm646_vm0, %v6449_v28  ;;  %v6441_v25 = vadd.f32 %v11416_v3, %v6440_v12 }
 0x8eb   : > { %v7939_v7 = vpop.f32.mrf.mxu0 }
 0x8ec   : > { %6543 = vst.msk [vmem:[%s11421_s13 + $0x40] sm:$0xff] %vm646_vm0, %v6441_v25  ;;  %v6452_v58 = vadd.f32 %v7939_v7, %v11416_v3 }
 0x8ed   : > { %v6443_v17 = vpop.f32.mrf.mxu0 }
 0x8ee   : > { %6546 = vst.msk [vmem:[%s11421_s13 + $0x58] sm:$0xff] %vm646_vm0, %v6452_v58  ;;  %v6444_v55 = vadd.f32 %v11416_v3, %v6443_v17 }
 0x8ef   : > { %v7942_v0 = vpop.f32.mrf.mxu0 }
 0x8f0   : > { %6544 = vst.msk [vmem:[%s11421_s13 + $0x48] sm:$0xff] %vm646_vm0, %v6444_v55  ;;  %v6465_v61 = vadd.f32 %v7942_v0, %v11416_v3 }
 0x8f1   : > { %v6456_v10 = vpop.f32.mrf.mxu0 }
 0x8f2   : > { %6549 = vst.msk [vmem:[%s11421_s13 + $0x70] sm:$0xff] %vm646_vm0, %v6465_v61  ;;  %v6457_v36 = vadd.f32 %v11416_v3, %v6456_v10 }
 0x8f3   : > { %v7943_v46 = vpop.f32.mrf.mxu0 }
 0x8f4   : > { %6547 = vst.msk [vmem:[%s11421_s13 + $0x60] sm:$0xff] %vm646_vm0, %v6457_v36  ;;  %v6468_v56 = vadd.f32 %v7943_v46, %v11416_v3 }
 0x8f5   : > { %v6459_v2 = vpop.f32.mrf.mxu0 }
 0x8f6   : > { %6550 = vst.msk [vmem:[%s11421_s13 + $0x78] sm:$0xff] %vm646_vm0, %v6468_v56  ;;  %v6460_v5 = vadd.f32 %v11416_v3, %v6459_v2 }
 0x8f7   : > { %v7946_v63 = vpop.f32.mrf.mxu0 }
 0x8f8   : > { %6548 = vst.msk [vmem:[%s11421_s13 + $0x68] sm:$0xff] %vm646_vm0, %v6460_v5  ;;  %v6481_v23 = vadd.f32 %v7946_v63, %v11416_v3 }
 0x8f9   : > { %v6472_v37 = vpop.f32.mrf.mxu0 }
 0x8fa   : > { %6553 = vst.msk [vmem:[%s11421_s13 + $0x90] sm:$0xff] %vm646_vm0, %v6481_v23  ;;  %v6473_v35 = vadd.f32 %v11416_v3, %v6472_v37 }
 0x8fb   : > { %v7947_v26 = vpop.f32.mrf.mxu0 }
 0x8fc   : > { %6551 = vst.msk [vmem:[%s11421_s13 + $0x80] sm:$0xff] %vm646_vm0, %v6473_v35  ;;  %v6484_v6 = vadd.f32 %v7947_v26, %v11416_v3 }
 0x8fd   : > { %v6475_v24 = vpop.f32.mrf.mxu0 }
 0x8fe   : > { %6554 = vst.msk [vmem:[%s11421_s13 + $0x98] sm:$0xff] %vm646_vm0, %v6484_v6  ;;  %v6476_v50 = vadd.f32 %v11416_v3, %v6475_v24 }
 0x900   : > { %6552 = vst.msk [vmem:[%s11421_s13 + $0x88] sm:$0xff] %vm646_vm0, %v6476_v50 }
 0x902   : > { %v7950_v1 = vpop.f32.mrf.mxu0 }
 0x903   : > { %v6497_v39 = vadd.f32 %v7950_v1, %v11416_v3 }
 0x904   : > { %v6488_v19 = vpop.f32.mrf.mxu0 }
 0x905   : > { %6557 = vst.msk [vmem:[%s11421_s13 + $0xb0] sm:$0xff] %vm646_vm0, %v6497_v39  ;;  %v6489_v22 = vadd.f32 %v11416_v3, %v6488_v19 }
 0x906   : > { %v7951_v52 = vpop.f32.mrf.mxu0 }
 0x907   : > { %6555 = vst.msk [vmem:[%s11421_s13 + $0xa0] sm:$0xff] %vm646_vm0, %v6489_v22  ;;  %v6500_v15 = vadd.f32 %v7951_v52, %v11416_v3 }
 0x908   : > { %v6491_v60 = vpop.f32.mrf.mxu0 }
 0x909   : > { %6558 = vst.msk [vmem:[%s11421_s13 + $0xb8] sm:$0xff] %vm646_vm0, %v6500_v15  ;;  %v6492_v8 = vadd.f32 %v11416_v3, %v6491_v60 }
 0x90b   : > { %6556 = vst.msk [vmem:[%s11421_s13 + $0xa8] sm:$0xff] %vm646_vm0, %v6492_v8 }
 0x912   : > { %v7954_v44 = vpop.f32.mrf.mxu0 }
 0x913   : > { %v6513_v41 = vadd.f32 %v7954_v44, %v11416_v3 }
 0x914   : > { %v6504_v53 = vpop.f32.mrf.mxu0 }
 0x915   : > { %6561 = vst.msk [vmem:[%s11421_s13 + $0xd0] sm:$0xff] %vm646_vm0, %v6513_v41  ;;  %v6505_v57 = vadd.f32 %v11416_v3, %v6504_v53 }
 0x916   : > { %v7955_v49 = vpop.f32.mrf.mxu0 }
 0x917   : > { %6559 = vst.msk [vmem:[%s11421_s13 + $0xc0] sm:$0xff] %vm646_vm0, %v6505_v57  ;;  %v6516_v27 = vadd.f32 %v7955_v49, %v11416_v3 }
 0x918   : > { %v6507_v13 = vpop.f32.mrf.mxu0 }
 0x919   : > { %6562 = vst.msk [vmem:[%s11421_s13 + $0xd8] sm:$0xff] %vm646_vm0, %v6516_v27  ;;  %v6508_v32 = vadd.f32 %v11416_v3, %v6507_v13 }
 0x91b   : > { %6560 = vst.msk [vmem:[%s11421_s13 + $0xc8] sm:$0xff] %vm646_vm0, %v6508_v32 }
 0x91c   : > { %v7958_v14 = vpop.f32.mrf.mxu0 }
 0x91d   : > { %v6529_v18 = vadd.f32 %v7958_v14, %v11416_v3 }
 0x91e   : > { %v6520_v38 = vpop.f32.mrf.mxu0 }
 0x91f   : > { %6565 = vst.msk [vmem:[%s11421_s13 + $0xf0] sm:$0xff] %vm646_vm0, %v6529_v18  ;;  %v6521_v62 = vadd.f32 %v11416_v3, %v6520_v38 }
 0x920   : > { %v7959_v21 = vpop.f32.mrf.mxu0 }
 0x921   : > { %6563 = vst.msk [vmem:[%s11421_s13 + $0xe0] sm:$0xff] %vm646_vm0, %v6521_v62  ;;  %v6532_v34 = vadd.f32 %v7959_v21, %v11416_v3 }
 0x922   : > { %v6523_v29 = vpop.f32.mrf.mxu0 }
 0x923   : > { %6566 = vst.msk [vmem:[%s11421_s13 + $0xf8] sm:$0xff] %vm646_vm0, %v6532_v34  ;;  %v6524_v47 = vadd.f32 %v11416_v3, %v6523_v29 }
 0x925   : > { %6564 = vst.msk [vmem:[%s11421_s13 + $0xe8] sm:$0xff] %vm646_vm0, %v6524_v47 }
 0x926 PF: > { %s22_s23 = sadd.s32 1, %s8703_s23   ;;  %s12065_s21 = smov %s8699_s22 }
 0x927   : > { %p19_p5 = scmp.ge.s32.totalorder %s22_s23, 4   ;;  %s12066_s22 = smov %s12068_s24 }
 0x929   :  { %21 = sbr.rel (!%p19_p5) target bundleno = 2 (0x2), region = 105 }

</bundles_post_ra>
